<compile_context>
chip_gen: v5e
topology: v5e:2x2
jax: 0.10.0
libtpu: 0.0.40
codegen_flags: <defaults>
</compile_context>

<pallas_src>
import functools

import jax
import jax.numpy as jnp
from jax.experimental import pallas as pl
from jax.experimental.pallas import tpu as pltpu

H = 200     # hidden width of enc_fc1 / dec_fc1
L = 20      # latent dim
LANE = 128  # TPU lane width


def _round_up(n, m):
    return ((n + m - 1) // m) * m


# ----------------------------------------------------------------------------- kernel
def vae_forward_kernel(x_ref, eps_ref,
                       w1_ref, b1_ref,
                       wh_ref, bh_ref,
                       wd1_ref, bd1_ref,
                       wd2_ref, bd2_ref,
                       recon_ref, heads_ref):
    lp = eps_ref.shape[-1]  # padded latent width (128)

    # bf16 MXU operands, f32 accumulation, f32 elementwise epilogues.
    x = x_ref[...].astype(jnp.bfloat16)

    # encoder: h = relu(x @ W1 + b1)                       -> (TB, HP), f32
    h = jnp.dot(x, w1_ref[...], preferred_element_type=jnp.float32) + b1_ref[...]
    h = jnp.maximum(h, 0.0)

    # fused mu|sigma heads: one matmul; lanes [0,128) = mu, [128,256) = sigma
    heads = jnp.dot(h.astype(jnp.bfloat16), wh_ref[...],
                    preferred_element_type=jnp.float32) + bh_ref[...]
    heads_ref[...] = heads

    mu = heads[:, :lp]        # 128-lane aligned slices (free)
    sigma = heads[:, lp:]

    # reparameterization trick: z = mu + sigma * eps
    # (padded mu/sigma lanes are exactly zero, so padded z lanes are zero)
    z = mu + sigma * eps_ref[...]

    # decoder: relu(z @ Wd1 + bd1) -> sigmoid(. @ Wd2 + bd2)
    hd = jnp.dot(z.astype(jnp.bfloat16), wd1_ref[...],
                 preferred_element_type=jnp.float32) + bd1_ref[...]
    hd = jnp.maximum(hd, 0.0)
    logits = jnp.dot(hd.astype(jnp.bfloat16), wd2_ref[...],
                     preferred_element_type=jnp.float32) + bd2_ref[...]
    # exact sigmoid via a single EUP op: sigmoid(x) = 0.5*tanh(0.5*x) + 0.5
    recon_ref[...] = (0.5 * jnp.tanh(0.5 * logits) + 0.5).astype(recon_ref.dtype)


# ----------------------------------------------------------------------------- wrapper
def prepare_padded_params(params):
    """Zero-pad lane (out-feature) dims to multiples of 128, fuse mu/sigma heads.

    Weights -> bf16 (MXU operands); biases stay f32 (added in the f32 epilogue).
    Done once at init, outside the hot path.
    """
    (w1, b1, wmu, bmu, wsig, bsig, wd1, bd1, wd2, bd2) = params
    input_dim = w1.shape[0]
    hp = _round_up(H, LANE)
    lp = _round_up(L, LANE)

    def padw(a, rows, cols):
        z = jnp.zeros((rows, cols), jnp.float32).at[:a.shape[0], :a.shape[1]].set(a)
        return z.astype(jnp.bfloat16)

    def padb(a, cols):
        return jnp.zeros((1, cols), jnp.float32).at[:, :a.shape[1]].set(a)

    w1_p = padw(w1, input_dim, hp)                                          # (D, 256)
    b1_p = padb(b1, hp)                                                     # (1, 256)
    wh_p = jnp.concatenate([padw(wmu, hp, lp), padw(wsig, hp, lp)], axis=1)  # (256, 256)
    bh_p = jnp.concatenate([padb(bmu, lp), padb(bsig, lp)], axis=1)          # (1, 256)
    wd1_p = padw(wd1, lp, hp)                                               # (128, 256)
    bd1_p = padb(bd1, hp)                                                   # (1, 256)
    wd2_p = padw(wd2, hp, input_dim)                                        # (256, D)
    bd2_p = padb(bd2, input_dim)                                            # (1, D)
    return (w1_p, b1_p, wh_p, bh_p, wd1_p, bd1_p, wd2_p, bd2_p)


@functools.partial(jax.jit, static_argnames=("tb",))
def vae_forward(x, eps, padded_params, *, tb=128):
    """Fused VAE forward. Returns (recon[bf16], mu[f32], sigma[f32]) at logical shapes.

    Pick tb so that ceil(B/tb) >= 4 (>= 2 grid steps per TensorCore on v7x).
    """
    B, D = x.shape
    hp = _round_up(H, LANE)
    lp = _round_up(L, LANE)
    bp = _round_up(B, tb)

    (w1_p, b1_p, wh_p, bh_p, wd1_p, bd1_p, wd2_p, bd2_p) = padded_params

    # x streams at its natural feature width (block last dim == full array dim);
    # bf16 cast happens in-kernel on the VMEM tile, so no wrapper pad/cast copy.
    x_in = x if bp == B else jnp.zeros((bp, D), x.dtype).at[:B].set(x)

    # eps lane-padded to 128 (tiny). Padded mu/sigma lanes are zero, so the padded
    # eps lanes never influence z.
    eps_in = jnp.zeros((bp, lp), jnp.float32).at[:B, :eps.shape[1]].set(eps)

    n_tiles = bp // tb

    def batch_spec(cols):
        return pl.BlockSpec((tb, cols), lambda i: (i, 0))

    def resident_spec(shape):
        # constant block index -> DMA'd once, stays resident in VMEM across batch tiles
        return pl.BlockSpec(shape, lambda i: (0, 0))

    in_specs = [
        batch_spec(D),                  # x   (full last dim == array dim, allowed)
        batch_spec(lp),                 # eps
        resident_spec(w1_p.shape), resident_spec(b1_p.shape),
        resident_spec(wh_p.shape), resident_spec(bh_p.shape),
        resident_spec(wd1_p.shape), resident_spec(bd1_p.shape),
        resident_spec(wd2_p.shape), resident_spec(bd2_p.shape),
    ]
    out_shape = (
        jax.ShapeDtypeStruct((bp, D), jnp.bfloat16),      # recon (bf16: halves writeback)
        jax.ShapeDtypeStruct((bp, 2 * lp), jnp.float32),  # mu|sigma heads (f32 for KL)
    )
    out_specs = (batch_spec(D), batch_spec(2 * lp))

    # Advisory cost estimate so XLA schedules neighbouring ops around the call.
    flops = 2 * bp * (D * hp + hp * 2 * lp + lp * hp + hp * D)
    bytes_weights = sum(int(a.size) * a.dtype.itemsize
                        for a in (w1_p, b1_p, wh_p, bh_p, wd1_p, bd1_p, wd2_p, bd2_p))
    bytes_accessed = (bp * D * x.dtype.itemsize      # x in
                      + bp * lp * 4                  # eps in
                      + bytes_weights                # resident params
                      + bp * D * 2                   # recon out (bf16)
                      + bp * 2 * lp * 4)             # heads out (f32)
    cost = pl.CostEstimate(flops=flops, transcendentals=bp * D,
                           bytes_accessed=bytes_accessed)

    recon_p, heads_p = pl.pallas_call(
        vae_forward_kernel,
        out_shape=out_shape,
        grid=(n_tiles,),
        in_specs=in_specs,
        out_specs=out_specs,
        compiler_params=pltpu.CompilerParams(
            dimension_semantics=("parallel",)),  # shards batch tiles across v7x's 2 TCs
        cost_estimate=cost,
    )(x_in, eps_in, w1_p, b1_p, wh_p, bh_p, wd1_p, bd1_p, wd2_p, bd2_p)

    recon = recon_p if bp == B else recon_p[:B]
    mu = heads_p[:B, :L]
    sigma = heads_p[:B, lp:lp + L]
    return recon, mu, sigma


# ----------------------------------------------------------------------------- params / reference
def init_params(key, input_dim):
    """PyTorch-default-style init (uniform +-1/sqrt(fan_in)); weights are (in, out)."""
    shapes_fanin = [
        ((input_dim, H), input_dim), ((1, H), input_dim),   # enc_fc1
        ((H, L), H), ((1, L), H),                           # enc_mu
        ((H, L), H), ((1, L), H),                           # enc_sigma
        ((L, H), L), ((1, H), L),                           # dec_fc1
        ((H, input_dim), H), ((1, input_dim), H),           # dec_fc2
    ]
    keys = jax.random.split(key, len(shapes_fanin))
    params = []
    for k, (shp, fi) in zip(keys, shapes_fanin):
        bound = 1.0 / (fi ** 0.5)
        params.append(jax.random.uniform(k, shp, jnp.float32, minval=-bound, maxval=bound))
    return tuple(params)


def vae_reference(x, eps, params):
    """Pure-JAX (f32, unpadded, unfused) reference of the same forward pass."""
    (w1, b1, wmu, bmu, wsig, bsig, wd1, bd1, wd2, bd2) = params
    h = jnp.maximum(x @ w1 + b1, 0.0)
    mu = h @ wmu + bmu
    sigma = h @ wsig + bsig
    z = mu + sigma * eps
    hd = jnp.maximum(z @ wd1 + bd1, 0.0)
    recon = jax.nn.sigmoid(hd @ wd2 + bd2)
    return recon, mu, sigma


# ----------------------------------------------------------------------------- main
if __name__ == "__main__":
    B = 512           # 4 batch tiles of 128 -> >= 2 grid steps per TensorCore on v7x
    input_dim = 784   # flattened 28x28 image, matching x.reshape(B, -1) in the module

    key = jax.random.PRNGKey(0)
    kx, keps, kp = jax.random.split(key, 3)

    x = jax.random.uniform(kx, (B, input_dim), jnp.float32)   # "image" in [0,1)
    # Reparam noise (torch.randn_like equivalent) sampled outside the kernel so the
    # run is deterministic and checkable against the pure-JAX reference.
    eps = jax.random.normal(keps, (B, L), jnp.float32)

    params = init_params(kp, input_dim)
    padded_params = prepare_padded_params(params)

    recon, mu, sigma = vae_forward(x, eps, padded_params, tb=128)
    recon, mu, sigma = jax.block_until_ready((recon, mu, sigma))

    # sanity check against pure-JAX reference (looser tolerances: bf16 MXU operands
    # with f32 accumulation, bf16 recon output)
    r_ref, mu_ref, sig_ref = vae_reference(x, eps, params)
    assert recon.shape == (B, input_dim) and mu.shape == (B, L) and sigma.shape == (B, L)
    assert jnp.allclose(mu, mu_ref, atol=3e-2, rtol=3e-2)
    assert jnp.allclose(sigma, sig_ref, atol=3e-2, rtol=3e-2)
    assert jnp.allclose(recon.astype(jnp.float32), r_ref, atol=3e-2, rtol=3e-2)

    print("KERNEL_OK")
</pallas_src>

<mosaic_0001>
module attributes {stable_mosaic.version = 11 : i64} {
  func.func @vae_forward_kernel(%arg0: i32, %arg1: memref<128x784xf32, #tpu.memory_space<vmem>>, %arg2: memref<128x128xf32, #tpu.memory_space<vmem>>, %arg3: memref<784x256xbf16, #tpu.memory_space<vmem>>, %arg4: memref<1x256xf32, #tpu.memory_space<vmem>>, %arg5: memref<256x256xbf16, #tpu.memory_space<vmem>>, %arg6: memref<1x256xf32, #tpu.memory_space<vmem>>, %arg7: memref<128x256xbf16, #tpu.memory_space<vmem>>, %arg8: memref<1x256xf32, #tpu.memory_space<vmem>>, %arg9: memref<256x784xbf16, #tpu.memory_space<vmem>>, %arg10: memref<1x784xf32, #tpu.memory_space<vmem>>, %arg11: memref<128x784xbf16, #tpu.memory_space<vmem>>, %arg12: memref<128x256xf32, #tpu.memory_space<vmem>>) attributes {dimension_semantics = [#tpu.dimension_semantics<parallel>], iteration_bounds = array<i64: 4>, scalar_prefetch = 0 : i64, scratch_operands = 0 : i64, tpu.core_type = #tpu.core_type<tc>, window_params = [{transform_indices = @transform_0, window_bounds = array<i64: 128, 784>}, {transform_indices = @transform_1, window_bounds = array<i64: 128, 128>}, {pipeline_mode = #tpu.pipeline_mode<synchronous>, transform_indices = @transform_2, window_bounds = array<i64: 784, 256>}, {pipeline_mode = #tpu.pipeline_mode<synchronous>, transform_indices = @transform_3, window_bounds = array<i64: 1, 256>}, {pipeline_mode = #tpu.pipeline_mode<synchronous>, transform_indices = @transform_4, window_bounds = array<i64: 256, 256>}, {pipeline_mode = #tpu.pipeline_mode<synchronous>, transform_indices = @transform_5, window_bounds = array<i64: 1, 256>}, {pipeline_mode = #tpu.pipeline_mode<synchronous>, transform_indices = @transform_6, window_bounds = array<i64: 128, 256>}, {pipeline_mode = #tpu.pipeline_mode<synchronous>, transform_indices = @transform_7, window_bounds = array<i64: 1, 256>}, {pipeline_mode = #tpu.pipeline_mode<synchronous>, transform_indices = @transform_8, window_bounds = array<i64: 256, 784>}, {pipeline_mode = #tpu.pipeline_mode<synchronous>, transform_indices = @transform_9, window_bounds = array<i64: 1, 784>}, {transform_indices = @transform_10, window_bounds = array<i64: 128, 784>}, {transform_indices = @transform_11, window_bounds = array<i64: 128, 256>}]} {
    %c0 = arith.constant 0 : index
    %c0_0 = arith.constant 0 : index
    %0 = vector.load %arg1[%c0, %c0_0] : memref<128x784xf32, #tpu.memory_space<vmem>>, vector<128x784xf32>
    %1 = arith.truncf %0 : vector<128x784xf32> to vector<128x784xbf16>
    %c0_1 = arith.constant 0 : index
    %c0_2 = arith.constant 0 : index
    %2 = vector.load %arg3[%c0_1, %c0_2] : memref<784x256xbf16, #tpu.memory_space<vmem>>, vector<784x256xbf16>
    %cst = arith.constant dense<0.000000e+00> : vector<128x256xf32>
    %3 = tpu.matmul %1, %2, %cst {dimension_numbers = #tpu.dot_dimension_numbers<[1], [0], [0], [1], [0, 0, 1, 1], [], []>} : vector<128x784xbf16>, vector<784x256xbf16>, vector<128x256xf32> -> vector<128x256xf32>
    %c0_3 = arith.constant 0 : index
    %c0_4 = arith.constant 0 : index
    %4 = vector.load %arg4[%c0_3, %c0_4] : memref<1x256xf32, #tpu.memory_space<vmem>>, vector<1x256xf32>
    %5 = vector.broadcast %4 : vector<1x256xf32> to vector<128x256xf32>
    %6 = arith.addf %3, %5 : vector<128x256xf32>
    %cst_5 = arith.constant 0.000000e+00 : f32
    %7 = vector.broadcast %cst_5 : f32 to vector<128x256xf32>
    %8 = arith.maximumf %6, %7 : vector<128x256xf32>
    %9 = arith.truncf %8 : vector<128x256xf32> to vector<128x256xbf16>
    %c0_6 = arith.constant 0 : index
    %c0_7 = arith.constant 0 : index
    %10 = vector.load %arg5[%c0_6, %c0_7] : memref<256x256xbf16, #tpu.memory_space<vmem>>, vector<256x256xbf16>
    %cst_8 = arith.constant dense<0.000000e+00> : vector<128x256xf32>
    %11 = tpu.matmul %9, %10, %cst_8 {dimension_numbers = #tpu.dot_dimension_numbers<[1], [0], [0], [1], [0, 0, 1, 1], [], []>} : vector<128x256xbf16>, vector<256x256xbf16>, vector<128x256xf32> -> vector<128x256xf32>
    %c0_9 = arith.constant 0 : index
    %c0_10 = arith.constant 0 : index
    %12 = vector.load %arg6[%c0_9, %c0_10] : memref<1x256xf32, #tpu.memory_space<vmem>>, vector<1x256xf32>
    %13 = vector.broadcast %12 : vector<1x256xf32> to vector<128x256xf32>
    %14 = arith.addf %11, %13 : vector<128x256xf32>
    %c0_11 = arith.constant 0 : index
    %c0_12 = arith.constant 0 : index
    %15 = vector.load %arg12[%c0_11, %c0_12] : memref<128x256xf32, #tpu.memory_space<vmem>>, vector<128x256xf32>
    tpu.vector_store %arg12[%c0_11, %c0_12], %14 {strides = array<i32>} : memref<128x256xf32, #tpu.memory_space<vmem>>, vector<128x256xf32>,
    %16 = vector.extract_strided_slice %14 {offsets = [0, 0], sizes = [128, 128], strides = [1, 1]} : vector<128x256xf32> to vector<128x128xf32>
    %17 = vector.extract_strided_slice %14 {offsets = [0, 128], sizes = [128, 128], strides = [1, 1]} : vector<128x256xf32> to vector<128x128xf32>
    %c0_13 = arith.constant 0 : index
    %c0_14 = arith.constant 0 : index
    %18 = vector.load %arg2[%c0_13, %c0_14] : memref<128x128xf32, #tpu.memory_space<vmem>>, vector<128x128xf32>
    %19 = arith.mulf %17, %18 : vector<128x128xf32>
    %20 = arith.addf %16, %19 : vector<128x128xf32>
    %21 = arith.truncf %20 : vector<128x128xf32> to vector<128x128xbf16>
    %c0_15 = arith.constant 0 : index
    %c0_16 = arith.constant 0 : index
    %22 = vector.load %arg7[%c0_15, %c0_16] : memref<128x256xbf16, #tpu.memory_space<vmem>>, vector<128x256xbf16>
    %cst_17 = arith.constant dense<0.000000e+00> : vector<128x256xf32>
    %23 = tpu.matmul %21, %22, %cst_17 {dimension_numbers = #tpu.dot_dimension_numbers<[1], [0], [0], [1], [0, 0, 1, 1], [], []>} : vector<128x128xbf16>, vector<128x256xbf16>, vector<128x256xf32> -> vector<128x256xf32>
    %c0_18 = arith.constant 0 : index
    %c0_19 = arith.constant 0 : index
    %24 = vector.load %arg8[%c0_18, %c0_19] : memref<1x256xf32, #tpu.memory_space<vmem>>, vector<1x256xf32>
    %25 = vector.broadcast %24 : vector<1x256xf32> to vector<128x256xf32>
    %26 = arith.addf %23, %25 : vector<128x256xf32>
    %cst_20 = arith.constant 0.000000e+00 : f32
    %27 = vector.broadcast %cst_20 : f32 to vector<128x256xf32>
    %28 = arith.maximumf %26, %27 : vector<128x256xf32>
    %29 = arith.truncf %28 : vector<128x256xf32> to vector<128x256xbf16>
    %c0_21 = arith.constant 0 : index
    %c0_22 = arith.constant 0 : index
    %30 = vector.load %arg9[%c0_21, %c0_22] : memref<256x784xbf16, #tpu.memory_space<vmem>>, vector<256x784xbf16>
    %cst_23 = arith.constant dense<0.000000e+00> : vector<128x784xf32>
    %31 = tpu.matmul %29, %30, %cst_23 {dimension_numbers = #tpu.dot_dimension_numbers<[1], [0], [0], [1], [0, 0, 1, 1], [], []>} : vector<128x256xbf16>, vector<256x784xbf16>, vector<128x784xf32> -> vector<128x784xf32>
    %c0_24 = arith.constant 0 : index
    %c0_25 = arith.constant 0 : index
    %32 = vector.load %arg10[%c0_24, %c0_25] : memref<1x784xf32, #tpu.memory_space<vmem>>, vector<1x784xf32>
    %33 = vector.broadcast %32 : vector<1x784xf32> to vector<128x784xf32>
    %34 = arith.addf %31, %33 : vector<128x784xf32>
    %cst_26 = arith.constant 5.000000e-01 : f32
    %35 = vector.broadcast %cst_26 : f32 to vector<128x784xf32>
    %36 = arith.mulf %35, %34 : vector<128x784xf32>
    %37 = math.tanh %36 : vector<128x784xf32>
    %cst_27 = arith.constant 5.000000e-01 : f32
    %38 = vector.broadcast %cst_27 : f32 to vector<128x784xf32>
    %39 = arith.mulf %38, %37 : vector<128x784xf32>
    %cst_28 = arith.constant 5.000000e-01 : f32
    %40 = vector.broadcast %cst_28 : f32 to vector<128x784xf32>
    %41 = arith.addf %39, %40 : vector<128x784xf32>
    %42 = arith.truncf %41 : vector<128x784xf32> to vector<128x784xbf16>
    %c0_29 = arith.constant 0 : index
    %c0_30 = arith.constant 0 : index
    %43 = vector.load %arg11[%c0_29, %c0_30] : memref<128x784xbf16, #tpu.memory_space<vmem>>, vector<128x784xbf16>
    tpu.vector_store %arg11[%c0_29, %c0_30], %42 {strides = array<i32>} : memref<128x784xbf16, #tpu.memory_space<vmem>>, vector<128x784xbf16>,
    return
  }
  func.func @transform_0(%arg0: i32) -> (i32, i32) {
    %c0_i32 = arith.constant 0 : i32
    %c0_i32_0 = arith.constant 0 : i32
    return %arg0, %c0_i32 : i32, i32
  }
  func.func @transform_1(%arg0: i32) -> (i32, i32) {
    %c0_i32 = arith.constant 0 : i32
    %c0_i32_0 = arith.constant 0 : i32
    return %arg0, %c0_i32 : i32, i32
  }
  func.func @transform_2(%arg0: i32) -> (i32, i32) {
    %c0_i32 = arith.constant 0 : i32
    %c0_i32_0 = arith.constant 0 : i32
    %c0_i32_1 = arith.constant 0 : i32
    return %c0_i32, %c0_i32_0 : i32, i32
  }
  func.func @transform_3(%arg0: i32) -> (i32, i32) {
    %c0_i32 = arith.constant 0 : i32
    %c0_i32_0 = arith.constant 0 : i32
    %c0_i32_1 = arith.constant 0 : i32
    return %c0_i32, %c0_i32_0 : i32, i32
  }
  func.func @transform_4(%arg0: i32) -> (i32, i32) {
    %c0_i32 = arith.constant 0 : i32
    %c0_i32_0 = arith.constant 0 : i32
    %c0_i32_1 = arith.constant 0 : i32
    return %c0_i32, %c0_i32_0 : i32, i32
  }
  func.func @transform_5(%arg0: i32) -> (i32, i32) {
    %c0_i32 = arith.constant 0 : i32
    %c0_i32_0 = arith.constant 0 : i32
    %c0_i32_1 = arith.constant 0 : i32
    return %c0_i32, %c0_i32_0 : i32, i32
  }
  func.func @transform_6(%arg0: i32) -> (i32, i32) {
    %c0_i32 = arith.constant 0 : i32
    %c0_i32_0 = arith.constant 0 : i32
    %c0_i32_1 = arith.constant 0 : i32
    return %c0_i32, %c0_i32_0 : i32, i32
  }
  func.func @transform_7(%arg0: i32) -> (i32, i32) {
    %c0_i32 = arith.constant 0 : i32
    %c0_i32_0 = arith.constant 0 : i32
    %c0_i32_1 = arith.constant 0 : i32
    return %c0_i32, %c0_i32_0 : i32, i32
  }
  func.func @transform_8(%arg0: i32) -> (i32, i32) {
    %c0_i32 = arith.constant 0 : i32
    %c0_i32_0 = arith.constant 0 : i32
    %c0_i32_1 = arith.constant 0 : i32
    return %c0_i32, %c0_i32_0 : i32, i32
  }
  func.func @transform_9(%arg0: i32) -> (i32, i32) {
    %c0_i32 = arith.constant 0 : i32
    %c0_i32_0 = arith.constant 0 : i32
    %c0_i32_1 = arith.constant 0 : i32
    return %c0_i32, %c0_i32_0 : i32, i32
  }
  func.func @transform_10(%arg0: i32) -> (i32, i32) {
    %c0_i32 = arith.constant 0 : i32
    %c0_i32_0 = arith.constant 0 : i32
    return %arg0, %c0_i32 : i32, i32
  }
  func.func @transform_11(%arg0: i32) -> (i32, i32) {
    %c0_i32 = arith.constant 0 : i32
    %c0_i32_0 = arith.constant 0 : i32
    return %arg0, %c0_i32 : i32, i32
  }
}

</mosaic_0001>

<bundles_post_ra>
// kernel: vae_forward.1
= control target key start
LH: loop header
LB: loop body
LE: loop exit
PB: predicated region body
PF: predicated region fallthrough
CT: control target
= control target key end

     0   :  { %s6416_s17 = smov 0   ;;  %s9091_s0 = inlined_call_operand.vmem [shape: f32[512,784], index: 0, kind: input, shape index: {}]   ;;  %s9092_s1 = inlined_call_operand.vmem [shape: f32[512,128], index: 1, kind: input, shape index: {}]   ;;  %s9093_s2 = inlined_call_operand.vmem [shape: bf16[784,256], index: 2, kind: input, shape index: {}]   ;;  %s9094_s3 = inlined_call_operand.vmem [shape: f32[1,256], index: 3, kind: input, shape index: {}]   ;;  %s9095_s4 = inlined_call_operand.vmem [shape: bf16[256,256], index: 4, kind: input, shape index: {}]   ;;  %s9096_s5 = inlined_call_operand.vmem [shape: f32[1,256], index: 5, kind: input, shape index: {}]   ;;  %s9097_s6 = inlined_call_operand.vmem [shape: bf16[128,256], index: 6, kind: input, shape index: {}]   ;;  %s9098_s7 = inlined_call_operand.vmem [shape: f32[1,256], index: 7, kind: input, shape index: {}]   ;;  %s9099_s8 = inlined_call_operand.vmem [shape: bf16[256,784], index: 8, kind: input, shape index: {}]   ;;  %s9100_s9 = inlined_call_operand.vmem [shape: f32[1,784], index: 9, kind: input, shape index: {}]   ;;  %s9101_s10 = inlined_call_operand.vmem [shape: bf16[512,784], index: 10, kind: output, shape index: {0}]   ;;  %s9102_s11 = inlined_call_operand.vmem [shape: f32[512,256], index: 11, kind: output, shape index: {1}]  }
   0x1 LB: > { %s4774_s18 = sadd.s32 4294967295, %s6354_s17   ;;  %p4778_p0 = scmp.ge.s32.totalorder %s6354_s17, 1  ;;  %s6354_s17 = sphi %s6416_s17, %s22_s17  }
   0x2   : > { %p353_p1 = scmp.lt.s32.totalorder %s6354_s17, 5 }
   0x4   : > { %p354_p2 = pnand %p4778_p0, %p353_p1 }
   0x6   : > { %357 = sbr.rel (%p354_p2) target bundleno = 1461 (0x5b5), region = 60 }
   0xb   : > { %v4846_v0 = vld [vmem:[%s9093_s2 + $0x70] sm:$0xf]  ;;  %v5854_v1 = vld [vmem:[%s9093_s2 + $0x74] sm:$0xf0]  ;;  %v4838_v5 = vld [vmem:[%s9093_s2 + $0x60] sm:$0xf] }
   0xc   : > { %v4910_v2 = vld [vmem:[%s9093_s2 + $0xf0] sm:$0xf]  ;;  %v4847_v3 = vor.u32 %v5854_v1, %v4846_v0  ;;  %v5870_v4 = vld [vmem:[%s9093_s2 + $0xf4] sm:$0xf0]  ;;  %v5852_v6 = vld [vmem:[%s9093_s2 + $0x64] sm:$0xf0] }
   0xd   : > { %v4911_v7 = vor.u32 %v5870_v4, %v4910_v2  ;;  %v4902_v8 = vld [vmem:[%s9093_s2 + $0xe0] sm:$0xf]  ;;  %v5868_v9 = vld [vmem:[%s9093_s2 + $0xe4] sm:$0xf0]  ;;  %v4839_v10 = vor.u32 %v5852_v6, %v4838_v5  ;;  %v4830_v12 = vld [vmem:[%s9093_s2 + $0x50] sm:$0xf] }
   0xe   : > { %1221 = vmatpush.bf16.msra.mxu0 %v4847_v3  ;;  %6097 = vmatpush.bf16.msra.mxu2 %v4847_v3  ;;  %v4903_v11 = vor.u32 %v5868_v9, %v4902_v8  ;;  %v5850_v13 = vld [vmem:[%s9093_s2 + $0x54] sm:$0xf0]  ;;  %v4894_v14 = vld [vmem:[%s9093_s2 + $0xd0] sm:$0xf]  ;;  %v4822_v18 = vld [vmem:[%s9093_s2 + $0x40] sm:$0xf] }
   0xf   : > { %6105 = vmatpush.bf16.msra.mxu3 %v4911_v7  ;;  %1270 = vmatpush.bf16.msra.mxu1 %v4911_v7  ;;  %v5866_v15 = vld [vmem:[%s9093_s2 + $0xd4] sm:$0xf0]  ;;  %v4831_v16 = vor.u32 %v5850_v13, %v4830_v12  ;;  %v5848_v19 = vld [vmem:[%s9093_s2 + $0x44] sm:$0xf0]  ;;  %v4886_v20 = vld [vmem:[%s9093_s2 + $0xc0] sm:$0xf] }
  0x10   : > { %v4895_v17 = vor.u32 %v5866_v15, %v4894_v14  ;;  %v5864_v21 = vld [vmem:[%s9093_s2 + $0xc4] sm:$0xf0]  ;;  %s4779_s15 = sshll.u32 %s4774_s18, 4  ;;  %v4823_v22 = vor.u32 %v5848_v19, %v4822_v18  ;;  %v4814_v24 = vld [vmem:[%s9093_s2 + $0x30] sm:$0xf]  ;;  %vm1196_vm0 = vcmask 130048  }
  0x11   : > { %p407_p3 = scmp.lt.s32.totalorder %s4779_s15, 63  ;;  %v4887_v23 = vor.u32 %v5864_v21, %v4886_v20  ;;  %v5846_v25 = vld [vmem:[%s9093_s2 + $0x34] sm:$0xf0]  ;;  %v4878_v26 = vld [vmem:[%s9093_s2 + $0xb0] sm:$0xf]  ;;  %vm4606_vm1 = vcmask 125952  }
  0x12   : > { %1222 = vmatpush.bf16.msra.mxu0 %v4839_v10  ;;  %6098 = vmatpush.bf16.msra.mxu2 %v4839_v10  ;;  %v5862_v27 = vld [vmem:[%s9093_s2 + $0xb4] sm:$0xf0]  ;;  %v4815_v28 = vor.u32 %v5846_v25, %v4814_v24  ;;  %v4806_v30 = vld [vmem:[%s9093_s2 + $0x20] sm:$0xf]  ;;  %v5844_v31 = vld [vmem:[%s9093_s2 + $0x24] sm:$0xf0] }
  0x13   : > { %6106 = vmatpush.bf16.msra.mxu3 %v4903_v11  ;;  %1271 = vmatpush.bf16.msra.mxu1 %v4903_v11  ;;  %s9152_s15 = smov (!%p407_p3, %s4779_s15), 63  ;;  %v4879_v29 = vor.u32 %v5862_v27, %v4878_v26  ;;  %v4870_v32 = vld [vmem:[%s9093_s2 + $0xa0] sm:$0xf]  ;;  %v5860_v33 = vld [vmem:[%s9093_s2 + $0xa4] sm:$0xf0]  ;;  %v4807_v34 = vor.u32 %v5844_v31, %v4806_v30 }
  0x14   : > { %s6113_s14 = smul.u32 56, %s9152_s15  ;;  %v4871_v35 = vor.u32 %v5860_v33, %v4870_v32  ;;  %v4798_v36 = vld [vmem:[%s9093_s2 + $0x10] sm:$0xf]  ;;  %v5842_v37 = vld [vmem:[%s9093_s2 + $0x14] sm:$0xf0]  ;;  %s4782_s18 = sshll.u32 %s9152_s15, 3 }
  0x15   : > { %v4862_v38 = vld [vmem:[%s9093_s2 + $0x90] sm:$0xf]  ;;  %v5858_v39 = vld [vmem:[%s9093_s2 + $0x94] sm:$0xf0]  ;;  %v4799_v40 = vor.u32 %v5842_v37, %v4798_v36  ;;  %v4790_v41 = vld [vmem:[%s9093_s2] sm:$0xf]  ;;  %s7926_s26 = scalar_lea.vmem %s9092_s1, %s4782_s18 }
  0x16   : > { %1223 = vmatpush.bf16.msra.mxu0 %v4831_v16  ;;  %6099 = vmatpush.bf16.msra.mxu2 %v4831_v16  ;;  %s6519_s29 = scalar_lea.vmem %s9091_s0, %s6113_s14  ;;  %v4863_v42 = vor.u32 %v5858_v39, %v4862_v38  ;;  %v5840_v43 = vld [vmem:[%s9093_s2 + $0x4] sm:$0xf0]  ;;  %v4854_v44 = vld [vmem:[%s9093_s2 + $0x80] sm:$0xf]  ;;  %v4974_v46 = vld [vmem:[%s9093_s2 + $0x170] sm:$0xf] }
  0x17   : > { %6107 = vmatpush.bf16.msra.mxu3 %v4895_v17  ;;  %1272 = vmatpush.bf16.msra.mxu1 %v4895_v17  ;;  %v5856_v45 = vld [vmem:[%s9093_s2 + $0x84] sm:$0xf0]  ;;  %v5886_v47 = vld [vmem:[%s9093_s2 + $0x174] sm:$0xf0]  ;;  %v5038_v48 = vld [vmem:[%s9093_s2 + $0x1f0] sm:$0xf]  ;;  %v4791_v52 = vor.u32 %v5840_v43, %v4790_v41 }
  0x18   : > { %v434_v49 = vld [vmem:[%s6519_s29] sm:$0xff]  ;;  %v5902_v50 = vld [vmem:[%s9093_s2 + $0x1f4] sm:$0xf0]  ;;  %v5102_v51 = vld [vmem:[%s9093_s2 + $0x270] sm:$0xf]  ;;  %v4855_v58 = vor.u32 %v5856_v45, %v4854_v44  ;;  %v4975_v61 = vor.u32 %v5886_v47, %v4974_v46  ;;  %s5838_s14 = sshll.u32 %s9152_s15, 4 }
  0x19   : > { %v441_v53 = vld [vmem:[%s6519_s29 + $0x38] sm:$0xff]  ;;  %v490_v54 = vld [vmem:[%s6519_s29 + $0x1c0] sm:$0xff]  ;;  %v5884_v57 = vld [vmem:[%s9093_s2 + $0x164] sm:$0xf0]  ;;  %v5039_v63 = vor.u32 %v5902_v50, %v5038_v48  ;;  %s7915_s23 = scalar_lea.vmem %s9102_s11, %s5838_s14  ;;  %s6114_s19 = smul.u32 28, %s9152_s15 }
  0x1a   : > { %1224 = vmatpush.bf16.msra.mxu0 %v4823_v22  ;;  %6100 = vmatpush.bf16.msra.mxu2 %v4823_v22  ;;  %v497_v55 = vld [vmem:[%s6519_s29 + $0x1f8] sm:$0xff]  ;;  %v4966_v56 = vld [vmem:[%s9093_s2 + $0x160] sm:$0xf]  ;;  %v491_v59 = vld [vmem:[%s6519_s29 + $0x1c8] sm:$0xff]  ;;  %v6565_v3 = vpack.c.bf16 %v441_v53, %v434_v49 }
  0x1b   : > { %6108 = vmatpush.bf16.msra.mxu3 %v4887_v23  ;;  %1273 = vmatpush.bf16.msra.mxu1 %v4887_v23  ;;  %v498_v60 = vld [vmem:[%s6519_s29 + $0x200] sm:$0xff]  ;;  %v5918_v62 = vld [vmem:[%s9093_s2 + $0x274] sm:$0xf0]  ;;  %v435_v0 = vld [vmem:[%s6519_s29 + $0x8] sm:$0xff]  ;;  %v6567_v4 = vpack.c.bf16 %v497_v55, %v490_v54  ;;  %v4967_v11 = vor.u32 %v5884_v57, %v4966_v56 }
  0x1c   : > { %v442_v1 = vld [vmem:[%s6519_s29 + $0x40] sm:$0xff]  ;;  %v5900_v5 = vld [vmem:[%s9093_s2 + $0x1e4] sm:$0xf0]  ;;  %v5166_v6 = vld [vmem:[%s9093_s2 + $0x2f0] sm:$0xf]  ;;  %v6578_v8 = vpack.c.bf16 %v498_v60, %v491_v59  ;;  %v5103_v9 = vor.u32 %v5918_v62, %v5102_v51 }
  0x1d   : > { %v5030_v2 = vld [vmem:[%s9093_s2 + $0x1e0] sm:$0xf]  ;;  %v5934_v7 = vld [vmem:[%s9093_s2 + $0x2f4] sm:$0xf0]  ;;  %v6580_v10 = vpack.c.bf16 %v442_v1, %v435_v0  ;;  %v5916_v13 = vld [vmem:[%s9093_s2 + $0x264] sm:$0xf0] }
  0x1e   : > { %1225 = vmatpush.bf16.msra.mxu0 %v4815_v28  ;;  %6101 = vmatpush.bf16.msra.mxu2 %v4815_v28  ;;  %v5094_v12 = vld [vmem:[%s9093_s2 + $0x260] sm:$0xf]  ;;  %v5031_v14 = vor.u32 %v5900_v5, %v5030_v2  ;;  %v5167_v15 = vor.u32 %v5934_v7, %v5166_v6  ;;  %v4958_v16 = vld [vmem:[%s9093_s2 + $0x150] sm:$0xf]  ;;  %v5882_v17 = vld [vmem:[%s9093_s2 + $0x154] sm:$0xf0] }
  0x1f   : > { %6109 = vmatpush.bf16.msra.mxu3 %v4879_v29  ;;  %1274 = vmatpush.bf16.msra.mxu1 %v4879_v29  ;;  %v5022_v18 = vld [vmem:[%s9093_s2 + $0x1d0] sm:$0xf]  ;;  %v5898_v19 = vld [vmem:[%s9093_s2 + $0x1d4] sm:$0xf0]  ;;  %v5158_v20 = vld [vmem:[%s9093_s2 + $0x2e0] sm:$0xf]  ;;  %v5095_v22 = vor.u32 %v5916_v13, %v5094_v12  ;;  %v4959_v23 = vor.u32 %v5882_v17, %v4958_v16 }
  0x20   : > { %v5932_v21 = vld [vmem:[%s9093_s2 + $0x2e4] sm:$0xf0]  ;;  %v5086_v24 = vld [vmem:[%s9093_s2 + $0x250] sm:$0xf]  ;;  %v5914_v25 = vld [vmem:[%s9093_s2 + $0x254] sm:$0xf0]  ;;  %v5023_v26 = vor.u32 %v5898_v19, %v5022_v18 }
  0x21   : > { %v5159_v27 = vor.u32 %v5932_v21, %v5158_v20  ;;  %v4950_v28 = vld [vmem:[%s9093_s2 + $0x140] sm:$0xf]  ;;  %v5880_v29 = vld [vmem:[%s9093_s2 + $0x144] sm:$0xf0]  ;;  %v5150_v32 = vld [vmem:[%s9093_s2 + $0x2d0] sm:$0xf] }
  0x22   : > { %1226 = vmatpush.bf16.msra.mxu0 %v4807_v34  ;;  %6102 = vmatpush.bf16.msra.mxu2 %v4807_v34  ;;  %v5014_v30 = vld [vmem:[%s9093_s2 + $0x1c0] sm:$0xf]  ;;  %v5896_v31 = vld [vmem:[%s9093_s2 + $0x1c4] sm:$0xf0]  ;;  %v5930_v33 = vld [vmem:[%s9093_s2 + $0x2d4] sm:$0xf0]  ;;  %v5087_v34 = vor.u32 %v5914_v25, %v5086_v24 }
  0x23   : > { %6110 = vmatpush.bf16.msra.mxu3 %v4871_v35  ;;  %1275 = vmatpush.bf16.msra.mxu1 %v4871_v35  ;;  %v4951_v35 = vor.u32 %v5880_v29, %v4950_v28  ;;  %v5078_v36 = vld [vmem:[%s9093_s2 + $0x240] sm:$0xf]  ;;  %v5912_v37 = vld [vmem:[%s9093_s2 + $0x244] sm:$0xf0]  ;;  %v448_v38 = vld [vmem:[%s6519_s29 + $0x70] sm:$0xff]  ;;  %v5151_v43 = vor.u32 %v5930_v33, %v5150_v32 }
  0x24   : > { %v455_v39 = vld [vmem:[%s6519_s29 + $0xa8] sm:$0xff]  ;;  %v4942_v44 = vld [vmem:[%s9093_s2 + $0x130] sm:$0xf]  ;;  %v5878_v45 = vld [vmem:[%s9093_s2 + $0x134] sm:$0xf0]  ;;  %v5079_v53 = vor.u32 %v5912_v37, %v5078_v36 }
  0x25   : > { %v511_v41 = vld [vmem:[%s6519_s29 + $0x268] sm:$0xff]  ;;  %v5006_v46 = vld [vmem:[%s9093_s2 + $0x1b0] sm:$0xf]  ;;  %v5894_v47 = vld [vmem:[%s9093_s2 + $0x1b4] sm:$0xf0]  ;;  %v4943_v55 = vor.u32 %v5878_v45, %v4942_v44 }
  0x26   : > { %1227 = vmatpush.bf16.msra.mxu0 %v4799_v40  ;;  %6103 = vmatpush.bf16.msra.mxu2 %v4799_v40  ;;  %v504_v40 = vld [vmem:[%s6519_s29 + $0x230] sm:$0xff]  ;;  %v5142_v48 = vld [vmem:[%s9093_s2 + $0x2c0] sm:$0xf]  ;;  %v5928_v49 = vld [vmem:[%s9093_s2 + $0x2c4] sm:$0xf0] }
  0x27   : > { %6111 = vmatpush.bf16.msra.mxu3 %v4863_v42  ;;  %1276 = vmatpush.bf16.msra.mxu1 %v4863_v42  ;;  %v5015_v42 = vor.u32 %v5896_v31, %v5014_v30  ;;  %v505_v50 = vld [vmem:[%s6519_s29 + $0x238] sm:$0xff]  ;;  %v512_v51 = vld [vmem:[%s6519_s29 + $0x270] sm:$0xff]  ;;  %v5143_v59 = vor.u32 %v5928_v49, %v5142_v48  ;;  %v4934_v60 = vld [vmem:[%s9093_s2 + $0x120] sm:$0xf]  ;;  %v6683_v0 = vpack.c.bf16 %v511_v41, %v504_v40 }
  0x28   : > { %v456_v54 = vld [vmem:[%s6519_s29 + $0xb0] sm:$0xff]  ;;  %v5910_v57 = vld [vmem:[%s9093_s2 + $0x234] sm:$0xf0]  ;;  %v4998_v62 = vld [vmem:[%s9093_s2 + $0x1a0] sm:$0xf]  ;;  %v6694_v6 = vpack.c.bf16 %v512_v51, %v505_v50 }
  0x29   : > { %v5070_v56 = vld [vmem:[%s9093_s2 + $0x230] sm:$0xf]  ;;  %v5892_v1 = vld [vmem:[%s9093_s2 + $0x1a4] sm:$0xf0]  ;;  %v5926_v5 = vld [vmem:[%s9093_s2 + $0x2b4] sm:$0xf0] }
  0x2a   : > { %1228 = vmatpush.bf16.msra.mxu0 %v4791_v52  ;;  %6104 = vmatpush.bf16.msra.mxu2 %v4791_v52  ;;  %v449_v52 = vld [vmem:[%s6519_s29 + $0x78] sm:$0xff]  ;;  %v5134_v2 = vld [vmem:[%s9093_s2 + $0x2b0] sm:$0xf]  ;;  %v5071_v7 = vor.u32 %v5910_v57, %v5070_v56  ;;  %v4999_v12 = vor.u32 %v5892_v1, %v4998_v62  ;;  %v5062_v19 = vld [vmem:[%s9093_s2 + $0x220] sm:$0xf] }
  0x2b   : > { %6112 = vmatpush.bf16.msra.mxu3 %v4855_v58  ;;  %1277 = vmatpush.bf16.msra.mxu1 %v4855_v58  ;;  %v5007_v58 = vor.u32 %v5894_v47, %v5006_v46  ;;  %v5135_v13 = vor.u32 %v5926_v5, %v5134_v2  ;;  %v4990_v16 = vld [vmem:[%s9093_s2 + $0x190] sm:$0xf]  ;;  %v5890_v18 = vld [vmem:[%s9093_s2 + $0x194] sm:$0xf0]  ;;  %v5908_v20 = vld [vmem:[%s9093_s2 + $0x224] sm:$0xf0] }
  0x2c   : > { %v4991_v21 = vor.u32 %v5890_v18, %v4990_v16  ;;  %v5924_v24 = vld [vmem:[%s9093_s2 + $0x2a4] sm:$0xf0]  ;;  %v4918_v25 = vld [vmem:[%s9093_s2 + $0x100] sm:$0xf]  ;;  %v5054_v28 = vld [vmem:[%s9093_s2 + $0x210] sm:$0xf] }
  0x2d   : > { %1229 = vmatmul.bf16.vlgmr.msra.gmra.mxu0 %v6565_v3  ;;  %1249 = vmatmul.bf16.vlgmr.msra.gmra.mxu2 %v6567_v4  ;;  %v5906_v29 = vld [vmem:[%s9093_s2 + $0x214] sm:$0xf0]  ;;  %v4982_v30 = vld [vmem:[%s9093_s2 + $0x180] sm:$0xf]  ;;  %v5888_v33 = vld [vmem:[%s9093_s2 + $0x184] sm:$0xf0] }
  0x2e   : > { %1319 = vmatpush.bf16.msrb.mxu2 %v4975_v61  ;;  %1298 = vmatmul.bf16.vlgmr.msra.gmra.mxu3 %v6578_v8  ;;  %v5876_v61 = vld [vmem:[%s9093_s2 + $0x124] sm:$0xf0]  ;;  %v5055_v32 = vor.u32 %v5906_v29, %v5054_v28  ;;  %v4983_v36 = vor.u32 %v5888_v33, %v4982_v30  ;;  %v462_v40 = vld [vmem:[%s6519_s29 + $0xe0] sm:$0xff]  ;;  %v469_v41 = vld [vmem:[%s6519_s29 + $0x118] sm:$0xff] }
  0x2f   : > { %1368 = vmatpush.bf16.msrb.mxu3 %v5039_v63  ;;  %1417 = vmatpush.bf16.msrb.mxu0 %v5103_v9  ;;  %v6681_v63 = vpack.c.bf16 %v455_v39, %v448_v38  ;;  %v6696_v9 = vpack.c.bf16 %v456_v54, %v449_v52  ;;  %v5046_v38 = vld [vmem:[%s9093_s2 + $0x200] sm:$0xf]  ;;  %v5904_v39 = vld [vmem:[%s9093_s2 + $0x204] sm:$0xf0]  ;;  %v6764_v49 = vpack.c.bf16 %v469_v41, %v462_v40  ;;  %v5869_v62 = vld [vmem:[%s9093_s2 + $0xf4] sm:$0xf] }
  0x30   : > { %1278 = vmatmul.bf16.vlgmr.msra.gmra.mxu1 %v6580_v10  ;;  %v5047_v44 = vor.u32 %v5904_v39, %v5046_v38  ;;  %v519_v45 = vld [vmem:[%s6519_s29 + $0x2a8] sm:$0xff]  ;;  %v526_v46 = vld [vmem:[%s6519_s29 + $0x2e0] sm:$0xff]  ;;  %v4912_v1 = vld [vmem:[%s9093_s2 + $0xf8] sm:$0xf0] }
  0x31   : > { %1466 = vmatpush.bf16.msrb.mxu1 %v5167_v15  ;;  %v5874_v15 = vld [vmem:[%s9093_s2 + $0x114] sm:$0xf0]  ;;  %v463_v47 = vld [vmem:[%s6519_s29 + $0xe8] sm:$0xff]  ;;  %v470_v48 = vld [vmem:[%s6519_s29 + $0x120] sm:$0xff]  ;;  %v6768_v51 = vpack.c.bf16 %v526_v46, %v519_v45  ;;  %v4915_v5 = vor.u32 %v5869_v62, %v4912_v1 }
  0x32   : > { %1320 = vmatpush.bf16.msrb.mxu2 %v4967_v11  ;;  %v4935_v11 = vor.u32 %v5876_v61, %v4934_v60  ;;  %v6770_v52 = vpack.c.bf16 %v470_v48, %v463_v47  ;;  %v5920_v54 = vld [vmem:[%s9093_s2 + $0x284] sm:$0xf0]  ;;  %v5174_v56 = vld [vmem:[%s9093_s2 + $0x300] sm:$0xf]  ;;  %v4848_v60 = vld [vmem:[%s9093_s2 + $0x78] sm:$0xf0] }
  0x33   : > { %1369 = vmatpush.bf16.msrb.mxu3 %v5031_v14  ;;  %1418 = vmatpush.bf16.msrb.mxu0 %v5095_v22  ;;  %v4926_v14 = vld [vmem:[%s9093_s2 + $0x110] sm:$0xf]  ;;  %v5063_v22 = vor.u32 %v5908_v20, %v5062_v19  ;;  %v5936_v57 = vld [vmem:[%s9093_s2 + $0x304] sm:$0xf0]  ;;  %v5885_v2 = vld [vmem:[%s9093_s2 + $0x174] sm:$0xf] }
  0x34   : > { %v4927_v17 = vor.u32 %v5874_v15, %v4926_v14  ;;  %v532_v14 = vld [vmem:[%s6519_s29 + $0x310] sm:$0xff]  ;;  %v539_v15 = vld [vmem:[%s6519_s29 + $0x348] sm:$0xff]  ;;  %v533_v16 = vld [vmem:[%s6519_s29 + $0x318] sm:$0xff] }
  0x35   : > { %1467 = vmatpush.bf16.msrb.mxu1 %v5159_v27  ;;  %v477_v18 = vld [vmem:[%s6519_s29 + $0x158] sm:$0xff]  ;;  %v484_v19 = vld [vmem:[%s6519_s29 + $0x190] sm:$0xff]  ;;  %v4904_v28 = vld [vmem:[%s9093_s2 + $0xe8] sm:$0xf0] }
  0x36   : > { %1321 = vmatpush.bf16.msrb.mxu2 %v4959_v23  ;;  %v5126_v23 = vld [vmem:[%s9093_s2 + $0x2a0] sm:$0xf]  ;;  %v5883_v30 = vld [vmem:[%s9093_s2 + $0x164] sm:$0xf]  ;;  %v436_v33 = vld [vmem:[%s6519_s29 + $0x10] sm:$0xff] }
  0x37   : > { %1370 = vmatpush.bf16.msrb.mxu3 %v5023_v26  ;;  %1419 = vmatpush.bf16.msrb.mxu0 %v5087_v34  ;;  %v5872_v26 = vld [vmem:[%s9093_s2 + $0x104] sm:$0xf0]  ;;  %v5127_v27 = vor.u32 %v5924_v24, %v5126_v23  ;;  %v5118_v34 = vld [vmem:[%s9093_s2 + $0x290] sm:$0xf]  ;;  %v6820_v23 = vpack.c.bf16 %v484_v19, %v477_v18  ;;  %v5851_v24 = vld [vmem:[%s9093_s2 + $0x64] sm:$0xf] }
  0x38   : > { %v4919_v31 = vor.u32 %v5872_v26, %v4918_v25  ;;  %v4840_v25 = vld [vmem:[%s9093_s2 + $0x68] sm:$0xf0]  ;;  %v444_v38 = vld [vmem:[%s6519_s29 + $0x50] sm:$0xff]  ;;  %v446_v40 = vld [vmem:[%s6519_s29 + $0x60] sm:$0xff] }
  0x39   : > { %1468 = vmatpush.bf16.msrb.mxu1 %v5151_v43  ;;  %v525_v43 = vld [vmem:[%s6519_s29 + $0x2d8] sm:$0xff]  ;;  %v4843_v26 = vor.u32 %v5851_v24, %v4840_v25  ;;  %v439_v39 = vld [vmem:[%s6519_s29 + $0x28] sm:$0xff]  ;;  %v5849_v45 = vld [vmem:[%s9093_s2 + $0x54] sm:$0xf] }
  0x3a   : > { %1322 = vmatpush.bf16.msrb.mxu2 %v4951_v35  ;;  %v5922_v35 = vld [vmem:[%s9093_s2 + $0x294] sm:$0xf0]  ;;  %v4832_v46 = vld [vmem:[%s9093_s2 + $0x58] sm:$0xf0]  ;;  %v5865_v48 = vld [vmem:[%s9093_s2 + $0xd4] sm:$0xf] }
  0x3b   : > { %1371 = vmatpush.bf16.msrb.mxu3 %v5015_v42  ;;  %1420 = vmatpush.bf16.msrb.mxu0 %v5079_v53  ;;  %v5119_v37 = vor.u32 %v5922_v35, %v5118_v34  ;;  %v518_v42 = vld [vmem:[%s6519_s29 + $0x2a0] sm:$0xff]  ;;  %v443_v34 = vld [vmem:[%s6519_s29 + $0x48] sm:$0xff]  ;;  %v4835_v47 = vor.u32 %v5849_v45, %v4832_v46 }
  0x3c   : > { %v6766_v50 = vpack.c.bf16 %v525_v43, %v518_v42  ;;  %v5110_v53 = vld [vmem:[%s9093_s2 + $0x280] sm:$0xf]  ;;  %v6852_v41 = vpack.c.bf16 %v443_v34, %v436_v33  ;;  %v451_v62 = vld [vmem:[%s6519_s29 + $0x88] sm:$0xff]  ;;  %v5879_v24 = vld [vmem:[%s9093_s2 + $0x144] sm:$0xf] }
  0x3d   : > { %1469 = vmatpush.bf16.msrb.mxu1 %v5143_v59  ;;  %1234 = vmatmul.bf16.gmra.mxu0 %v6681_v63  ;;  %v5175_v59 = vor.u32 %v5936_v57, %v5174_v56  ;;  %v438_v35 = vld [vmem:[%s6519_s29 + $0x20] sm:$0xff]  ;;  %v4960_v56 = vld [vmem:[%s9093_s2 + $0x158] sm:$0xf0]  ;;  %v4888_v18 = vld [vmem:[%s9093_s2 + $0xc8] sm:$0xf0] }
  0x3e   : > { %1323 = vmatpush.bf16.msrb.mxu2 %v4943_v55  ;;  %1303 = vmatmul.bf16.gmra.mxu3 %v6694_v6  ;;  %v5111_v55 = vor.u32 %v5920_v54, %v5110_v53  ;;  %v4896_v53 = vld [vmem:[%s9093_s2 + $0xd8] sm:$0xf0]  ;;  %v458_v1 = vld [vmem:[%s6519_s29 + $0xc0] sm:$0xff]  ;;  %v4952_v25 = vld [vmem:[%s9093_s2 + $0x148] sm:$0xf0] }
  0x3f   : > { %1372 = vmatpush.bf16.msrb.mxu3 %v5007_v58  ;;  %1254 = vmatmul.bf16.gmra.mxu2 %v6683_v0  ;;  %v5853_v58 = vld [vmem:[%s9093_s2 + $0x74] sm:$0xf]  ;;  %v4899_v54 = vor.u32 %v5865_v48, %v4896_v53  ;;  %v467_v33 = vld [vmem:[%s6519_s29 + $0x108] sm:$0xff]  ;;  %v474_v34 = vld [vmem:[%s6519_s29 + $0x140] sm:$0xff] }
  0x40   : > { %1421 = vmatpush.bf16.msrb.mxu0 %v5071_v7  ;;  %1283 = vmatmul.bf16.gmra.mxu1 %v6696_v9  ;;  %v4851_v61 = vor.u32 %v5853_v58, %v4848_v60  ;;  %v4976_v7 = vld [vmem:[%s9093_s2 + $0x178] sm:$0xf0]  ;;  %v450_v58 = vld [vmem:[%s6519_s29 + $0x80] sm:$0xff]  ;;  %v452_v60 = vld [vmem:[%s6519_s29 + $0x90] sm:$0xff] }
  0x41   : > { %1470 = vmatpush.bf16.msrb.mxu1 %v5135_v13  ;;  %v483_v13 = vld [vmem:[%s6519_s29 + $0x188] sm:$0xff]  ;;  %v478_v46 = vld [vmem:[%s6519_s29 + $0x160] sm:$0xff]  ;;  %v4880_v48 = vld [vmem:[%s9093_s2 + $0xb8] sm:$0xf0] }
  0x42   : > { %1324 = vmatpush.bf16.msrb.mxu2 %v4935_v11  ;;  %v4979_v11 = vor.u32 %v5885_v2, %v4976_v7  ;;  %v453_v2 = vld [vmem:[%s6519_s29 + $0x98] sm:$0xff] }
  0x43   : > { %1373 = vmatpush.bf16.msrb.mxu3 %v4999_v12  ;;  %v476_v12 = vld [vmem:[%s6519_s29 + $0x150] sm:$0xff]  ;;  %v485_v53 = vld [vmem:[%s6519_s29 + $0x198] sm:$0xff] }
  0x44   : > { %1422 = vmatpush.bf16.msrb.mxu0 %v5063_v22  ;;  %v6814_v20 = vpack.c.bf16 %v483_v13, %v476_v12  ;;  %v6894_v12 = vpack.c.bf16 %v458_v1, %v451_v62 }
  0x45   : > { %1471 = vmatpush.bf16.msrb.mxu1 %v5127_v27  ;;  %v5867_v27 = vld [vmem:[%s9093_s2 + $0xe4] sm:$0xf] }
  0x46   : > { %1325 = vmatpush.bf16.msrb.mxu2 %v4927_v17  ;;  %v540_v17 = vld [vmem:[%s6519_s29 + $0x350] sm:$0xff]  ;;  %v4907_v29 = vor.u32 %v5867_v27, %v4904_v28  ;;  %v471_v28 = vld [vmem:[%s6519_s29 + $0x128] sm:$0xff] }
  0x47   : > { %1374 = vmatpush.bf16.msrb.mxu3 %v4991_v21  ;;  %v6816_v21 = vpack.c.bf16 %v539_v15, %v532_v14  ;;  %v6818_v22 = vpack.c.bf16 %v540_v17, %v533_v16  ;;  %v5847_v14 = vld [vmem:[%s9093_s2 + $0x44] sm:$0xf]  ;;  %v4824_v15 = vld [vmem:[%s9093_s2 + $0x48] sm:$0xf0]  ;;  %v464_v27 = vld [vmem:[%s6519_s29 + $0xf0] sm:$0xff] }
  0x48   : > { %1423 = vmatpush.bf16.msrb.mxu0 %v5055_v32  ;;  %v4827_v16 = vor.u32 %v5847_v14, %v4824_v15  ;;  %v5863_v17 = vld [vmem:[%s9093_s2 + $0xc4] sm:$0xf]  ;;  %v4944_v14 = vld [vmem:[%s9093_s2 + $0x138] sm:$0xf0] }
  0x49   : > { %1472 = vmatpush.bf16.msrb.mxu1 %v5119_v37  ;;  %v437_v37 = vld [vmem:[%s6519_s29 + $0x18] sm:$0xff]  ;;  %v4891_v19 = vor.u32 %v5863_v17, %v4888_v18  ;;  %v4808_v17 = vld [vmem:[%s9093_s2 + $0x28] sm:$0xf0] }
  0x4a   : > { %1326 = vmatpush.bf16.msrb.mxu2 %v4919_v31  ;;  %v4968_v31 = vld [vmem:[%s9093_s2 + $0x168] sm:$0xf0]  ;;  %v6856_v43 = vpack.c.bf16 %v444_v38, %v437_v37  ;;  %v6934_v38 = vpack.c.bf16 %v474_v34, %v467_v33  ;;  %v502_v34 = vld [vmem:[%s6519_s29 + $0x220] sm:$0xff] }
  0x4b   : > { %1375 = vmatpush.bf16.msrb.mxu3 %v4983_v36  ;;  %v4971_v32 = vor.u32 %v5883_v30, %v4968_v31  ;;  %v445_v36 = vld [vmem:[%s6519_s29 + $0x58] sm:$0xff]  ;;  %v495_v33 = vld [vmem:[%s6519_s29 + $0x1e8] sm:$0xff] }
  0x4c   : > { %1424 = vmatpush.bf16.msrb.mxu0 %v5047_v44  ;;  %v6854_v42 = vpack.c.bf16 %v445_v36, %v438_v35  ;;  %v6858_v44 = vpack.c.bf16 %v446_v40, %v439_v39  ;;  %v473_v30 = vld [vmem:[%s6519_s29 + $0x138] sm:$0xff]  ;;  %v6928_v35 = vpack.c.bf16 %v471_v28, %v464_v27  ;;  %v5845_v39 = vld [vmem:[%s9093_s2 + $0x34] sm:$0xf]  ;;  %v499_v27 = vld [vmem:[%s6519_s29 + $0x208] sm:$0xff] }
  0x4d   : > { %1239 = vmatmul.bf16.gmra.mxu0 %v6764_v49  ;;  %1473 = vmatpush.bf16.msrb.mxu1 %v5111_v55  ;;  %v5881_v55 = vld [vmem:[%s9093_s2 + $0x154] sm:$0xf]  ;;  %v465_v31 = vld [vmem:[%s6519_s29 + $0xf8] sm:$0xff]  ;;  %v494_v28 = vld [vmem:[%s6519_s29 + $0x1e0] sm:$0xff] }
  0x4e   : > { %1308 = vmatmul.bf16.gmra.mxu3 %v6768_v51  ;;  %1522 = vmatpush.bf16.msra.mxu2 %v5175_v59  ;;  %v4963_v57 = vor.u32 %v5881_v55, %v4960_v56  ;;  %v457_v59 = vld [vmem:[%s6519_s29 + $0xb8] sm:$0xff]  ;;  %v487_v55 = vld [vmem:[%s6519_s29 + $0x1a8] sm:$0xff] }
  0x4f   : > { %1259 = vmatmul.bf16.gmra.mxu2 %v6766_v50  ;;  %1564 = vmatpush.bf16.msra.mxu3 %v4851_v61  ;;  %v459_v61 = vld [vmem:[%s6519_s29 + $0xc8] sm:$0xff]  ;;  %v6890_v7 = vpack.c.bf16 %v457_v59, %v450_v58  ;;  %v4816_v40 = vld [vmem:[%s9093_s2 + $0x38] sm:$0xf0]  ;;  %v486_v58 = vld [vmem:[%s6519_s29 + $0x1a0] sm:$0xff] }
  0x50   : > { %1288 = vmatmul.bf16.gmra.mxu1 %v6770_v52  ;;  %1613 = vmatpush.bf16.msra.mxu0 %v4915_v5  ;;  %v460_v5 = vld [vmem:[%s6519_s29 + $0xd0] sm:$0xff]  ;;  %v4819_v45 = vor.u32 %v5845_v39, %v4816_v40  ;;  %v481_v59 = vld [vmem:[%s6519_s29 + $0x178] sm:$0xff] }
  0x51   : > { %1662 = vmatpush.bf16.msra.mxu1 %v4979_v11  ;;  %v6892_v11 = vpack.c.bf16 %v459_v61, %v452_v60  ;;  %v6896_v13 = vpack.c.bf16 %v460_v5, %v453_v2  ;;  %v488_v60 = vld [vmem:[%s6519_s29 + $0x1b0] sm:$0xff]  ;;  %v6960_v61 = vpack.c.bf16 %v485_v53, %v478_v46  ;;  %v7013_v53 = vpack.c.bf16 %v502_v34, %v495_v33  ;;  %v507_v34 = vld [vmem:[%s6519_s29 + $0x248] sm:$0xff] }
  0x52   : > { %v6966_v2 = vpack.c.bf16 %v488_v60, %v481_v59  ;;  %v5877_v5 = vld [vmem:[%s9093_s2 + $0x134] sm:$0xf]  ;;  %v4800_v60 = vld [vmem:[%s9093_s2 + $0x18] sm:$0xf0] }
  0x53   : > { %1565 = vmatpush.bf16.msra.mxu3 %v4843_v26  ;;  %v4955_v26 = vor.u32 %v5879_v24, %v4952_v25  ;;  %v4947_v15 = vor.u32 %v5877_v5, %v4944_v14  ;;  %v492_v24 = vld [vmem:[%s6519_s29 + $0x1d0] sm:$0xff]  ;;  %v5859_v25 = vld [vmem:[%s9093_s2 + $0xa4] sm:$0xf]  ;;  %9125 = vst [vmem:[#allocation8_spill] sm:$0xff] %v7013_v53 }
  0x54   : > { %1614 = vmatpush.bf16.msra.mxu0 %v4907_v29  ;;  %v466_v29 = vld [vmem:[%s6519_s29 + $0x100] sm:$0xff]  ;;  %9122 = vst [vmem:[#allocation5_spill] sm:$0xff] %v6966_v2  ;;  %v7006_v40 = vpack.c.bf16 %v499_v27, %v492_v24  ;;  %v5841_v59 = vld [vmem:[%s9093_s2 + $0x14] sm:$0xf] }
  0x55   : > { %1663 = vmatpush.bf16.msra.mxu1 %v4971_v32  ;;  %v472_v32 = vld [vmem:[%s6519_s29 + $0x130] sm:$0xff]  ;;  %v6930_v36 = vpack.c.bf16 %v473_v30, %v466_v29  ;;  %v501_v29 = vld [vmem:[%s6519_s29 + $0x218] sm:$0xff]  ;;  %v4803_v5 = vor.u32 %v5841_v59, %v4800_v60  ;;  %v506_v27 = vld [vmem:[%s6519_s29 + $0x240] sm:$0xff] }
  0x56   : > { %v6932_v37 = vpack.c.bf16 %v472_v32, %v465_v31  ;;  %v493_v31 = vld [vmem:[%s6519_s29 + $0x1d8] sm:$0xff]  ;;  %v500_v32 = vld [vmem:[%s6519_s29 + $0x210] sm:$0xff] }
  0x57   : > { %1566 = vmatpush.bf16.msra.mxu3 %v4835_v47  ;;  %9119 = vst [vmem:[#allocation2_spill] sm:$0xff] %v6930_v36  ;;  %v5861_v47 = vld [vmem:[%s9093_s2 + $0xb4] sm:$0xf] }
  0x58   : > { %1615 = vmatpush.bf16.msra.mxu0 %v4899_v54  ;;  %v480_v54 = vld [vmem:[%s6519_s29 + $0x170] sm:$0xff]  ;;  %v4883_v56 = vor.u32 %v5861_v47, %v4880_v48  ;;  %v7010_v47 = vpack.c.bf16 %v500_v32, %v493_v31  ;;  %v515_v32 = vld [vmem:[%s6519_s29 + $0x288] sm:$0xff] }
  0x59   : > { %1664 = vmatpush.bf16.msra.mxu1 %v4963_v57  ;;  %v479_v57 = vld [vmem:[%s6519_s29 + $0x168] sm:$0xff]  ;;  %v6962_v62 = vpack.c.bf16 %v487_v55, %v480_v54  ;;  %v5875_v54 = vld [vmem:[%s9093_s2 + $0x124] sm:$0xf]  ;;  %v508_v31 = vld [vmem:[%s6519_s29 + $0x250] sm:$0xff] }
  0x5a   : > { %v6964_v1 = vpack.c.bf16 %v486_v58, %v479_v57  ;;  %9124 = vst [vmem:[#allocation7_spill] sm:$0xff] %v7010_v47  ;;  %v4936_v55 = vld [vmem:[%s9093_s2 + $0x128] sm:$0xf0]  ;;  %v7056_v60 = vpack.c.bf16 %v515_v32, %v508_v31 }
  0x5b   : > { %1567 = vmatpush.bf16.msra.mxu3 %v4827_v16  ;;  %9120 = vst [vmem:[#allocation3_spill] sm:$0xff] %v6962_v62  ;;  %v5843_v16 = vld [vmem:[%s9093_s2 + $0x24] sm:$0xf]  ;;  %v4939_v57 = vor.u32 %v5875_v54, %v4936_v55  ;;  %v509_v54 = vld [vmem:[%s6519_s29 + $0x258] sm:$0xff]  ;;  %v516_v55 = vld [vmem:[%s6519_s29 + $0x290] sm:$0xff] }
  0x5c   : > { %1616 = vmatpush.bf16.msra.mxu0 %v4891_v19  ;;  %9121 = vst [vmem:[#allocation4_spill] sm:$0xff] %v6964_v1  ;;  %v4811_v18 = vor.u32 %v5843_v16, %v4808_v17  ;;  %v6987_v19 = vld [vmem:[%s9094_s3] sm:$0x3]  ;;  %v4792_v31 = vld [vmem:[%s9093_s2 + $0x8] sm:$0xf0] }
  0x5d   : > { %1244 = vmatmul.bf16.gmra.mxu0 %v6814_v20  ;;  %1665 = vmatpush.bf16.msra.mxu1 %v4955_v26  ;;  %v4872_v26 = vld [vmem:[%s9093_s2 + $0xa8] sm:$0xf0]  ;;  %v7004_v39 = vperm.slane %v6987_v19, 0  ;;  %9126 = vst [vmem:[#allocation9_spill] sm:$0xff] %v7056_v60 }
  0x5e   : > { %1313 = vmatmul.bf16.gmra.mxu3 %v6818_v22  ;;  %v4875_v30 = vor.u32 %v5859_v25, %v4872_v26 }
  0x5f   : > { %1264 = vmatmul.bf16.gmra.mxu2 %v6816_v21  ;;  %1568 = vmatpush.bf16.msra.mxu3 %v4819_v45  ;;  %v7008_v45 = vpack.c.bf16 %v501_v29, %v494_v28  ;;  %v5857_v28 = vld [vmem:[%s9093_s2 + $0x94] sm:$0xf]  ;;  %v4864_v29 = vld [vmem:[%s9093_s2 + $0x98] sm:$0xf0] }
  0x60   : > { %1293 = vmatmul.bf16.gmra.mxu1 %v6820_v23  ;;  %1617 = vmatpush.bf16.msra.mxu0 %v4883_v56  ;;  %v4867_v33 = vor.u32 %v5857_v28, %v4864_v29 }
  0x61   : > { %1666 = vmatpush.bf16.msra.mxu1 %v4947_v15  ;;  %9123 = vst [vmem:[#allocation6_spill] sm:$0xff] %v7008_v45 }
  0x63   : > { %1569 = vmatpush.bf16.msra.mxu3 %v4811_v18 }
  0x64   : > { %1618 = vmatpush.bf16.msra.mxu0 %v4875_v30  ;;  %v513_v30 = vld [vmem:[%s6519_s29 + $0x278] sm:$0xff] }
  0x65   : > { %1667 = vmatpush.bf16.msra.mxu1 %v4939_v57  ;;  %v7054_v59 = vpack.c.bf16 %v513_v30, %v506_v27  ;;  %v5839_v30 = vld [vmem:[%s9093_s2 + $0x4] sm:$0xf] }
  0x66   : > { %v4795_v32 = vor.u32 %v5839_v30, %v4792_v31  ;;  %v521_v31 = vld [vmem:[%s6519_s29 + $0x2b8] sm:$0xff] }
  0x67   : > { %1570 = vmatpush.bf16.msra.mxu3 %v4803_v5 }
  0x68   : > { %1619 = vmatpush.bf16.msra.mxu0 %v4867_v33 }
  0x6b   : > { %1571 = vmatpush.bf16.msra.mxu3 %v4795_v32  ;;  %v528_v32 = vld [vmem:[%s6519_s29 + $0x2f0] sm:$0xff] }
  0x6d   : > { %1425 = vmatmul.bf16.vlgmr.msrb.gmra.mxu0 %v6854_v42 }
  0x6e   : > { %1376 = vmatmul.bf16.vlgmr.msrb.gmra.mxu3 %v6856_v43 }
  0x6f   : > { %1327 = vmatmul.bf16.vlgmr.msrb.gmra.mxu2 %v6852_v41 }
  0x70   : > { %1474 = vmatmul.bf16.vlgmr.msrb.gmra.mxu1 %v6858_v44 }
  0x7d   : > { %1430 = vmatmul.bf16.gmra.mxu0 %v6892_v11 }
  0x7e   : > { %1381 = vmatmul.bf16.gmra.mxu3 %v6894_v12 }
  0x7f   : > { %1332 = vmatmul.bf16.gmra.mxu2 %v6890_v7 }
  0x80   : > { %1479 = vmatmul.bf16.gmra.mxu1 %v6896_v13 }
  0x8d   : > { %1435 = vmatmul.bf16.gmra.mxu0 %v6930_v36 }
  0x8e   : > { %1386 = vmatmul.bf16.gmra.mxu3 %v6932_v37 }
  0x8f   : > { %1337 = vmatmul.bf16.gmra.mxu2 %v6928_v35 }
  0x90   : > { %1484 = vmatmul.bf16.gmra.mxu1 %v6934_v38 }
  0x9d   : > { %1440 = vmatmul.bf16.gmra.mxu0 %v6962_v62 }
  0x9e   : > { %1391 = vmatmul.bf16.gmra.mxu3 %v6964_v1 }
  0x9f   : > { %1342 = vmatmul.bf16.gmra.mxu2 %v6960_v61 }
  0xa0   : > { %1489 = vmatmul.bf16.gmra.mxu1 %v6966_v2 }
  0xaa   : > { %v1230_v46 = vpop.f32.mrf.mxu0 }
  0xab   : > { %v1231_v48 = vadd.f32 %v1230_v46, %v7004_v39  ;;  %v514_v46 = vld [vmem:[%s6519_s29 + $0x280] sm:$0xff] }
  0xad   : > { %v1279_v56 = vpop.f32.mrf.mxu1  ;;  %1445 = vmatmul.bf16.gmra.mxu0 %v7008_v45 }
  0xae   : > { %v7023_v58 = vadd.f32 %v1279_v56, %v1231_v48  ;;  %1396 = vmatmul.bf16.gmra.mxu3 %v7010_v47 }
  0xaf   : > { %1347 = vmatmul.bf16.gmra.mxu2 %v7006_v40 }
  0xb0   : > { %1494 = vmatmul.bf16.gmra.mxu1 %v7013_v53  ;;  %v1250_v14 = vpop.f32.mrf.mxu2 }
  0xb1   : > { %v1251_v15 = vadd.f32 %v1250_v14, %v7004_v39  ;;  %v1299_v16 = vpop.f32.mrf.mxu3  ;;  %v7058_v14 = vpack.c.bf16 %v514_v46, %v507_v34 }
  0xb2   : > { %v1232_v17 = vpop.f32.mrf.mxu0 }
  0xb3   : > { %v7034_v18 = vadd.f32 %v1299_v16, %v1251_v15  ;;  %v1233_v24 = vadd.f32 %v1232_v17, %v7004_v39  ;;  %9127 = vst [vmem:[#allocation10_spill] sm:$0xff] %v7058_v14  ;;  %v7063_v17 = vpack.c.bf16 %v516_v55, %v509_v54 }
  0xb5   : > { %v1281_v25 = vpop.f32.mrf.mxu1  ;;  %9128 = vst [vmem:[#allocation11_spill] sm:$0xff] %v7063_v17 }
  0xb6   : > { %v7037_v26 = vadd.f32 %v1281_v25, %v1233_v24  ;;  %v5873_v24 = vld [vmem:[%s9093_s2 + $0x114] sm:$0xf]  ;;  %v4928_v25 = vld [vmem:[%s9093_s2 + $0x118] sm:$0xf0] }
  0xb7   : > { %v4931_v28 = vor.u32 %v5873_v24, %v4928_v25  ;;  %v4856_v24 = vld [vmem:[%s9093_s2 + $0x88] sm:$0xf0] }
  0xb8   : > { %v1252_v48 = vpop.f32.mrf.mxu2  ;;  %v527_v25 = vld [vmem:[%s6519_s29 + $0x2e8] sm:$0xff] }
  0xb9   : > { %v1253_v56 = vadd.f32 %v1252_v48, %v7004_v39  ;;  %v1301_v57 = vpop.f32.mrf.mxu3  ;;  %1668 = vmatpush.bf16.msra.mxu1 %v4931_v28  ;;  %v529_v28 = vld [vmem:[%s6519_s29 + $0x2f8] sm:$0xff] }
  0xba   : > { %v1235_v5 = vpop.f32.mrf.mxu0 }
  0xbb   : > { %v7060_v15 = vadd.f32 %v1301_v57, %v1253_v56  ;;  %v1236_v16 = vadd.f32 %v1235_v5, %v7004_v39  ;;  %v520_v5 = vld [vmem:[%s6519_s29 + $0x2b0] sm:$0xff] }
  0xbd   : > { %v1284_v27 = vpop.f32.mrf.mxu1  ;;  %1450 = vmatmul.bf16.gmra.mxu0 %v7056_v60 }
  0xbe   : > { %v7073_v29 = vadd.f32 %v1284_v27, %v1236_v16  ;;  %1401 = vmatmul.bf16.gmra.mxu3 %v7058_v14  ;;  %v5855_v16 = vld [vmem:[%s9093_s2 + $0x84] sm:$0xf]  ;;  %v7108_v14 = vpack.c.bf16 %v528_v32, %v521_v31  ;;  %v5040_v31 = vld [vmem:[%s9093_s2 + $0x1f8] sm:$0xf0]  ;;  %v5917_v32 = vld [vmem:[%s9093_s2 + $0x274] sm:$0xf] }
  0xbf   : > { %1352 = vmatmul.bf16.gmra.mxu2 %v7054_v59  ;;  %v522_v27 = vld [vmem:[%s6519_s29 + $0x2c0] sm:$0xff]  ;;  %v4859_v30 = vor.u32 %v5855_v16, %v4856_v24 }
  0xc0   : > { %1499 = vmatmul.bf16.gmra.mxu1 %v7063_v17  ;;  %v7106_v60 = vpack.c.bf16 %v529_v28, %v522_v27  ;;  %9130 = vst [vmem:[#allocation13_spill] sm:$0xff] %v7108_v14 }
  0xc1   : > { %v1304_v46 = vpop.f32.mrf.mxu3  ;;  %1620 = vmatpush.bf16.msra.mxu0 %v4859_v30  ;;  %v5871_v30 = vld [vmem:[%s9093_s2 + $0x104] sm:$0xf] }
  0xc2   : > { %v1255_v33 = vpop.f32.mrf.mxu2  ;;  %v1237_v48 = vpop.f32.mrf.mxu0  ;;  %9129 = vst [vmem:[#allocation12_spill] sm:$0xff] %v7106_v60 }
  0xc3   : > { %v1256_v34 = vadd.f32 %v1255_v33, %v7004_v39  ;;  %v1238_v55 = vadd.f32 %v1237_v48, %v7004_v39 }
  0xc5   : > { %v7084_v54 = vadd.f32 %v1304_v46, %v1256_v34  ;;  %v1286_v56 = vpop.f32.mrf.mxu1  ;;  %v523_v34 = vld [vmem:[%s6519_s29 + $0x2c8] sm:$0xff]  ;;  %v530_v46 = vld [vmem:[%s6519_s29 + $0x300] sm:$0xff] }
  0xc6   : > { %v7087_v57 = vadd.f32 %v1286_v56, %v1238_v55  ;;  %v7104_v56 = vpack.c.bf16 %v527_v25, %v520_v5  ;;  %v7113_v24 = vpack.c.bf16 %v530_v46, %v523_v34  ;;  %v4920_v5 = vld [vmem:[%s9093_s2 + $0x108] sm:$0xf0]  ;;  %v5104_v34 = vld [vmem:[%s9093_s2 + $0x278] sm:$0xf0] }
  0xc7   : > { %v4923_v27 = vor.u32 %v5871_v30, %v4920_v5 }
  0xc8   : > { %9131 = vst [vmem:[#allocation14_spill] sm:$0xff] %v7113_v24 }
  0xc9   : > { %v1306_v55 = vpop.f32.mrf.mxu3  ;;  %1669 = vmatpush.bf16.msra.mxu1 %v4923_v27 }
  0xca   : > { %v1257_v33 = vpop.f32.mrf.mxu2  ;;  %v1240_v17 = vpop.f32.mrf.mxu0 }
  0xcb   : > { %v1258_v48 = vadd.f32 %v1257_v33, %v7004_v39  ;;  %v1241_v16 = vadd.f32 %v1240_v17, %v7004_v39  ;;  %v5901_v17 = vld [vmem:[%s9093_s2 + $0x1f4] sm:$0xf] }
  0xcc   : > { %v5043_v33 = vor.u32 %v5901_v17, %v5040_v31  ;;  %v534_v31 = vld [vmem:[%s6519_s29 + $0x320] sm:$0xff] }
  0xcd   : > { %v7110_v45 = vadd.f32 %v1306_v55, %v1258_v48  ;;  %v1289_v25 = vpop.f32.mrf.mxu1  ;;  %1455 = vmatmul.bf16.gmra.mxu0 %v7106_v60  ;;  %v5107_v48 = vor.u32 %v5917_v32, %v5104_v34  ;;  %v5933_v32 = vld [vmem:[%s9093_s2 + $0x2f4] sm:$0xf]  ;;  %v541_v34 = vld [vmem:[%s6519_s29 + $0x358] sm:$0xff] }
  0xce   : > { %v7123_v28 = vadd.f32 %v1289_v25, %v1241_v16  ;;  %1406 = vmatmul.bf16.gmra.mxu3 %v7108_v14  ;;  %1711 = vmatpush.bf16.msrb.mxu2 %v5043_v33  ;;  %v5168_v33 = vld [vmem:[%s9093_s2 + $0x2f8] sm:$0xf0]  ;;  %v544_v14 = vld [vmem:[%s6519_s29 + $0x370] sm:$0xff]  ;;  %v7160_v53 = vpack.c.bf16 %v541_v34, %v534_v31  ;;  %v5176_v31 = vld [vmem:[%s9093_s2 + $0x308] sm:$0xf0] }
  0xcf   : > { %1357 = vmatmul.bf16.gmra.mxu2 %v7104_v56  ;;  %1760 = vmatpush.bf16.msrb.mxu3 %v5107_v48  ;;  %v543_v48 = vld [vmem:[%s6519_s29 + $0x368] sm:$0xff]  ;;  %v5171_v60 = vor.u32 %v5933_v32, %v5168_v33  ;;  %v5915_v34 = vld [vmem:[%s9093_s2 + $0x264] sm:$0xf] }
  0xd0   : > { %1504 = vmatmul.bf16.gmra.mxu1 %v7113_v24 }
  0xd1   : > { %v1309_v16 = vpop.f32.mrf.mxu3  ;;  %1809 = vmatpush.bf16.msrb.mxu0 %v5171_v60 }
  0xd2   : > { %v1260_v46 = vpop.f32.mrf.mxu2  ;;  %v1242_v30 = vpop.f32.mrf.mxu0 }
  0xd3   : > { %v1261_v55 = vadd.f32 %v1260_v46, %v7004_v39  ;;  %v1243_v25 = vadd.f32 %v1242_v30, %v7004_v39  ;;  %v536_v46 = vld [vmem:[%s6519_s29 + $0x330] sm:$0xff]  ;;  %v537_v30 = vld [vmem:[%s6519_s29 + $0x338] sm:$0xff] }
  0xd4   : > { %v7162_v47 = vpack.c.bf16 %v543_v48, %v536_v46  ;;  %v7169_v33 = vpack.c.bf16 %v544_v14, %v537_v30  ;;  %v5899_v14 = vld [vmem:[%s9093_s2 + $0x1e4] sm:$0xf]  ;;  %v5096_v48 = vld [vmem:[%s9093_s2 + $0x268] sm:$0xf0] }
  0xd5   : > { %v7140_v5 = vadd.f32 %v1309_v16, %v1261_v55  ;;  %v1291_v27 = vpop.f32.mrf.mxu1  ;;  %v535_v55 = vld [vmem:[%s6519_s29 + $0x328] sm:$0xff]  ;;  %v542_v16 = vld [vmem:[%s6519_s29 + $0x360] sm:$0xff] }
  0xd6   : > { %v7143_v17 = vadd.f32 %v1291_v27, %v1243_v25  ;;  %9132 = vst [vmem:[#allocation15_spill] sm:$0xff] %v7162_v47  ;;  %v7164_v2 = vpack.c.bf16 %v542_v16, %v535_v55  ;;  %v5099_v16 = vor.u32 %v5915_v34, %v5096_v48  ;;  %v440_v34 = vld [vmem:[%s6519_s29 + $0x30] sm:$0xff]  ;;  %v447_v48 = vld [vmem:[%s6519_s29 + $0x68] sm:$0xff] }
  0xd7   : > { %9134 = vst [vmem:[#allocation17_spill] sm:$0xff] %v7169_v33 }
  0xd8   : > { %9133 = vst [vmem:[#allocation16_spill] sm:$0xff] %v7164_v2  ;;  %1761 = vmatpush.bf16.msrb.mxu3 %v5099_v16 }
  0xd9   : > { %v1311_v27 = vpop.f32.mrf.mxu3 }
  0xda   : > { %v1262_v24 = vpop.f32.mrf.mxu2  ;;  %v1245_v62 = vpop.f32.mrf.mxu0 }
  0xdb   : > { %v1263_v25 = vadd.f32 %v1262_v24, %v7004_v39  ;;  %v1246_v32 = vadd.f32 %v1245_v62, %v7004_v39  ;;  %v5935_v24 = vld [vmem:[%s9093_s2 + $0x304] sm:$0xf] }
  0xdc   : > { %v5179_v62 = vor.u32 %v5935_v24, %v5176_v31 }
  0xdd   : > { %v7166_v1 = vadd.f32 %v1311_v27, %v1263_v25  ;;  %v1294_v36 = vpop.f32.mrf.mxu1  ;;  %1460 = vmatmul.bf16.gmra.mxu0 %v7162_v47 }
  0xde   : > { %v7173_v60 = vadd.f32 %v1294_v36, %v1246_v32  ;;  %1411 = vmatmul.bf16.gmra.mxu3 %v7164_v2  ;;  %v5032_v36 = vld [vmem:[%s9093_s2 + $0x1e8] sm:$0xf0]  ;;  %1865 = vmatpush.bf16.msrb.mxu1 %v5179_v62  ;;  %v461_v2 = vld [vmem:[%s6519_s29 + $0xd8] sm:$0xff] }
  0xdf   : > { %1362 = vmatmul.bf16.gmra.mxu2 %v7160_v53  ;;  %v5035_v46 = vor.u32 %v5899_v14, %v5032_v36  ;;  %v5931_v36 = vld [vmem:[%s9093_s2 + $0x2e4] sm:$0xf]  ;;  %v5160_v62 = vld [vmem:[%s9093_s2 + $0x2e8] sm:$0xf0] }
  0xe0   : > { %1509 = vmatmul.bf16.gmra.mxu1 %v7169_v33 }
  0xe1   : > { %v1314_v25 = vpop.f32.mrf.mxu3  ;;  %1712 = vmatpush.bf16.msrb.mxu2 %v5035_v46  ;;  %v5163_v46 = vor.u32 %v5931_v36, %v5160_v62  ;;  %v5897_v36 = vld [vmem:[%s9093_s2 + $0x1d4] sm:$0xf] }
  0xe2   : > { %v1265_v55 = vpop.f32.mrf.mxu2  ;;  %v1247_v27 = vpop.f32.mrf.mxu0  ;;  %v5913_v62 = vld [vmem:[%s9093_s2 + $0x254] sm:$0xf] }
  0xe3   : > { %v1266_v30 = vadd.f32 %v1265_v55, %v7004_v39  ;;  %v1248_v24 = vadd.f32 %v1247_v27, %v7004_v39  ;;  %1810 = vmatpush.bf16.msrb.mxu0 %v5163_v46 }
  0xe5   : > { %v7196_v32 = vadd.f32 %v1314_v25, %v1266_v30  ;;  %v1296_v31 = vpop.f32.mrf.mxu1  ;;  %v7210_v25 = vpack.c.bf16 %v447_v48, %v440_v34 }
  0xe6   : > { %v7199_v14 = vadd.f32 %v1296_v31, %v1248_v24 }
  0xe9   : > { %v1316_v30 = vpop.f32.mrf.mxu3 }
  0xea   : > { %v1267_v55 = vpop.f32.mrf.mxu2  ;;  %v1426_v27 = vpop.f32.mrf.mxu0 }
  0xeb   : > { %v1268_v16 = vadd.f32 %v1267_v55, %v7004_v39  ;;  %v5024_v39 = vld [vmem:[%s9093_s2 + $0x1d8] sm:$0xf0] }
  0xec   : > { %v5027_v34 = vor.u32 %v5897_v36, %v5024_v39  ;;  %v5152_v36 = vld [vmem:[%s9093_s2 + $0x2d8] sm:$0xf0]  ;;  %v454_v39 = vld [vmem:[%s6519_s29 + $0xa0] sm:$0xff] }
  0xed   : > { %v7212_v24 = vadd.f32 %v1316_v30, %v1268_v16  ;;  %v1475_v31 = vpop.f32.mrf.mxu1  ;;  %1621 = vmatmul.bf16.vlgmr.msra.gmra.mxu0 %v6580_v10 }
  0xee   : > { %1572 = vmatmul.bf16.vlgmr.msra.gmra.mxu3 %v6565_v3  ;;  %v5088_v3 = vld [vmem:[%s9093_s2 + $0x258] sm:$0xf0]  ;;  %1713 = vmatpush.bf16.msrb.mxu2 %v5027_v34 }
  0xef   : > { %5180 = vmatmul.msk.bf16.vlgmr.msra.gmra.mxu2 %vm1196_vm0, %v7210_v25  ;;  %v5091_v48 = vor.u32 %v5913_v62, %v5088_v3 }
  0xf0   : > { %1670 = vmatmul.bf16.vlgmr.msra.gmra.mxu1 %v6852_v41  ;;  %v5929_v41 = vld [vmem:[%s9093_s2 + $0x2d4] sm:$0xf] }
  0xf1   : > { %v1377_v55 = vpop.f32.mrf.mxu3  ;;  %1762 = vmatpush.bf16.msrb.mxu3 %v5091_v48  ;;  %v5155_v62 = vor.u32 %v5929_v41, %v5152_v36  ;;  %v7243_v48 = vpack.c.bf16 %v461_v2, %v454_v39  ;;  %v5016_v2 = vld [vmem:[%s9093_s2 + $0x1c8] sm:$0xf0] }
  0xf2   : > { %v1328_v10 = vpop.f32.mrf.mxu2  ;;  %v1428_v16 = vpop.f32.mrf.mxu0 }
  0xf3   : > { %v1329_v46 = vadd.f32 %v1328_v10, %v7023_v58  ;;  %1811 = vmatpush.bf16.msrb.mxu0 %v5155_v62 }
  0xf5   : > { %v1378_v30 = vadd.f32 %v1377_v55, %v1329_v46  ;;  %v1477_v47 = vpop.f32.mrf.mxu1 }
  0xf7   : > { %v1427_v33 = vadd.f32 %v1426_v27, %v1378_v30 }
  0xf9   : > { %v7240_v3 = vadd.f32 %v1475_v31, %v1427_v33  ;;  %v1379_v10 = vpop.f32.mrf.mxu3  ;;  %v5895_v33 = vld [vmem:[%s9093_s2 + $0x1c4] sm:$0xf] }
  0xfa   : > { %v1330_v58 = vpop.f32.mrf.mxu2  ;;  %v1431_v27 = vpop.f32.mrf.mxu0  ;;  %v5019_v31 = vor.u32 %v5895_v33, %v5016_v2 }
  0xfb   : > { %v1331_v34 = vadd.f32 %v1330_v58, %v7037_v26  ;;  %v5911_v26 = vld [vmem:[%s9093_s2 + $0x244] sm:$0xf] }
  0xfc   : > { %1714 = vmatpush.bf16.msrb.mxu2 %v5019_v31 }
  0xfd   : > { %v1380_v46 = vadd.f32 %v1379_v10, %v1331_v34  ;;  %v1480_v55 = vpop.f32.mrf.mxu1  ;;  %1626 = vmatmul.bf16.gmra.mxu0 %v6696_v9  ;;  %v5927_v10 = vld [vmem:[%s9093_s2 + $0x2c4] sm:$0xf] }
  0xfe   : > { %1577 = vmatmul.bf16.gmra.mxu3 %v6681_v63  ;;  %v5080_v63 = vld [vmem:[%s9093_s2 + $0x248] sm:$0xf0] }
  0xff   : > { %v1429_v30 = vadd.f32 %v1428_v16, %v1380_v46  ;;  %5181 = vmatmul.msk.bf16.gmra.mxu2 %vm1196_vm0, %v7243_v48  ;;  %v5083_v41 = vor.u32 %v5911_v26, %v5080_v63  ;;  %v468_v46 = vld [vmem:[%s6519_s29 + $0x110] sm:$0xff] }
 0x100   : > { %1675 = vmatmul.bf16.gmra.mxu1 %v6890_v7 }
 0x101   : > { %v7262_v9 = vadd.f32 %v1477_v47, %v1429_v30  ;;  %v1382_v39 = vpop.f32.mrf.mxu3  ;;  %1763 = vmatpush.bf16.msrb.mxu3 %v5083_v41  ;;  %v5144_v47 = vld [vmem:[%s9093_s2 + $0x2c8] sm:$0xf0] }
 0x102   : > { %v1333_v16 = vpop.f32.mrf.mxu2  ;;  %v1433_v62 = vpop.f32.mrf.mxu0  ;;  %v475_v30 = vld [vmem:[%s6519_s29 + $0x148] sm:$0xff]  ;;  %v5147_v33 = vor.u32 %v5927_v10, %v5144_v47 }
 0x103   : > { %v1334_v36 = vadd.f32 %v1333_v16, %v7073_v29  ;;  %v7276_v63 = vpack.c.bf16 %v475_v30, %v468_v46 }
 0x104   : > { %1812 = vmatpush.bf16.msrb.mxu0 %v5147_v33 }
 0x105   : > { %v1383_v58 = vadd.f32 %v1382_v39, %v1334_v36  ;;  %v1482_v34 = vpop.f32.mrf.mxu1  ;;  %v5909_v39 = vld [vmem:[%s9093_s2 + $0x234] sm:$0xf] }
 0x107   : > { %v1432_v7 = vadd.f32 %v1431_v27, %v1383_v58 }
 0x109   : > { %v7273_v2 = vadd.f32 %v1480_v55, %v1432_v7  ;;  %v1384_v31 = vpop.f32.mrf.mxu3  ;;  %v5893_v55 = vld [vmem:[%s9093_s2 + $0x1b4] sm:$0xf] }
 0x10a   : > { %v1335_v29 = vpop.f32.mrf.mxu2  ;;  %v1436_v27 = vpop.f32.mrf.mxu0 }
 0x10b   : > { %v1336_v26 = vadd.f32 %v1335_v29, %v7087_v57  ;;  %v5008_v57 = vld [vmem:[%s9093_s2 + $0x1b8] sm:$0xf0]  ;;  %v5925_v29 = vld [vmem:[%s9093_s2 + $0x2b4] sm:$0xf] }
 0x10d   : > { %v1385_v16 = vadd.f32 %v1384_v31, %v1336_v26  ;;  %v1485_v41 = vpop.f32.mrf.mxu1  ;;  %1631 = vmatmul.bf16.gmra.mxu0 %v6770_v52  ;;  %v482_v26 = vld [vmem:[%s6519_s29 + $0x180] sm:$0xff]  ;;  %v489_v31 = vld [vmem:[%s6519_s29 + $0x1b8] sm:$0xff] }
 0x10e   : > { %1582 = vmatmul.bf16.gmra.mxu3 %v6764_v49  ;;  %v5072_v49 = vld [vmem:[%s9093_s2 + $0x238] sm:$0xf0] }
 0x10f   : > { %v1434_v36 = vadd.f32 %v1433_v62, %v1385_v16  ;;  %5182 = vmatmul.msk.bf16.gmra.mxu2 %vm1196_vm0, %v7276_v63  ;;  %v5011_v62 = vor.u32 %v5893_v55, %v5008_v57  ;;  %v5075_v7 = vor.u32 %v5909_v39, %v5072_v49  ;;  %v7309_v39 = vpack.c.bf16 %v489_v31, %v482_v26  ;;  %v5923_v31 = vld [vmem:[%s9093_s2 + $0x2a4] sm:$0xf] }
 0x110   : > { %1680 = vmatmul.bf16.gmra.mxu1 %v6928_v35 }
 0x111   : > { %v7295_v52 = vadd.f32 %v1482_v34, %v1434_v36  ;;  %v1387_v47 = vpop.f32.mrf.mxu3  ;;  %1715 = vmatpush.bf16.msrb.mxu2 %v5011_v62  ;;  %1764 = vmatpush.bf16.msrb.mxu3 %v5075_v7  ;;  %v5136_v34 = vld [vmem:[%s9093_s2 + $0x2b8] sm:$0xf0]  ;;  %v5907_v7 = vld [vmem:[%s9093_s2 + $0x224] sm:$0xf] }
 0x112   : > { %v1338_v58 = vpop.f32.mrf.mxu2  ;;  %v1438_v46 = vpop.f32.mrf.mxu0  ;;  %v5139_v16 = vor.u32 %v5925_v29, %v5136_v34 }
 0x113   : > { %v1339_v10 = vadd.f32 %v1338_v58, %v7123_v28 }
 0x114   : > { %1813 = vmatpush.bf16.msrb.mxu0 %v5139_v16  ;;  %v496_v16 = vld [vmem:[%s6519_s29 + $0x1f0] sm:$0xff] }
 0x115   : > { %v1388_v30 = vadd.f32 %v1387_v47, %v1339_v10  ;;  %v1487_v33 = vpop.f32.mrf.mxu1 }
 0x117   : > { %v1437_v35 = vadd.f32 %v1436_v27, %v1388_v30 }
 0x119   : > { %v7306_v36 = vadd.f32 %v1485_v41, %v1437_v35  ;;  %v1389_v57 = vpop.f32.mrf.mxu3  ;;  %v5891_v41 = vld [vmem:[%s9093_s2 + $0x1a4] sm:$0xf] }
 0x11a   : > { %v1340_v28 = vpop.f32.mrf.mxu2  ;;  %v1441_v27 = vpop.f32.mrf.mxu0 }
 0x11b   : > { %v1341_v55 = vadd.f32 %v1340_v28, %v7143_v17  ;;  %v5000_v17 = vld [vmem:[%s9093_s2 + $0x1a8] sm:$0xf0] }
 0x11c   : > { %v5003_v10 = vor.u32 %v5891_v41, %v5000_v17  ;;  %v503_v28 = vld [vmem:[%s6519_s29 + $0x228] sm:$0xff] }
 0x11d   : > { %v1390_v62 = vadd.f32 %v1389_v57, %v1341_v55  ;;  %v1490_v49 = vpop.f32.mrf.mxu1  ;;  %1636 = vmatmul.bf16.gmra.mxu0 %v6820_v23  ;;  %v7342_v41 = vpack.c.bf16 %v503_v28, %v496_v16  ;;  %v510_v16 = vld [vmem:[%s6519_s29 + $0x260] sm:$0xff]  ;;  %v517_v28 = vld [vmem:[%s6519_s29 + $0x298] sm:$0xff] }
 0x11e   : > { %1587 = vmatmul.bf16.gmra.mxu3 %v6814_v20  ;;  %v5064_v20 = vld [vmem:[%s9093_s2 + $0x228] sm:$0xf0]  ;;  %1716 = vmatpush.bf16.msrb.mxu2 %v5003_v10 }
 0x11f   : > { %v1439_v58 = vadd.f32 %v1438_v46, %v1390_v62  ;;  %5183 = vmatmul.msk.bf16.gmra.mxu2 %vm1196_vm0, %v7309_v39  ;;  %v5067_v46 = vor.u32 %v5907_v7, %v5064_v20  ;;  %v5905_v20 = vld [vmem:[%s9093_s2 + $0x214] sm:$0xf] }
 0x120   : > { %1685 = vmatmul.bf16.gmra.mxu1 %v6960_v61 }
 0x121   : > { %v7328_v23 = vadd.f32 %v1487_v33, %v1439_v58  ;;  %v1392_v35 = vpop.f32.mrf.mxu3  ;;  %1765 = vmatpush.bf16.msrb.mxu3 %v5067_v46  ;;  %v5128_v33 = vld [vmem:[%s9093_s2 + $0x2a8] sm:$0xf0] }
 0x122   : > { %v1343_v47 = vpop.f32.mrf.mxu2  ;;  %v1443_v29 = vpop.f32.mrf.mxu0  ;;  %v5131_v55 = vor.u32 %v5923_v31, %v5128_v33  ;;  %v5921_v33 = vld [vmem:[%s9093_s2 + $0x294] sm:$0xf] }
 0x123   : > { %v1344_v30 = vadd.f32 %v1343_v47, %v7173_v60 }
 0x124   : > { %1814 = vmatpush.bf16.msrb.mxu0 %v5131_v55 }
 0x125   : > { %v1393_v34 = vadd.f32 %v1392_v35, %v1344_v30  ;;  %v1492_v26 = vpop.f32.mrf.mxu1 }
 0x127   : > { %v1442_v61 = vadd.f32 %v1441_v27, %v1393_v34 }
 0x129   : > { %v7339_v57 = vadd.f32 %v1490_v49, %v1442_v61  ;;  %v1394_v58 = vpop.f32.mrf.mxu3  ;;  %v5889_v49 = vld [vmem:[%s9093_s2 + $0x194] sm:$0xf] }
 0x12a   : > { %v1345_v60 = vpop.f32.mrf.mxu2  ;;  %v1446_v27 = vpop.f32.mrf.mxu0 }
 0x12b   : > { %v1346_v62 = vadd.f32 %v1345_v60, %v7199_v14  ;;  %v4992_v14 = vld [vmem:[%s9093_s2 + $0x198] sm:$0xf0] }
 0x12c   : > { %v4995_v47 = vor.u32 %v5889_v49, %v4992_v14 }
 0x12d   : > { %v1395_v17 = vadd.f32 %v1394_v58, %v1346_v62  ;;  %v1495_v7 = vpop.f32.mrf.mxu1  ;;  %1641 = vmatmul.bf16.gmra.mxu0 %v6578_v8 }
 0x12e   : > { %1592 = vmatmul.bf16.gmra.mxu3 %v6567_v4  ;;  %v5056_v4 = vld [vmem:[%s9093_s2 + $0x218] sm:$0xf0]  ;;  %1717 = vmatpush.bf16.msrb.mxu2 %v4995_v47 }
 0x12f   : > { %v1444_v10 = vadd.f32 %v1443_v29, %v1395_v17  ;;  %5184 = vmatmul.msk.bf16.gmra.mxu2 %vm1196_vm0, %v7342_v41  ;;  %v5059_v30 = vor.u32 %v5905_v20, %v5056_v4  ;;  %v7375_v17 = vpack.c.bf16 %v517_v28, %v510_v16  ;;  %v5903_v20 = vld [vmem:[%s9093_s2 + $0x204] sm:$0xf] }
 0x130   : > { %1690 = vmatmul.bf16.gmra.mxu1 %v7006_v40 }
 0x131   : > { %v7361_v8 = vadd.f32 %v1492_v26, %v1444_v10  ;;  %v1397_v29 = vpop.f32.mrf.mxu3  ;;  %1766 = vmatpush.bf16.msrb.mxu3 %v5059_v30  ;;  %v5120_v26 = vld [vmem:[%s9093_s2 + $0x298] sm:$0xf0] }
 0x132   : > { %v1348_v46 = vpop.f32.mrf.mxu2  ;;  %v1448_v34 = vpop.f32.mrf.mxu0  ;;  %v5123_v55 = vor.u32 %v5921_v33, %v5120_v26  ;;  %v524_v33 = vld [vmem:[%s6519_s29 + $0x2d0] sm:$0xff]  ;;  %v531_v26 = vld [vmem:[%s6519_s29 + $0x308] sm:$0xff] }
 0x133   : > { %v1349_v35 = vadd.f32 %v1348_v46, %v7034_v18 }
 0x134   : > { %1815 = vmatpush.bf16.msrb.mxu0 %v5123_v55 }
 0x135   : > { %v1398_v61 = vadd.f32 %v1397_v29, %v1349_v35  ;;  %v1497_v31 = vpop.f32.mrf.mxu1 }
 0x137   : > { %v1447_v40 = vadd.f32 %v1446_v27, %v1398_v61 }
 0x139   : > { %v7372_v60 = vadd.f32 %v1495_v7, %v1447_v40  ;;  %v1399_v58 = vpop.f32.mrf.mxu3  ;;  %v5887_v7 = vld [vmem:[%s9093_s2 + $0x184] sm:$0xf] }
 0x13a   : > { %v1350_v18 = vpop.f32.mrf.mxu2  ;;  %v1451_v27 = vpop.f32.mrf.mxu0  ;;  %v5919_v40 = vld [vmem:[%s9093_s2 + $0x284] sm:$0xf] }
 0x13b   : > { %v1351_v62 = vadd.f32 %v1350_v18, %v7060_v15  ;;  %v4984_v15 = vld [vmem:[%s9093_s2 + $0x188] sm:$0xf0] }
 0x13c   : > { %v4987_v47 = vor.u32 %v5887_v7, %v4984_v15 }
 0x13d   : > { %v1400_v10 = vadd.f32 %v1399_v58, %v1351_v62  ;;  %v1500_v49 = vpop.f32.mrf.mxu1  ;;  %1646 = vmatmul.bf16.gmra.mxu0 %v6694_v6  ;;  %v7408_v62 = vpack.c.bf16 %v531_v26, %v524_v33 }
 0x13e   : > { %1597 = vmatmul.bf16.gmra.mxu3 %v6683_v0  ;;  %v5048_v0 = vld [vmem:[%s9093_s2 + $0x208] sm:$0xf0]  ;;  %1718 = vmatpush.bf16.msrb.mxu2 %v4987_v47 }
 0x13f   : > { %v1449_v14 = vadd.f32 %v1448_v34, %v1400_v10  ;;  %5185 = vmatmul.msk.bf16.gmra.mxu2 %vm1196_vm0, %v7375_v17  ;;  %v5051_v46 = vor.u32 %v5903_v20, %v5048_v0 }
 0x140   : > { %1695 = vmatmul.bf16.gmra.mxu1 %v7054_v59 }
 0x141   : > { %v7394_v6 = vadd.f32 %v1497_v31, %v1449_v14  ;;  %v1402_v35 = vpop.f32.mrf.mxu3  ;;  %1767 = vmatpush.bf16.msrb.mxu3 %v5051_v46  ;;  %v5112_v31 = vld [vmem:[%s9093_s2 + $0x288] sm:$0xf0]  ;;  %v538_v46 = vld [vmem:[%s6519_s29 + $0x340] sm:$0xff] }
 0x142   : > { %v1353_v4 = vpop.f32.mrf.mxu2  ;;  %v1453_v29 = vpop.f32.mrf.mxu0  ;;  %v5115_v16 = vor.u32 %v5919_v40, %v5112_v31 }
 0x143   : > { %v1354_v30 = vadd.f32 %v1353_v4, %v7084_v54 }
 0x144   : > { %1816 = vmatpush.bf16.msrb.mxu0 %v5115_v16 }
 0x145   : > { %v1403_v34 = vadd.f32 %v1402_v35, %v1354_v30  ;;  %v1502_v61 = vpop.f32.mrf.mxu1  ;;  %v545_v30 = vld [vmem:[%s6519_s29 + $0x378] sm:$0xff] }
 0x147   : > { %v1452_v59 = vadd.f32 %v1451_v27, %v1403_v34  ;;  %v7423_v34 = vpack.c.bf16 %v545_v30, %v538_v46  ;;  %v5967_v46 = vld [vmem:[%s9095_s4 + $0xf4] sm:$0xf]  ;;  %v5320_v30 = vld [vmem:[%s9095_s4 + $0xf8] sm:$0xf0] }
 0x149   : > { %v7405_v28 = vadd.f32 %v1500_v49, %v1452_v59  ;;  %v1404_v18 = vpop.f32.mrf.mxu3 }
 0x14a   : > { %v1355_v54 = vpop.f32.mrf.mxu2  ;;  %v1456_v58 = vpop.f32.mrf.mxu0 }
 0x14b   : > { %v1356_v55 = vadd.f32 %v1355_v54, %v7110_v45 }
 0x14d   : > { %v1405_v27 = vadd.f32 %v1404_v18, %v1356_v55  ;;  %v1505_v10 = vpop.f32.mrf.mxu1  ;;  %1651 = vmatmul.bf16.gmra.mxu0 %v6768_v51  ;;  %v5254_v55 = vld [vmem:[%s9095_s4 + $0x70] sm:$0xf] }
 0x14e   : > { %1602 = vmatmul.bf16.gmra.mxu3 %v6766_v50 }
 0x14f   : > { %v1454_v14 = vadd.f32 %v1453_v29, %v1405_v27  ;;  %5186 = vmatmul.msk.bf16.gmra.mxu2 %vm1196_vm0, %v7408_v62  ;;  %v5256_v27 = vld [vmem:[%s9095_s4 + $0x78] sm:$0xf0] }
 0x150   : > { %1700 = vmatmul.bf16.gmra.mxu1 %v7104_v56 }
 0x151   : > { %v7415_v49 = vadd.f32 %v1502_v61, %v1454_v14  ;;  %v1407_v15 = vpop.f32.mrf.mxu3 }
 0x152   : > { %v1358_v45 = vpop.f32.mrf.mxu2  ;;  %v1458_v20 = vpop.f32.mrf.mxu0 }
 0x153   : > { %v1359_v7 = vadd.f32 %v1358_v45, %v7140_v5 }
 0x155   : > { %v1408_v47 = vadd.f32 %v1407_v15, %v1359_v7  ;;  %v1507_v0 = vpop.f32.mrf.mxu1 }
 0x157   : > { %v1457_v4 = vadd.f32 %v1456_v58, %v1408_v47  ;;  %v5951_v58 = vld [vmem:[%s9095_s4 + $0x74] sm:$0xf] }
 0x158   : > { %v5259_v14 = vor.u32 %v5951_v58, %v5256_v27 }
 0x159   : > { %v7420_v35 = vadd.f32 %v1505_v10, %v1457_v4  ;;  %v1409_v50 = vpop.f32.mrf.mxu3 }
 0x15a   : > { %v1360_v29 = vpop.f32.mrf.mxu2  ;;  %v1461_v56 = vpop.f32.mrf.mxu0  ;;  %2251 = vmatpush.bf16.msra.mxu0 %v5259_v14 }
 0x15b   : > { %v1361_v51 = vadd.f32 %v1360_v29, %v7166_v1 }
 0x15d   : > { %v1410_v61 = vadd.f32 %v1409_v50, %v1361_v51  ;;  %v1510_v59 = vpop.f32.mrf.mxu1  ;;  %1656 = vmatmul.bf16.gmra.mxu0 %v6818_v22  ;;  %v5952_v22 = vld [vmem:[%s9095_s4 + $0x74] sm:$0xf0]  ;;  %v5323_v51 = vor.u32 %v5967_v46, %v5320_v30 }
 0x15e   : > { %1607 = vmatmul.bf16.gmra.mxu3 %v6816_v21  ;;  %v5318_v21 = vld [vmem:[%s9095_s4 + $0xf0] sm:$0xf]  ;;  %v5255_v18 = vor.u32 %v5952_v22, %v5254_v55 }
 0x15f   : > { %v1459_v40 = vadd.f32 %v1458_v20, %v1410_v61  ;;  %5187 = vmatmul.msk.bf16.gmra.mxu2 %vm1196_vm0, %v7423_v34  ;;  %2300 = vmatpush.bf16.msra.mxu1 %v5323_v51 }
 0x160   : > { %1705 = vmatmul.bf16.gmra.mxu1 %v7160_v53  ;;  %2153 = vmatpush.bf16.msra.mxu2 %v5255_v18 }
 0x161   : > { %v7430_v5 = vadd.f32 %v1507_v0, %v1459_v40  ;;  %v1412_v33 = vpop.f32.mrf.mxu3 }
 0x162   : > { %v1363_v31 = vpop.f32.mrf.mxu2  ;;  %v1463_v26 = vpop.f32.mrf.mxu0 }
 0x163   : > { %v1364_v1 = vadd.f32 %v1363_v31, %v7196_v32  ;;  %v5968_v32 = vld [vmem:[%s9095_s4 + $0xf4] sm:$0xf0] }
 0x164   : > { %v5319_v10 = vor.u32 %v5968_v32, %v5318_v21 }
 0x165   : > { %v1413_v16 = vadd.f32 %v1412_v33, %v1364_v1  ;;  %v1512_v54 = vpop.f32.mrf.mxu1  ;;  %v5949_v33 = vld [vmem:[%s9095_s4 + $0x64] sm:$0xf] }
 0x166   : > { %2202 = vmatpush.bf16.msra.mxu3 %v5319_v10 }
 0x167   : > { %v1462_v53 = vadd.f32 %v1461_v56, %v1413_v16 }
 0x169   : > { %v7451_v45 = vadd.f32 %v1510_v59, %v1462_v53  ;;  %v1414_v20 = vpop.f32.mrf.mxu3 }
 0x16a   : > { %v1365_v7 = vpop.f32.mrf.mxu2  ;;  %v1622_v47 = vpop.f32.mrf.mxu0 }
 0x16b   : > { %v1366_v15 = vadd.f32 %v1365_v7, %v7212_v24  ;;  %v7464_v24 = vperm.slane %v6987_v19, 1  ;;  %v5950_v19 = vld [vmem:[%s9095_s4 + $0x64] sm:$0xf0]  ;;  %v5965_v7 = vld [vmem:[%s9095_s4 + $0xe4] sm:$0xf] }
 0x16d   : > { %v1415_v0 = vadd.f32 %v1414_v20, %v1366_v15  ;;  %v1671_v4 = vpop.f32.mrf.mxu1  ;;  %1817 = vmatmul.bf16.vlgmr.msrb.gmra.mxu0 %v6858_v44  ;;  %v5312_v15 = vld [vmem:[%s9095_s4 + $0xe8] sm:$0xf0] }
 0x16e   : > { %1768 = vmatmul.bf16.vlgmr.msrb.gmra.mxu3 %v6854_v42  ;;  %v5246_v42 = vld [vmem:[%s9095_s4 + $0x60] sm:$0xf] }
 0x16f   : > { %v1464_v29 = vadd.f32 %v1463_v26, %v1415_v0  ;;  %1719 = vmatmul.bf16.vlgmr.msrb.gmra.mxu2 %v6856_v43  ;;  %v5247_v1 = vor.u32 %v5950_v19, %v5246_v42  ;;  %v5248_v26 = vld [vmem:[%s9095_s4 + $0x68] sm:$0xf0] }
 0x170   : > { %5188 = vmatmul.msk.bf16.vlgmr.msrb.gmra.mxu1 %vm1196_vm0, %v7210_v25  ;;  %v5310_v25 = vld [vmem:[%s9095_s4 + $0xe0] sm:$0xf] }
 0x171   : > { %v7468_v50 = vadd.f32 %v1512_v54, %v1464_v29  ;;  %v1573_v59 = vpop.f32.mrf.mxu3  ;;  %v5251_v54 = vor.u32 %v5949_v33, %v5248_v26  ;;  %2154 = vmatpush.bf16.msra.mxu2 %v5247_v1 }
 0x172   : > { %v1524_v56 = vpop.f32.mrf.mxu2  ;;  %v1574_v43 = vadd.f32 %v1573_v59, %v7464_v24  ;;  %v1624_v40 = vpop.f32.mrf.mxu0  ;;  %v5240_v59 = vld [vmem:[%s9095_s4 + $0x58] sm:$0xf0] }
 0x173   : > { %v1525_v61 = vadd.f32 %v1524_v56, %v7240_v3  ;;  %v5966_v3 = vld [vmem:[%s9095_s4 + $0xe4] sm:$0xf0]  ;;  %2252 = vmatpush.bf16.msra.mxu0 %v5251_v54  ;;  %v5963_v54 = vld [vmem:[%s9095_s4 + $0xd4] sm:$0xf] }
 0x174   : > { %v1623_v44 = vadd.f32 %v1622_v47, %v1574_v43  ;;  %v5311_v16 = vor.u32 %v5966_v3, %v5310_v25 }
 0x175   : > { %v1673_v31 = vpop.f32.mrf.mxu1  ;;  %v1907_v58 = vmax.f32 %v1525_v61, 0.0  ;;  %v5947_v61 = vld [vmem:[%s9095_s4 + $0x54] sm:$0xf] }
 0x176   : > { %v7490_v55 = vadd.f32 %v1671_v4, %v1623_v44  ;;  %2203 = vmatpush.bf16.msra.mxu3 %v5311_v16 }
 0x179   : > { %v1575_v53 = vpop.f32.mrf.mxu3 }
 0x17a   : > { %v1526_v22 = vpop.f32.mrf.mxu2  ;;  %v1576_v18 = vadd.f32 %v1575_v53, %v7464_v24  ;;  %v1627_v32 = vpop.f32.mrf.mxu0  ;;  %v9135_v53 = vld [vmem:[#allocation2_spill] sm:$0xff] }
 0x17b   : > { %v1527_v21 = vadd.f32 %v1526_v22, %v7262_v9  ;;  %v5315_v9 = vor.u32 %v5965_v7, %v5312_v15  ;;  %v5304_v22 = vld [vmem:[%s9095_s4 + $0xd8] sm:$0xf0]  ;;  %v5230_v7 = vld [vmem:[%s9095_s4 + $0x40] sm:$0xf]  ;;  %v5946_v15 = vld [vmem:[%s9095_s4 + $0x44] sm:$0xf0] }
 0x17c   : > { %v1625_v10 = vadd.f32 %v1624_v40, %v1576_v18  ;;  %v5243_v40 = vor.u32 %v5947_v61, %v5240_v59 }
 0x17d   : > { %v1909_v27 = vmax.f32 %v1527_v21, 0.0  ;;  %v1676_v14 = vpop.f32.mrf.mxu1  ;;  %1822 = vmatmul.bf16.gmra.mxu0 %v6896_v13  ;;  %2301 = vmatpush.bf16.msra.mxu1 %v5315_v9  ;;  %v5238_v13 = vld [vmem:[%s9095_s4 + $0x50] sm:$0xf]  ;;  %v5231_v9 = vor.u32 %v5946_v15, %v5230_v7 }
 0x17e   : > { %1773 = vmatmul.bf16.gmra.mxu3 %v6892_v11  ;;  %v7505_v47 = vadd.f32 %v1673_v31, %v1625_v10  ;;  %v5948_v11 = vld [vmem:[%s9095_s4 + $0x54] sm:$0xf0]  ;;  %2253 = vmatpush.bf16.msra.mxu0 %v5243_v40  ;;  %v5296_v40 = vld [vmem:[%s9095_s4 + $0xc8] sm:$0xf0] }
 0x17f   : > { %v7500_v20 = vpack.c.bf16 %v1909_v27, %v1907_v58  ;;  %1724 = vmatmul.bf16.gmra.mxu2 %v6894_v12  ;;  %v5239_v56 = vor.u32 %v5948_v11, %v5238_v13 }
 0x180   : > { %5189 = vmatmul.msk.bf16.gmra.mxu1 %vm1196_vm0, %v7243_v48  ;;  %v5302_v48 = vld [vmem:[%s9095_s4 + $0xd0] sm:$0xf] }
 0x181   : > { %v1578_v46 = vpop.f32.mrf.mxu3  ;;  %2155 = vmatpush.bf16.msra.mxu2 %v5239_v56 }
 0x182   : > { %v1529_v0 = vpop.f32.mrf.mxu2  ;;  %v1579_v30 = vadd.f32 %v1578_v46, %v7464_v24  ;;  %v1629_v29 = vpop.f32.mrf.mxu0 }
 0x183   : > { %v1530_v4 = vadd.f32 %v1529_v0, %v7273_v2  ;;  %v5964_v2 = vld [vmem:[%s9095_s4 + $0xd4] sm:$0xf0]  ;;  %v5945_v0 = vld [vmem:[%s9095_s4 + $0x44] sm:$0xf] }
 0x184   : > { %v1628_v51 = vadd.f32 %v1627_v32, %v1579_v30  ;;  %v5303_v43 = vor.u32 %v5964_v2, %v5302_v48 }
 0x185   : > { %v1678_v12 = vpop.f32.mrf.mxu1  ;;  %v1911_v3 = vmax.f32 %v1530_v4, 0.0  ;;  %v5232_v4 = vld [vmem:[%s9095_s4 + $0x48] sm:$0xf0]  ;;  %2156 = vmatpush.bf16.msra.mxu2 %v5231_v9 }
 0x186   : > { %v7529_v44 = vadd.f32 %v1676_v14, %v1628_v51  ;;  %2204 = vmatpush.bf16.msra.mxu3 %v5303_v43  ;;  %v5235_v30 = vor.u32 %v5945_v0, %v5232_v4  ;;  %v5961_v43 = vld [vmem:[%s9095_s4 + $0xc4] sm:$0xf] }
 0x188   : > { %2254 = vmatpush.bf16.msra.mxu0 %v5235_v30 }
 0x189   : > { %v1580_v19 = vpop.f32.mrf.mxu3 }
 0x18a   : > { %v1531_v31 = vpop.f32.mrf.mxu2  ;;  %v1581_v25 = vadd.f32 %v1580_v19, %v7464_v24  ;;  %v1632_v1 = vpop.f32.mrf.mxu0 }
 0x18b   : > { %v1532_v42 = vadd.f32 %v1531_v31, %v7295_v52  ;;  %v5307_v52 = vor.u32 %v5963_v54, %v5304_v22  ;;  %v9136_v31 = vld [vmem:[#allocation4_spill] sm:$0xff] }
 0x18c   : > { %v1630_v26 = vadd.f32 %v1629_v29, %v1581_v25  ;;  %v9138_v25 = vld [vmem:[#allocation3_spill] sm:$0xff] }
 0x18d   : > { %v1913_v33 = vmax.f32 %v1532_v42, 0.0  ;;  %v1681_v16 = vpop.f32.mrf.mxu1  ;;  %1827 = vmatmul.bf16.gmra.mxu0 %v6934_v38  ;;  %2302 = vmatpush.bf16.msra.mxu1 %v5307_v52  ;;  %v9137_v42 = vld [vmem:[#allocation5_spill] sm:$0xff] }
 0x18e   : > { %1778 = vmatmul.bf16.gmra.mxu3 %v9135_v53  ;;  %v7544_v18 = vadd.f32 %v1678_v12, %v1630_v26  ;;  %v5222_v53 = vld [vmem:[%s9095_s4 + $0x30] sm:$0xf] }
 0x18f   : > { %1729 = vmatmul.bf16.gmra.mxu2 %v6932_v37  ;;  %v7541_v21 = vpack.c.bf16 %v1913_v33, %v1911_v3 }
 0x190   : > { %5190 = vmatmul.msk.bf16.gmra.mxu1 %vm1196_vm0, %v7276_v63  ;;  %v5294_v63 = vld [vmem:[%s9095_s4 + $0xc0] sm:$0xf] }
 0x191   : > { %v1583_v27 = vpop.f32.mrf.mxu3 }
 0x192   : > { %v1534_v32 = vpop.f32.mrf.mxu2  ;;  %v1584_v10 = vadd.f32 %v1583_v27, %v7464_v24  ;;  %v1634_v37 = vpop.f32.mrf.mxu0  ;;  %v5943_v27 = vld [vmem:[%s9095_s4 + $0x34] sm:$0xf] }
 0x193   : > { %v1535_v58 = vadd.f32 %v1534_v32, %v7306_v36  ;;  %v5962_v36 = vld [vmem:[%s9095_s4 + $0xc4] sm:$0xf0]  ;;  %v5944_v32 = vld [vmem:[%s9095_s4 + $0x34] sm:$0xf0] }
 0x194   : > { %v1633_v14 = vadd.f32 %v1632_v1, %v1584_v10  ;;  %v5295_v46 = vor.u32 %v5962_v36, %v5294_v63  ;;  %v5224_v10 = vld [vmem:[%s9095_s4 + $0x38] sm:$0xf0] }
 0x195   : > { %v1683_v38 = vpop.f32.mrf.mxu1  ;;  %v1915_v56 = vmax.f32 %v1535_v58, 0.0  ;;  %v5223_v58 = vor.u32 %v5944_v32, %v5222_v53 }
 0x196   : > { %v7568_v29 = vadd.f32 %v1681_v16, %v1633_v14  ;;  %2205 = vmatpush.bf16.msra.mxu3 %v5295_v46  ;;  %v5227_v14 = vor.u32 %v5943_v27, %v5224_v10 }
 0x197   : > { %2157 = vmatpush.bf16.msra.mxu2 %v5223_v58 }
 0x198   : > { %2255 = vmatpush.bf16.msra.mxu0 %v5227_v14  ;;  %v5280_v14 = vld [vmem:[%s9095_s4 + $0xa8] sm:$0xf0] }
 0x199   : > { %v1585_v13 = vpop.f32.mrf.mxu3 }
 0x19a   : > { %v1536_v51 = vpop.f32.mrf.mxu2  ;;  %v1586_v11 = vadd.f32 %v1585_v13, %v7464_v24  ;;  %v1637_v48 = vpop.f32.mrf.mxu0  ;;  %v9139_v13 = vld [vmem:[#allocation7_spill] sm:$0xff] }
 0x19b   : > { %v1537_v12 = vadd.f32 %v1536_v51, %v7328_v23  ;;  %v5299_v23 = vor.u32 %v5961_v43, %v5296_v40  ;;  %v5959_v51 = vld [vmem:[%s9095_s4 + $0xb4] sm:$0xf] }
 0x19c   : > { %v1635_v61 = vadd.f32 %v1634_v37, %v1586_v11  ;;  %v9140_v11 = vld [vmem:[#allocation8_spill] sm:$0xff] }
 0x19d   : > { %v1917_v2 = vmax.f32 %v1537_v12, 0.0  ;;  %v1686_v59 = vpop.f32.mrf.mxu1  ;;  %1832 = vmatmul.bf16.gmra.mxu0 %v9137_v42  ;;  %2303 = vmatpush.bf16.msra.mxu1 %v5299_v23  ;;  %v5288_v12 = vld [vmem:[%s9095_s4 + $0xb8] sm:$0xf0] }
 0x19e   : > { %1783 = vmatmul.bf16.gmra.mxu3 %v9138_v25  ;;  %v7583_v1 = vadd.f32 %v1683_v38, %v1635_v61  ;;  %v5214_v25 = vld [vmem:[%s9095_s4 + $0x20] sm:$0xf] }
 0x19f   : > { %1734 = vmatmul.bf16.gmra.mxu2 %v9136_v31  ;;  %v7580_v19 = vpack.c.bf16 %v1917_v2, %v1915_v56  ;;  %v9141_v56 = vld [vmem:[#allocation6_spill] sm:$0xff] }
 0x1a0   : > { %5191 = vmatmul.msk.bf16.gmra.mxu1 %vm1196_vm0, %v7309_v39  ;;  %v5286_v39 = vld [vmem:[%s9095_s4 + $0xb0] sm:$0xf] }
 0x1a1   : > { %v1588_v26 = vpop.f32.mrf.mxu3 }
 0x1a2   : > { %v1539_v3 = vpop.f32.mrf.mxu2  ;;  %v1589_v16 = vadd.f32 %v1588_v26, %v7464_v24  ;;  %v1639_v54 = vpop.f32.mrf.mxu0  ;;  %v5941_v26 = vld [vmem:[%s9095_s4 + $0x24] sm:$0xf] }
 0x1a3   : > { %v1540_v33 = vadd.f32 %v1539_v3, %v7339_v57  ;;  %v5960_v57 = vld [vmem:[%s9095_s4 + $0xb4] sm:$0xf0] }
 0x1a4   : > { %v1638_v22 = vadd.f32 %v1637_v48, %v1589_v16  ;;  %v5287_v37 = vor.u32 %v5960_v57, %v5286_v39  ;;  %v5216_v16 = vld [vmem:[%s9095_s4 + $0x28] sm:$0xf0] }
 0x1a5   : > { %v1688_v52 = vpop.f32.mrf.mxu1  ;;  %v1919_v0 = vmax.f32 %v1540_v33, 0.0  ;;  %v5958_v33 = vld [vmem:[%s9095_s4 + $0xa4] sm:$0xf0] }
 0x1a6   : > { %v7607_v38 = vadd.f32 %v1686_v59, %v1638_v22  ;;  %2206 = vmatpush.bf16.msra.mxu3 %v5287_v37  ;;  %v5219_v22 = vor.u32 %v5941_v26, %v5216_v16  ;;  %v5957_v37 = vld [vmem:[%s9095_s4 + $0xa4] sm:$0xf]  ;;  %v5200_v16 = vld [vmem:[%s9095_s4 + $0x8] sm:$0xf0] }
 0x1a8   : > { %2256 = vmatpush.bf16.msra.mxu0 %v5219_v22 }
 0x1a9   : > { %v1590_v63 = vpop.f32.mrf.mxu3 }
 0x1aa   : > { %v1541_v7 = vpop.f32.mrf.mxu2  ;;  %v1591_v9 = vadd.f32 %v1590_v63, %v7464_v24  ;;  %v1642_v36 = vpop.f32.mrf.mxu0  ;;  %v5283_v63 = vor.u32 %v5957_v37, %v5280_v14 }
 0x1ab   : > { %v1542_v15 = vadd.f32 %v1541_v7, %v7361_v8  ;;  %v5291_v8 = vor.u32 %v5959_v51, %v5288_v12  ;;  %v9142_v7 = vld [vmem:[#allocation10_spill] sm:$0xff] }
 0x1ac   : > { %v1640_v46 = vadd.f32 %v1639_v54, %v1591_v9  ;;  %v9144_v9 = vld [vmem:[#allocation9_spill] sm:$0xff] }
 0x1ad   : > { %v1921_v4 = vmax.f32 %v1542_v15, 0.0  ;;  %v1691_v30 = vpop.f32.mrf.mxu1  ;;  %1837 = vmatmul.bf16.gmra.mxu0 %v9140_v11  ;;  %2304 = vmatpush.bf16.msra.mxu1 %v5291_v8  ;;  %v9143_v15 = vld [vmem:[#allocation11_spill] sm:$0xff]  ;;  %v5956_v8 = vld [vmem:[%s9095_s4 + $0x94] sm:$0xf0] }
 0x1ae   : > { %1788 = vmatmul.bf16.gmra.mxu3 %v9141_v56  ;;  %v7622_v2 = vadd.f32 %v1688_v52, %v1640_v46  ;;  %v5939_v56 = vld [vmem:[%s9095_s4 + $0x14] sm:$0xf] }
 0x1af   : > { %1739 = vmatmul.bf16.gmra.mxu2 %v9139_v13  ;;  %v7619_v48 = vpack.c.bf16 %v1921_v4, %v1919_v0  ;;  %v5206_v13 = vld [vmem:[%s9095_s4 + $0x10] sm:$0xf] }
 0x1b0   : > { %5192 = vmatmul.msk.bf16.gmra.mxu1 %vm1196_vm0, %v7342_v41  ;;  %v5942_v41 = vld [vmem:[%s9095_s4 + $0x24] sm:$0xf0] }
 0x1b1   : > { %v1593_v43 = vpop.f32.mrf.mxu3  ;;  %v5215_v3 = vor.u32 %v5942_v41, %v5214_v25  ;;  %2305 = vmatpush.bf16.msra.mxu1 %v5283_v63  ;;  %v5198_v25 = vld [vmem:[%s9095_s4] sm:$0xf]  ;;  %v5938_v41 = vld [vmem:[%s9095_s4 + $0x4] sm:$0xf0] }
 0x1b2   : > { %v1544_v61 = vpop.f32.mrf.mxu2  ;;  %v1594_v40 = vadd.f32 %v1593_v43, %v7464_v24  ;;  %v7628_v31 = vpop.f32.mrf.mxu0  ;;  %v5199_v26 = vor.u32 %v5938_v41, %v5198_v25  ;;  %v9150_v25 = vld [vmem:[#allocation15_spill] sm:$0xff] }
 0x1b3   : > { %v1545_v59 = vadd.f32 %v1544_v61, %v7372_v60  ;;  %v5278_v60 = vld [vmem:[%s9095_s4 + $0xa0] sm:$0xf]  ;;  %2158 = vmatpush.bf16.msra.mxu2 %v5215_v3  ;;  %v5208_v61 = vld [vmem:[%s9095_s4 + $0x18] sm:$0xf0] }
 0x1b4   : > { %v1643_v42 = vadd.f32 %v1642_v36, %v1594_v40  ;;  %v5279_v54 = vor.u32 %v5958_v33, %v5278_v60  ;;  %v5211_v43 = vor.u32 %v5939_v56, %v5208_v61  ;;  %v5937_v60 = vld [vmem:[%s9095_s4 + $0x4] sm:$0xf] }
 0x1b5   : > { %v7630_v23 = vpop.f32.mrf.mxu1  ;;  %v1923_v57 = vmax.f32 %v1545_v59, 0.0  ;;  %v5203_v22 = vor.u32 %v5937_v60, %v5200_v16  ;;  %v5953_v60 = vld [vmem:[%s9095_s4 + $0x84] sm:$0xf] }
 0x1b6   : > { %v7650_v52 = vadd.f32 %v1691_v30, %v1643_v42  ;;  %2207 = vmatpush.bf16.msra.mxu3 %v5279_v54  ;;  %2257 = vmatpush.bf16.msra.mxu0 %v5211_v43  ;;  %v9148_v43 = vld [vmem:[#allocation16_spill] sm:$0xff] }
 0x1b9   : > { %v7653_v39 = vpop.f32.mrf.mxu3 }
 0x1ba   : > { %v1546_v53 = vpop.f32.mrf.mxu2  ;;  %v1647_v58 = vpop.f32.mrf.mxu0  ;;  %2258 = vmatpush.bf16.msra.mxu0 %v5203_v22 }
 0x1bb   : > { %v1547_v32 = vadd.f32 %v1546_v53, %v7394_v6 }
 0x1bd   : > { %v1925_v27 = vmax.f32 %v1547_v32, 0.0  ;;  %v1696_v10 = vpop.f32.mrf.mxu1  ;;  %1842 = vmatmul.bf16.gmra.mxu0 %v9143_v15 }
 0x1be   : > { %1793 = vmatmul.bf16.gmra.mxu3 %v9144_v9 }
 0x1bf   : > { %1744 = vmatmul.bf16.gmra.mxu2 %v9142_v7  ;;  %v7663_v6 = vpack.c.bf16 %v1925_v27, %v1923_v57  ;;  %v5955_v57 = vld [vmem:[%s9095_s4 + $0x94] sm:$0xf]  ;;  %v9145_v27 = vld [vmem:[#allocation13_spill] sm:$0xff] }
 0x1c0   : > { %5193 = vmatmul.msk.bf16.gmra.mxu1 %vm1196_vm0, %v7375_v17  ;;  %v5940_v17 = vld [vmem:[%s9095_s4 + $0x14] sm:$0xf0]  ;;  %v9147_v7 = vld [vmem:[#allocation12_spill] sm:$0xff] }
 0x1c1   : > { %v1598_v4 = vpop.f32.mrf.mxu3  ;;  %v5207_v11 = vor.u32 %v5940_v17, %v5206_v13 }
 0x1c2   : > { %v1549_v36 = vpop.f32.mrf.mxu2  ;;  %v1599_v46 = vadd.f32 %v1598_v4, %v7464_v24  ;;  %v7670_v30 = vpop.f32.mrf.mxu0 }
 0x1c3   : > { %v1550_v0 = vadd.f32 %v1549_v36, %v7405_v28  ;;  %v5270_v28 = vld [vmem:[%s9095_s4 + $0x90] sm:$0xf]  ;;  %2159 = vmatpush.bf16.msra.mxu2 %v5207_v11 }
 0x1c4   : > { %v1648_v51 = vadd.f32 %v1647_v58, %v1599_v46  ;;  %v5271_v59 = vor.u32 %v5956_v8, %v5270_v28 }
 0x1c5   : > { %v7672_v12 = vpop.f32.mrf.mxu1  ;;  %v1927_v53 = vmax.f32 %v1550_v0, 0.0 }
 0x1c6   : > { %v7692_v40 = vadd.f32 %v1696_v10, %v1648_v51  ;;  %2208 = vmatpush.bf16.msra.mxu3 %v5271_v59  ;;  %v9146_v10 = vld [vmem:[#allocation14_spill] sm:$0xff] }
 0x1c7   : > { %2160 = vmatpush.bf16.msra.mxu2 %v5199_v26 }
 0x1c9   : > { %v7704_v33 = vpop.f32.mrf.mxu3 }
 0x1ca   : > { %v1551_v42 = vpop.f32.mrf.mxu2  ;;  %v1652_v54 = vpop.f32.mrf.mxu0 }
 0x1cb   : > { %v1552_v3 = vadd.f32 %v1551_v42, %v7415_v49  ;;  %v5272_v49 = vld [vmem:[%s9095_s4 + $0x98] sm:$0xf0] }
 0x1cc   : > { %v5275_v37 = vor.u32 %v5955_v57, %v5272_v49  ;;  %v9149_v42 = vld [vmem:[#allocation17_spill] sm:$0xff] }
 0x1cd   : > { %v1929_v32 = vmax.f32 %v1552_v3, 0.0  ;;  %v1701_v58 = vpop.f32.mrf.mxu1  ;;  %1847 = vmatmul.bf16.gmra.mxu0 %v9146_v10  ;;  %v5264_v3 = vld [vmem:[%s9095_s4 + $0x88] sm:$0xf0] }
 0x1ce   : > { %1798 = vmatmul.bf16.gmra.mxu3 %v9147_v7  ;;  %2306 = vmatpush.bf16.msra.mxu1 %v5275_v37 }
 0x1cf   : > { %1749 = vmatmul.bf16.gmra.mxu2 %v9145_v27  ;;  %v7717_v14 = vpack.c.bf16 %v1929_v32, %v1927_v53 }
 0x1d0   : > { %5194 = vmatmul.msk.bf16.gmra.mxu1 %vm1196_vm0, %v7408_v62  ;;  %v5262_v62 = vld [vmem:[%s9095_s4 + $0x80] sm:$0xf] }
 0x1d1   : > { %v1603_v9 = vpop.f32.mrf.mxu3 }
 0x1d2   : > { %v1554_v15 = vpop.f32.mrf.mxu2  ;;  %v1604_v36 = vadd.f32 %v1603_v9, %v7464_v24  ;;  %v7724_v0 = vpop.f32.mrf.mxu0 }
 0x1d3   : > { %v1555_v63 = vadd.f32 %v1554_v15, %v7420_v35  ;;  %v5954_v35 = vld [vmem:[%s9095_s4 + $0x84] sm:$0xf0] }
 0x1d4   : > { %v1653_v4 = vadd.f32 %v1652_v54, %v1604_v36  ;;  %v5263_v8 = vor.u32 %v5954_v35, %v5262_v62  ;;  %v5267_v54 = vor.u32 %v5953_v60, %v5264_v3 }
 0x1d5   : > { %v7726_v46 = vpop.f32.mrf.mxu1  ;;  %v1931_v56 = vmax.f32 %v1555_v63, 0.0 }
 0x1d6   : > { %v7728_v51 = vadd.f32 %v1701_v58, %v1653_v4  ;;  %2209 = vmatpush.bf16.msra.mxu3 %v5263_v8  ;;  %2307 = vmatpush.bf16.msra.mxu1 %v5267_v54  ;;  %v5382_v8 = vld [vmem:[%s9097_s6 + $0x70] sm:$0xf] }
 0x1d9   : > { %v7731_v28 = vpop.f32.mrf.mxu3 }
 0x1da   : > { %v1556_v13 = vpop.f32.mrf.mxu2  ;;  %v1657_v11 = vpop.f32.mrf.mxu0 }
 0x1db   : > { %v1557_v17 = vadd.f32 %v1556_v13, %v7430_v5 }
 0x1dd   : > { %v1933_v61 = vmax.f32 %v1557_v17, 0.0  ;;  %v1706_v59 = vpop.f32.mrf.mxu1  ;;  %1852 = vmatmul.bf16.gmra.mxu0 %v9149_v42 }
 0x1de   : > { %1803 = vmatmul.bf16.gmra.mxu3 %v9150_v25  ;;  %v5983_v25 = vld [vmem:[%s9097_s6 + $0x74] sm:$0xf] }
 0x1df   : > { %1754 = vmatmul.bf16.gmra.mxu2 %v9148_v43  ;;  %v7741_v5 = vpack.c.bf16 %v1933_v61, %v1931_v56 }
 0x1e0   : > { %5195 = vmatmul.msk.bf16.gmra.mxu1 %vm1196_vm0, %v7423_v34 }
 0x1e1   : > { %v1608_v16 = vpop.f32.mrf.mxu3 }
 0x1e2   : > { %v1559_v41 = vpop.f32.mrf.mxu2  ;;  %v1609_v22 = vadd.f32 %v1608_v16, %v7464_v24  ;;  %v7754_v53 = vpop.f32.mrf.mxu0 }
 0x1e3   : > { %v1560_v26 = vadd.f32 %v1559_v41, %v7451_v45  ;;  %v5384_v41 = vld [vmem:[%s9097_s6 + $0x78] sm:$0xf0] }
 0x1e4   : > { %v1658_v32 = vadd.f32 %v1657_v11, %v1609_v22  ;;  %v5387_v3 = vor.u32 %v5983_v25, %v5384_v41 }
 0x1e5   : > { %v7756_v34 = vpop.f32.mrf.mxu1  ;;  %v1935_v37 = vmax.f32 %v1560_v26, 0.0 }
 0x1e6   : > { %v7758_v58 = vadd.f32 %v1706_v59, %v1658_v32  ;;  %2588 = vmatpush.bf16.msrb.mxu3 %v5387_v3  ;;  %v5366_v3 = vld [vmem:[%s9097_s6 + $0x50] sm:$0xf] }
 0x1e9   : > { %v7761_v27 = vpop.f32.mrf.mxu3 }
 0x1ea   : > { %v1561_v57 = vpop.f32.mrf.mxu2  ;;  %v1818_v10 = vpop.f32.mrf.mxu0 }
 0x1eb   : > { %v1562_v49 = vadd.f32 %v1561_v57, %v7468_v50 }
 0x1ed   : > { %v1937_v45 = vmax.f32 %v1562_v49, 0.0  ;;  %v1867_v7 = vpop.f32.mrf.mxu1  ;;  %2259 = vmatmul.bf16.vlgmr.msra.gmra.mxu0 %v7500_v20 }
 0x1ef   : > { %2161 = vmatmul.bf16.vlgmr.msra.gmra.mxu2 %v7500_v20  ;;  %v7765_v15 = vpack.c.bf16 %v1937_v45, %v1935_v37  ;;  %v5984_v20 = vld [vmem:[%s9097_s6 + $0x74] sm:$0xf0] }
 0x1f0   : > { %v5383_v61 = vor.u32 %v5984_v20, %v5382_v8 }
 0x1f1   : > { %v1769_v36 = vpop.f32.mrf.mxu3 }
 0x1f2   : > { %v1720_v63 = vpop.f32.mrf.mxu2  ;;  %v1820_v4 = vpop.f32.mrf.mxu0  ;;  %2539 = vmatpush.bf16.msrb.mxu2 %v5383_v61 }
 0x1f3   : > { %v1721_v9 = vadd.f32 %v1720_v63, %v7490_v55  ;;  %v5374_v63 = vld [vmem:[%s9097_s6 + $0x60] sm:$0xf] }
 0x1f5   : > { %v1869_v13 = vpop.f32.mrf.mxu1  ;;  %v1770_v17 = vadd.f32 %v1769_v36, %v1721_v9 }
 0x1f7   : > { %v1819_v62 = vadd.f32 %v1818_v10, %v1770_v17 }
 0x1f9   : > { %v1771_v11 = vpop.f32.mrf.mxu3  ;;  %v1868_v43 = vadd.f32 %v1867_v7, %v1819_v62  ;;  %v5981_v62 = vld [vmem:[%s9097_s6 + $0x64] sm:$0xf] }
 0x1fa   : > { %v1722_v50 = vpop.f32.mrf.mxu2  ;;  %v1823_v56 = vpop.f32.mrf.mxu0 }
 0x1fb   : > { %v1723_v35 = vadd.f32 %v1722_v50, %v7505_v47  ;;  %v1908_v26 = vmax.f32 %v1868_v43, 0.0 }
 0x1fd   : > { %v1772_v55 = vadd.f32 %v1771_v11, %v1723_v35  ;;  %v1872_v59 = vpop.f32.mrf.mxu1  ;;  %2264 = vmatmul.bf16.gmra.mxu0 %v7541_v21  ;;  %v5376_v35 = vld [vmem:[%s9097_s6 + $0x68] sm:$0xf0] }
 0x1fe   : > { %v5379_v8 = vor.u32 %v5981_v62, %v5376_v35  ;;  %v5358_v62 = vld [vmem:[%s9097_s6 + $0x40] sm:$0xf] }
 0x1ff   : > { %v1821_v42 = vadd.f32 %v1820_v4, %v1772_v55  ;;  %2166 = vmatmul.bf16.gmra.mxu2 %v7541_v21 }
 0x200   : > { %2589 = vmatpush.bf16.msrb.mxu3 %v5379_v8 }
 0x201   : > { %v1870_v47 = vadd.f32 %v1869_v13, %v1821_v42  ;;  %v1774_v22 = vpop.f32.mrf.mxu3 }
 0x202   : > { %v1725_v60 = vpop.f32.mrf.mxu2  ;;  %v1825_v32 = vpop.f32.mrf.mxu0 }
 0x203   : > { %v1910_v16 = vmax.f32 %v1870_v47, 0.0  ;;  %v1726_v54 = vadd.f32 %v1725_v60, %v7529_v44  ;;  %v5982_v44 = vld [vmem:[%s9097_s6 + $0x64] sm:$0xf0] }
 0x204   : > { %v5375_v36 = vor.u32 %v5982_v44, %v5374_v63 }
 0x205   : > { %v1940_v57 = vpack.c.bf16 %v1910_v16, %v1908_v26  ;;  %v1874_v21 = vpop.f32.mrf.mxu1  ;;  %v1775_v49 = vadd.f32 %v1774_v22, %v1726_v54 }
 0x206   : > { %2540 = vmatpush.bf16.msrb.mxu2 %v5375_v36 }
 0x207   : > { %2210 = vmatmul.bf16.vlgmr.msra.gmra.mxu3 %v1940_v57  ;;  %2308 = vmatmul.bf16.vlgmr.msra.gmra.mxu1 %v1940_v57  ;;  %v1824_v37 = vadd.f32 %v1823_v56, %v1775_v49  ;;  %v5368_v49 = vld [vmem:[%s9097_s6 + $0x58] sm:$0xf0] }
 0x209   : > { %v1776_v7 = vpop.f32.mrf.mxu3  ;;  %v1873_v17 = vadd.f32 %v1872_v59, %v1824_v37 }
 0x20a   : > { %v1727_v10 = vpop.f32.mrf.mxu2  ;;  %v1828_v9 = vpop.f32.mrf.mxu0 }
 0x20b   : > { %v1728_v45 = vadd.f32 %v1727_v10, %v7544_v18  ;;  %v1912_v20 = vmax.f32 %v1873_v17, 0.0 }
 0x20d   : > { %v1777_v4 = vadd.f32 %v1776_v7, %v1728_v45  ;;  %v1877_v13 = vpop.f32.mrf.mxu1  ;;  %2269 = vmatmul.bf16.gmra.mxu0 %v7580_v19 }
 0x20f   : > { %v1826_v50 = vadd.f32 %v1825_v32, %v1777_v4  ;;  %2171 = vmatmul.bf16.gmra.mxu2 %v7580_v19 }
 0x211   : > { %v1875_v18 = vadd.f32 %v1874_v21, %v1826_v50  ;;  %v1779_v61 = vpop.f32.mrf.mxu3  ;;  %v5979_v21 = vld [vmem:[%s9097_s6 + $0x54] sm:$0xf] }
 0x212   : > { %v1730_v11 = vpop.f32.mrf.mxu2  ;;  %v1830_v59 = vpop.f32.mrf.mxu0  ;;  %v5371_v37 = vor.u32 %v5979_v21, %v5368_v49 }
 0x213   : > { %v1731_v56 = vadd.f32 %v1730_v11, %v7568_v29  ;;  %v1914_v55 = vmax.f32 %v1875_v18, 0.0  ;;  %v5980_v29 = vld [vmem:[%s9097_s6 + $0x54] sm:$0xf0] }
 0x214   : > { %v5367_v16 = vor.u32 %v5980_v29, %v5366_v3  ;;  %2590 = vmatpush.bf16.msrb.mxu3 %v5371_v37 }
 0x215   : > { %v1942_v43 = vpack.c.bf16 %v1914_v55, %v1912_v20  ;;  %v1879_v19 = vpop.f32.mrf.mxu1  ;;  %v1780_v42 = vadd.f32 %v1779_v61, %v1731_v56 }
 0x216   : > { %2541 = vmatpush.bf16.msrb.mxu2 %v5367_v16 }
 0x217   : > { %2215 = vmatmul.bf16.gmra.mxu3 %v1942_v43  ;;  %2313 = vmatmul.bf16.gmra.mxu1 %v1942_v43  ;;  %v1829_v25 = vadd.f32 %v1828_v9, %v1780_v42  ;;  %v5360_v43 = vld [vmem:[%s9097_s6 + $0x48] sm:$0xf0] }
 0x219   : > { %v1781_v60 = vpop.f32.mrf.mxu3  ;;  %v1878_v32 = vadd.f32 %v1877_v13, %v1829_v25 }
 0x21a   : > { %v1732_v47 = vpop.f32.mrf.mxu2  ;;  %v1833_v26 = vpop.f32.mrf.mxu0 }
 0x21b   : > { %v1733_v41 = vadd.f32 %v1732_v47, %v7583_v1  ;;  %v1916_v45 = vmax.f32 %v1878_v32, 0.0 }
 0x21d   : > { %v1782_v54 = vadd.f32 %v1781_v60, %v1733_v41  ;;  %v1882_v22 = vpop.f32.mrf.mxu1  ;;  %2274 = vmatmul.bf16.gmra.mxu0 %v7619_v48 }
 0x21f   : > { %v1831_v57 = vadd.f32 %v1830_v59, %v1782_v54  ;;  %2176 = vmatmul.bf16.gmra.mxu2 %v7619_v48  ;;  %v5977_v59 = vld [vmem:[%s9097_s6 + $0x44] sm:$0xf] }
 0x220   : > { %v5363_v42 = vor.u32 %v5977_v59, %v5360_v43 }
 0x221   : > { %v1880_v1 = vadd.f32 %v1879_v19, %v1831_v57  ;;  %v1784_v63 = vpop.f32.mrf.mxu3 }
 0x222   : > { %v1735_v10 = vpop.f32.mrf.mxu2  ;;  %v1835_v9 = vpop.f32.mrf.mxu0  ;;  %2591 = vmatpush.bf16.msrb.mxu3 %v5363_v42  ;;  %v5344_v42 = vld [vmem:[%s9097_s6 + $0x28] sm:$0xf0] }
 0x223   : > { %v1736_v7 = vadd.f32 %v1735_v10, %v7607_v38  ;;  %v1918_v44 = vmax.f32 %v1880_v1, 0.0  ;;  %v5978_v38 = vld [vmem:[%s9097_s6 + $0x44] sm:$0xf0]  ;;  %v5976_v1 = vld [vmem:[%s9097_s6 + $0x34] sm:$0xf0] }
 0x224   : > { %v5359_v11 = vor.u32 %v5978_v38, %v5358_v62 }
 0x225   : > { %v1944_v36 = vpack.c.bf16 %v1918_v44, %v1916_v45  ;;  %v1884_v48 = vpop.f32.mrf.mxu1  ;;  %v1785_v4 = vadd.f32 %v1784_v63, %v1736_v7  ;;  %v5975_v63 = vld [vmem:[%s9097_s6 + $0x34] sm:$0xf]  ;;  %v5352_v44 = vld [vmem:[%s9097_s6 + $0x38] sm:$0xf0] }
 0x226   : > { %2542 = vmatpush.bf16.msrb.mxu2 %v5359_v11 }
 0x227   : > { %2220 = vmatmul.bf16.gmra.mxu3 %v1944_v36  ;;  %2318 = vmatmul.bf16.gmra.mxu1 %v1944_v36  ;;  %v1834_v17 = vadd.f32 %v1833_v26, %v1785_v4  ;;  %v5355_v36 = vor.u32 %v5975_v63, %v5352_v44 }
 0x229   : > { %v1786_v18 = vpop.f32.mrf.mxu3  ;;  %v1883_v56 = vadd.f32 %v1882_v22, %v1834_v17  ;;  %2592 = vmatpush.bf16.msrb.mxu3 %v5355_v36 }
 0x22a   : > { %v1737_v13 = vpop.f32.mrf.mxu2  ;;  %v1838_v35 = vpop.f32.mrf.mxu0 }
 0x22b   : > { %v1738_v50 = vadd.f32 %v1737_v13, %v7622_v2  ;;  %v1596_v2 = vadd.f32 %v7653_v39, %v7464_v24  ;;  %v1920_v47 = vmax.f32 %v1883_v56, 0.0  ;;  %v5974_v56 = vld [vmem:[%s9097_s6 + $0x24] sm:$0xf0] }
 0x22d   : > { %v1787_v8 = vadd.f32 %v1786_v18, %v1738_v50  ;;  %v1887_v20 = vpop.f32.mrf.mxu1  ;;  %2279 = vmatmul.bf16.gmra.mxu0 %v7663_v6  ;;  %v1645_v39 = vadd.f32 %v7628_v31, %v1596_v2 }
 0x22f   : > { %v1836_v61 = vadd.f32 %v1835_v9, %v1787_v8  ;;  %2181 = vmatmul.bf16.gmra.mxu2 %v7663_v6  ;;  %v1694_v16 = vadd.f32 %v7630_v23, %v1645_v39  ;;  %v1601_v23 = vadd.f32 %v7704_v33, %v7464_v24 }
 0x231   : > { %v1885_v55 = vadd.f32 %v1884_v48, %v1836_v61  ;;  %v1789_v41 = vpop.f32.mrf.mxu3  ;;  %v1650_v33 = vadd.f32 %v7670_v30, %v1601_v23  ;;  %v1611_v23 = vadd.f32 %v7761_v27, %v7464_v24 }
 0x232   : > { %v1740_v19 = vpop.f32.mrf.mxu2  ;;  %v1840_v6 = vpop.f32.mrf.mxu0 }
 0x233   : > { %v1741_v25 = vadd.f32 %v1740_v19, %v7650_v52  ;;  %v1922_v60 = vmax.f32 %v1885_v55, 0.0  ;;  %v5350_v52 = vld [vmem:[%s9097_s6 + $0x30] sm:$0xf]  ;;  %v1699_v38 = vadd.f32 %v7672_v12, %v1650_v33  ;;  %v1606_v12 = vadd.f32 %v7731_v28, %v7464_v24  ;;  %v5973_v19 = vld [vmem:[%s9097_s6 + $0x24] sm:$0xf] }
 0x234   : > { %v5351_v21 = vor.u32 %v5976_v1, %v5350_v52  ;;  %v5971_v1 = vld [vmem:[%s9097_s6 + $0x14] sm:$0xf]  ;;  %v5970_v24 = vld [vmem:[%s9097_s6 + $0x4] sm:$0xf0] }
 0x235   : > { %v1946_v3 = vpack.c.bf16 %v1922_v60, %v1920_v47  ;;  %v1889_v29 = vpop.f32.mrf.mxu1  ;;  %v1790_v26 = vadd.f32 %v1789_v41, %v1741_v25  ;;  %v5347_v41 = vor.u32 %v5973_v19, %v5344_v42  ;;  %v1655_v28 = vadd.f32 %v7724_v0, %v1606_v12  ;;  %v1987_v19 = vld [vmem:[%s9096_s5] sm:$0x3] }
 0x236   : > { %2543 = vmatpush.bf16.msrb.mxu2 %v5351_v21 }
 0x237   : > { %2225 = vmatmul.bf16.gmra.mxu3 %v1946_v3  ;;  %2323 = vmatmul.bf16.gmra.mxu1 %v1946_v3  ;;  %v1839_v22 = vadd.f32 %v1838_v35, %v1790_v26 }
 0x238   : > { %2593 = vmatpush.bf16.msrb.mxu3 %v5347_v41 }
 0x239   : > { %v1791_v57 = vpop.f32.mrf.mxu3  ;;  %v1888_v37 = vadd.f32 %v1887_v20, %v1839_v22 }
 0x23a   : > { %v1742_v54 = vpop.f32.mrf.mxu2  ;;  %v1843_v31 = vpop.f32.mrf.mxu0 }
 0x23b   : > { %v1743_v32 = vadd.f32 %v1742_v54, %v1694_v16  ;;  %v1924_v48 = vmax.f32 %v1888_v37, 0.0  ;;  %v5334_v16 = vld [vmem:[%s9097_s6 + $0x10] sm:$0xf]  ;;  %v5972_v54 = vld [vmem:[%s9097_s6 + $0x14] sm:$0xf0] }
 0x23c   : > { %v5335_v22 = vor.u32 %v5972_v54, %v5334_v16 }
 0x23d   : > { %v1792_v49 = vadd.f32 %v1791_v57, %v1743_v32  ;;  %v1892_v10 = vpop.f32.mrf.mxu1  ;;  %2284 = vmatmul.bf16.gmra.mxu0 %v7717_v14 }
 0x23f   : > { %v1841_v45 = vadd.f32 %v1840_v6, %v1792_v49  ;;  %2186 = vmatmul.bf16.gmra.mxu2 %v7717_v14 }
 0x241   : > { %v1890_v7 = vadd.f32 %v1889_v29, %v1841_v45  ;;  %v1794_v13 = vpop.f32.mrf.mxu3 }
 0x242   : > { %v1745_v9 = vpop.f32.mrf.mxu2  ;;  %v1845_v14 = vpop.f32.mrf.mxu0 }
 0x243   : > { %v1746_v4 = vadd.f32 %v1745_v9, %v7692_v40  ;;  %v1926_v17 = vmax.f32 %v1890_v7, 0.0  ;;  %v5342_v40 = vld [vmem:[%s9097_s6 + $0x20] sm:$0xf] }
 0x244   : > { %v5343_v61 = vor.u32 %v5974_v56, %v5342_v40 }
 0x245   : > { %v1948_v50 = vpack.c.bf16 %v1926_v17, %v1924_v48  ;;  %v1795_v18 = vadd.f32 %v1794_v13, %v1746_v4  ;;  %v1894_v62 = vpop.f32.mrf.mxu1  ;;  %v1660_v13 = vadd.f32 %v7754_v53, %v1611_v23 }
 0x246   : > { %2544 = vmatpush.bf16.msrb.mxu2 %v5343_v61 }
 0x247   : > { %2230 = vmatmul.bf16.gmra.mxu3 %v1948_v50  ;;  %2328 = vmatmul.bf16.gmra.mxu1 %v1948_v50  ;;  %v1844_v11 = vadd.f32 %v1843_v31, %v1795_v18  ;;  %v5336_v31 = vld [vmem:[%s9097_s6 + $0x18] sm:$0xf0] }
 0x249   : > { %v1796_v20 = vpop.f32.mrf.mxu3  ;;  %v1893_v55 = vadd.f32 %v1892_v10, %v1844_v11  ;;  %v5339_v10 = vor.u32 %v5971_v1, %v5336_v31  ;;  %v5969_v11 = vld [vmem:[%s9097_s6 + $0x4] sm:$0xf] }
 0x24a   : > { %v1747_v35 = vpop.f32.mrf.mxu2  ;;  %v1848_v30 = vpop.f32.mrf.mxu0  ;;  %2545 = vmatpush.bf16.msrb.mxu2 %v5335_v22  ;;  %v6093_v1 = vld [vmem:[%s9099_s8 + $0x360] sm:$0xf0] }
 0x24b   : > { %v1748_v8 = vadd.f32 %v1747_v35, %v1699_v38  ;;  %v1928_v60 = vmax.f32 %v1893_v55, 0.0  ;;  %2594 = vmatpush.bf16.msrb.mxu3 %v5339_v10  ;;  %v2381_v31 = vld [vmem:[%s7926_s26] sm:$0xff] }
 0x24d   : > { %v1797_v2 = vadd.f32 %v1796_v20, %v1748_v8  ;;  %2289 = vmatmul.bf16.gmra.mxu0 %v7741_v5  ;;  %v1897_v47 = vpop.f32.mrf.mxu1  ;;  %v5328_v8 = vld [vmem:[%s9097_s6 + $0x8] sm:$0xf0] }
 0x24e   : > { %v5331_v20 = vor.u32 %v5969_v11, %v5328_v8  ;;  %v2383_v11 = vld [vmem:[%s7926_s26 + $0x10] sm:$0xff]  ;;  %v2384_v8 = vld [vmem:[%s7926_s26 + $0x18] sm:$0xff] }
 0x24f   : > { %v1846_v59 = vadd.f32 %v1845_v14, %v1797_v2  ;;  %2191 = vmatmul.bf16.gmra.mxu2 %v7741_v5 }
 0x250   : > { %2595 = vmatpush.bf16.msrb.mxu3 %v5331_v20 }
 0x251   : > { %v1895_v43 = vadd.f32 %v1894_v62, %v1846_v59  ;;  %v1799_v39 = vpop.f32.mrf.mxu3 }
 0x252   : > { %v1750_v25 = vpop.f32.mrf.mxu2  ;;  %v1850_v3 = vpop.f32.mrf.mxu0 }
 0x253   : > { %v1751_v6 = vadd.f32 %v1750_v25, %v7728_v51  ;;  %v1930_v5 = vmax.f32 %v1895_v43, 0.0  ;;  %v1704_v51 = vadd.f32 %v7726_v46, %v1655_v28 }
 0x255   : > { %v1950_v29 = vpack.c.bf16 %v1930_v5, %v1928_v60  ;;  %v1800_v26 = vadd.f32 %v1799_v39, %v1751_v6  ;;  %v1899_v21 = vpop.f32.mrf.mxu1  ;;  %v7917_v39 = vperm.slane %v1987_v19, 0 }
 0x257   : > { %2235 = vmatmul.bf16.gmra.mxu3 %v1950_v29  ;;  %2333 = vmatmul.bf16.gmra.mxu1 %v1950_v29  ;;  %v1849_v57 = vadd.f32 %v1848_v30, %v1800_v26 }
 0x259   : > { %v1801_v0 = vpop.f32.mrf.mxu3  ;;  %v1898_v45 = vadd.f32 %v1897_v47, %v1849_v57  ;;  %v7908_v47 = vperm.slane %v1987_v19, 1  ;;  %v6037_v57 = vld [vmem:[%s9099_s8 + $0x1a0] sm:$0xf0] }
 0x25a   : > { %v1752_v32 = vpop.f32.mrf.mxu2  ;;  %v1853_v49 = vpop.f32.mrf.mxu0 }
 0x25b   : > { %v1753_v52 = vadd.f32 %v1752_v32, %v1704_v51  ;;  %v1932_v44 = vmax.f32 %v1898_v45, 0.0  ;;  %v5586_v32 = vld [vmem:[%s9099_s8 + $0x188] sm:$0xf] }
 0x25d   : > { %v1802_v37 = vadd.f32 %v1801_v0, %v1753_v52  ;;  %2294 = vmatmul.bf16.gmra.mxu0 %v7765_v15  ;;  %v1902_v14 = vpop.f32.mrf.mxu1  ;;  %v5587_v52 = vor.u32 %v6037_v57, %v5586_v32  ;;  %v5810_v0 = vld [vmem:[%s9099_s8 + $0x348] sm:$0xf]  ;;  %v2385_v32 = vld [vmem:[%s7926_s26 + $0x20] sm:$0xff] }
 0x25e   : > { %v2386_v57 = vld [vmem:[%s7926_s26 + $0x28] sm:$0xff] }
 0x25f   : > { %v1851_v46 = vadd.f32 %v1850_v3, %v1802_v37  ;;  %2196 = vmatmul.bf16.gmra.mxu2 %v7765_v15  ;;  %v5326_v15 = vld [vmem:[%s9097_s6] sm:$0xf]  ;;  %3405 = vmatpush.bf16.msrb.mxu0 %v5587_v52 }
 0x260   : > { %v5327_v27 = vor.u32 %v5970_v24, %v5326_v15 }
 0x261   : > { %v1900_v7 = vadd.f32 %v1899_v21, %v1851_v46  ;;  %v1804_v36 = vpop.f32.mrf.mxu3  ;;  %v2382_v21 = vld [vmem:[%s7926_s26 + $0x8] sm:$0xff] }
 0x262   : > { %v1755_v63 = vpop.f32.mrf.mxu2  ;;  %v1855_v4 = vpop.f32.mrf.mxu0  ;;  %2546 = vmatpush.bf16.msrb.mxu2 %v5327_v27 }
 0x263   : > { %v1756_v9 = vadd.f32 %v1755_v63, %v7758_v58  ;;  %v1934_v48 = vmax.f32 %v1900_v7, 0.0  ;;  %v1709_v58 = vadd.f32 %v7756_v34, %v1660_v13 }
 0x265   : > { %v1952_v17 = vpack.c.bf16 %v1934_v48, %v1932_v44  ;;  %v1805_v33 = vadd.f32 %v1804_v36, %v1756_v9  ;;  %v1904_v34 = vpop.f32.mrf.mxu1 }
 0x267   : > { %2240 = vmatmul.bf16.gmra.mxu3 %v1952_v17  ;;  %2338 = vmatmul.bf16.gmra.mxu1 %v1952_v17  ;;  %v1854_v18 = vadd.f32 %v1853_v49, %v1805_v33  ;;  %v5811_v49 = vor.u32 %v6093_v1, %v5810_v0 }
 0x269   : > { %v1806_v62 = vpop.f32.mrf.mxu3  ;;  %v1903_v40 = vadd.f32 %v1902_v14, %v1854_v18  ;;  %3454 = vmatpush.bf16.msrb.mxu1 %v5811_v49  ;;  %v6030_v18 = vld [vmem:[%s9099_s8 + $0x168] sm:$0xf0] }
 0x26a   : > { %v1757_v50 = vpop.f32.mrf.mxu2  ;;  %v2260_v38 = vpop.f32.mrf.mxu0 }
 0x26b   : > { %v1758_v53 = vadd.f32 %v1757_v50, %v1709_v58  ;;  %v1936_v2 = vmax.f32 %v1903_v40, 0.0  ;;  %v2261_v41 = vadd.f32 %v2260_v38, %v7908_v47  ;;  %v5558_v50 = vld [vmem:[%s9099_s8 + $0x150] sm:$0xf] }
 0x26c   : > { %v5782_v38 = vld [vmem:[%s9099_s8 + $0x310] sm:$0xf] }
 0x26d   : > { %v1807_v35 = vadd.f32 %v1806_v62, %v1758_v53  ;;  %v5559_v62 = vor.u32 %v6030_v18, %v5558_v50  ;;  %v2387_v50 = vld [vmem:[%s7926_s26 + $0x30] sm:$0xff]  ;;  %v2388_v18 = vld [vmem:[%s7926_s26 + $0x38] sm:$0xff] }
 0x26f   : > { %v1856_v56 = vadd.f32 %v1855_v4, %v1807_v35  ;;  %v6086_v35 = vld [vmem:[%s9099_s8 + $0x328] sm:$0xf0]  ;;  %3406 = vmatpush.bf16.msrb.mxu0 %v5559_v62 }
 0x270   : > { %v5783_v20 = vor.u32 %v6086_v35, %v5782_v38 }
 0x271   : > { %v1905_v30 = vadd.f32 %v1904_v34, %v1856_v56 }
 0x272   : > { %v2162_v61 = vpop.f32.mrf.mxu2  ;;  %v2262_v59 = vpop.f32.mrf.mxu0  ;;  %3455 = vmatpush.bf16.msrb.mxu1 %v5783_v20 }
 0x273   : > { %v1938_v55 = vmax.f32 %v1905_v30, 0.0  ;;  %v2163_v3 = vadd.f32 %v2162_v61, %v7917_v39  ;;  %v2263_v26 = vadd.f32 %v2262_v59, %v7908_v47 }
 0x275   : > { %v1954_v12 = vpack.c.bf16 %v1938_v55, %v1936_v2 }
 0x277   : > { %2245 = vmatmul.bf16.gmra.mxu3 %v1954_v12  ;;  %2343 = vmatmul.bf16.gmra.mxu1 %v1954_v12 }
 0x27a   : > { %v2164_v43 = vpop.f32.mrf.mxu2  ;;  %v2265_v42 = vpop.f32.mrf.mxu0 }
 0x27b   : > { %v2165_v10 = vadd.f32 %v2164_v43, %v7917_v39  ;;  %v2266_v46 = vadd.f32 %v2265_v42, %v7908_v47 }
 0x282   : > { %v2167_v25 = vpop.f32.mrf.mxu2  ;;  %v2267_v60 = vpop.f32.mrf.mxu0 }
 0x283   : > { %v2168_v17 = vadd.f32 %v2167_v25, %v7917_v39  ;;  %v2268_v15 = vadd.f32 %v2267_v60, %v7908_v47 }
 0x284   : > { %v2309_v6 = vpop.f32.mrf.mxu1 }
 0x285   : > { %v2310_v5 = vadd.f32 %v2309_v6, %v2261_v41 }
 0x287   : > { %2350 = vst [vmem:[%s7915_s23 + $0x8] sm:$0xff] %v2310_v5  ;;  %v2397_v23 = vmul.f32 %v2381_v31, %v2310_v5 }
 0x28a   : > { %v2169_v28 = vpop.f32.mrf.mxu2  ;;  %v2211_v29 = vpop.f32.mrf.mxu3 }
 0x28b   : > { %v2212_v16 = vadd.f32 %v2211_v29, %v2163_v3  ;;  %v2270_v54 = vpop.f32.mrf.mxu0  ;;  %v2170_v40 = vadd.f32 %v2169_v28, %v7917_v39  ;;  %v5530_v29 = vld [vmem:[%s9099_s8 + $0x118] sm:$0xf] }
 0x28c   : > { %v2311_v22 = vpop.f32.mrf.mxu1  ;;  %v2271_v34 = vadd.f32 %v2270_v54, %v7908_v47 }
 0x28d   : > { %2349 = vst [vmem:[%s7915_s23] sm:$0xff] %v2212_v16  ;;  %v2312_v51 = vadd.f32 %v2311_v22, %v2263_v26  ;;  %v2413_v36 = vadd.f32 %v2397_v23, %v2212_v16  ;;  %v6023_v26 = vld [vmem:[%s9099_s8 + $0x130] sm:$0xf0]  ;;  %v5754_v22 = vld [vmem:[%s9099_s8 + $0x2d8] sm:$0xf] }
 0x28e   : > { %v5531_v54 = vor.u32 %v6023_v26, %v5530_v29  ;;  %v2389_v26 = vld [vmem:[%s7926_s26 + $0x40] sm:$0xff] }
 0x28f   : > { %2352 = vst [vmem:[%s7915_s23 + $0x18] sm:$0xff] %v2312_v51  ;;  %v2398_v7 = vmul.f32 %v2382_v21, %v2312_v51  ;;  %v6079_v51 = vld [vmem:[%s9099_s8 + $0x2f0] sm:$0xf0] }
 0x290   : > { %3407 = vmatpush.bf16.msrb.mxu0 %v5531_v54  ;;  %v5755_v52 = vor.u32 %v6079_v51, %v5754_v22 }
 0x292   : > { %v2172_v37 = vpop.f32.mrf.mxu2  ;;  %v2213_v45 = vpop.f32.mrf.mxu3  ;;  %3456 = vmatpush.bf16.msrb.mxu1 %v5755_v52 }
 0x293   : > { %v2214_v63 = vadd.f32 %v2213_v45, %v2165_v10  ;;  %v2272_v44 = vpop.f32.mrf.mxu0  ;;  %v2173_v41 = vadd.f32 %v2172_v37, %v7917_v39 }
 0x294   : > { %v2314_v9 = vpop.f32.mrf.mxu1  ;;  %v2273_v6 = vadd.f32 %v2272_v44, %v7908_v47 }
 0x295   : > { %2351 = vst [vmem:[%s7915_s23 + $0x10] sm:$0xff] %v2214_v63  ;;  %v2414_v48 = vadd.f32 %v2398_v7, %v2214_v63  ;;  %v2315_v4 = vadd.f32 %v2314_v9, %v2266_v46 }
 0x297   : > { %v2429_v13 = vpack.c.bf16 %v2414_v48, %v2413_v36  ;;  %2354 = vst [vmem:[%s7915_s23 + $0x28] sm:$0xff] %v2315_v4  ;;  %v2399_v30 = vmul.f32 %v2383_v11, %v2315_v4 }
 0x299   : > { %2547 = vmatmul.bf16.vlgmr.msrb.gmra.mxu2 %v2429_v13  ;;  %2596 = vmatmul.bf16.vlgmr.msrb.gmra.mxu3 %v2429_v13 }
 0x29a   : > { %v2174_v14 = vpop.f32.mrf.mxu2  ;;  %v2216_v33 = vpop.f32.mrf.mxu3 }
 0x29b   : > { %v2217_v24 = vadd.f32 %v2216_v33, %v2168_v17  ;;  %v2275_v53 = vpop.f32.mrf.mxu0  ;;  %v2175_v0 = vadd.f32 %v2174_v14, %v7917_v39  ;;  %v5502_v33 = vld [vmem:[%s9099_s8 + $0xe0] sm:$0xf] }
 0x29c   : > { %v2316_v27 = vpop.f32.mrf.mxu1  ;;  %v2276_v21 = vadd.f32 %v2275_v53, %v7908_v47 }
 0x29d   : > { %2353 = vst [vmem:[%s7915_s23 + $0x20] sm:$0xff] %v2217_v24  ;;  %v2317_v58 = vadd.f32 %v2316_v27, %v2268_v15  ;;  %v2415_v12 = vadd.f32 %v2399_v30, %v2217_v24  ;;  %v6016_v15 = vld [vmem:[%s9099_s8 + $0xf8] sm:$0xf0]  ;;  %v5726_v27 = vld [vmem:[%s9099_s8 + $0x2a0] sm:$0xf] }
 0x29e   : > { %v5503_v24 = vor.u32 %v6016_v15, %v5502_v33  ;;  %v2391_v33 = vld [vmem:[%s7926_s26 + $0x50] sm:$0xff]  ;;  %v2392_v15 = vld [vmem:[%s7926_s26 + $0x58] sm:$0xff] }
 0x29f   : > { %2356 = vst [vmem:[%s7915_s23 + $0x38] sm:$0xff] %v2317_v58  ;;  %v2400_v61 = vmul.f32 %v2384_v8, %v2317_v58  ;;  %v6072_v58 = vld [vmem:[%s9099_s8 + $0x2b8] sm:$0xf0] }
 0x2a0   : > { %3408 = vmatpush.bf16.msrb.mxu0 %v5503_v24  ;;  %v5727_v53 = vor.u32 %v6072_v58, %v5726_v27 }
 0x2a2   : > { %v2218_v56 = vpop.f32.mrf.mxu3  ;;  %v2177_v55 = vpop.f32.mrf.mxu2  ;;  %3457 = vmatpush.bf16.msrb.mxu1 %v5727_v53 }
 0x2a3   : > { %v2219_v2 = vadd.f32 %v2218_v56, %v2170_v40  ;;  %v2277_v25 = vpop.f32.mrf.mxu0  ;;  %v2178_v9 = vadd.f32 %v2177_v55, %v7917_v39 }
 0x2a4   : > { %v2319_v59 = vpop.f32.mrf.mxu1  ;;  %v2278_v48 = vadd.f32 %v2277_v25, %v7908_v47 }
 0x2a5   : > { %2355 = vst [vmem:[%s7915_s23 + $0x30] sm:$0xff] %v2219_v2  ;;  %v2416_v43 = vadd.f32 %v2400_v61, %v2219_v2  ;;  %v2320_v19 = vadd.f32 %v2319_v59, %v2271_v34 }
 0x2a7   : > { %2358 = vst [vmem:[%s7915_s23 + $0x48] sm:$0xff] %v2320_v19  ;;  %v2430_v42 = vpack.c.bf16 %v2416_v43, %v2415_v12  ;;  %v2401_v49 = vmul.f32 %v2385_v32, %v2320_v19 }
 0x2a9   : > { %2552 = vmatmul.bf16.gmra.mxu2 %v2430_v42  ;;  %2601 = vmatmul.bf16.gmra.mxu3 %v2430_v42 }
 0x2aa   : > { %v2221_v60 = vpop.f32.mrf.mxu3  ;;  %v2179_v16 = vpop.f32.mrf.mxu2 }
 0x2ab   : > { %v2222_v5 = vadd.f32 %v2221_v60, %v2173_v41  ;;  %v2280_v1 = vpop.f32.mrf.mxu0  ;;  %v2180_v62 = vadd.f32 %v2179_v16, %v7917_v39  ;;  %v5474_v60 = vld [vmem:[%s9099_s8 + $0xa8] sm:$0xf] }
 0x2ac   : > { %v2321_v3 = vpop.f32.mrf.mxu1  ;;  %v2281_v11 = vadd.f32 %v2280_v1, %v7908_v47  ;;  %v2390_v16 = vld [vmem:[%s7926_s26 + $0x48] sm:$0xff] }
 0x2ad   : > { %2357 = vst [vmem:[%s7915_s23 + $0x40] sm:$0xff] %v2222_v5  ;;  %v2322_v28 = vadd.f32 %v2321_v3, %v2273_v6  ;;  %v2417_v46 = vadd.f32 %v2401_v49, %v2222_v5  ;;  %v6009_v6 = vld [vmem:[%s9099_s8 + $0xc0] sm:$0xf0]  ;;  %v5698_v3 = vld [vmem:[%s9099_s8 + $0x268] sm:$0xf] }
 0x2ae   : > { %v5475_v5 = vor.u32 %v6009_v6, %v5474_v60  ;;  %v5642_v6 = vld [vmem:[%s9099_s8 + $0x1f8] sm:$0xf] }
 0x2af   : > { %2360 = vst [vmem:[%s7915_s23 + $0x58] sm:$0xff] %v2322_v28  ;;  %v2402_v10 = vmul.f32 %v2386_v57, %v2322_v28  ;;  %v6065_v28 = vld [vmem:[%s9099_s8 + $0x280] sm:$0xf0] }
 0x2b0   : > { %3409 = vmatpush.bf16.msrb.mxu0 %v5475_v5  ;;  %v5699_v54 = vor.u32 %v6065_v28, %v5698_v3  ;;  %v6051_v5 = vld [vmem:[%s9099_s8 + $0x210] sm:$0xf0] }
 0x2b1   : > { %v6027_v3 = vld [vmem:[%s9099_s8 + $0x154] sm:$0xf] }
 0x2b2   : > { %v2223_v31 = vpop.f32.mrf.mxu3  ;;  %v2182_v44 = vpop.f32.mrf.mxu2  ;;  %3458 = vmatpush.bf16.msrb.mxu1 %v5699_v54  ;;  %v5784_v54 = vld [vmem:[%s9099_s8 + $0x32c] sm:$0xf0] }
 0x2b3   : > { %v2224_v37 = vadd.f32 %v2223_v31, %v2175_v0  ;;  %v2282_v13 = vpop.f32.mrf.mxu0  ;;  %v2183_v59 = vadd.f32 %v2182_v44, %v7917_v39 }
 0x2b4   : > { %v2324_v45 = vpop.f32.mrf.mxu1  ;;  %v2283_v43 = vadd.f32 %v2282_v13, %v7908_v47  ;;  %v5670_v13 = vld [vmem:[%s9099_s8 + $0x230] sm:$0xf] }
 0x2b5   : > { %2359 = vst [vmem:[%s7915_s23 + $0x50] sm:$0xff] %v2224_v37  ;;  %v2418_v23 = vadd.f32 %v2402_v10, %v2224_v37  ;;  %v2325_v7 = vadd.f32 %v2324_v45, %v2276_v21 }
 0x2b7   : > { %2362 = vst [vmem:[%s7915_s23 + $0x68] sm:$0xff] %v2325_v7  ;;  %v2431_v63 = vpack.c.bf16 %v2418_v23, %v2417_v46  ;;  %v2403_v8 = vmul.f32 %v2387_v50, %v2325_v7 }
 0x2b9   : > { %2557 = vmatmul.bf16.gmra.mxu2 %v2431_v63  ;;  %2606 = vmatmul.bf16.gmra.mxu3 %v2431_v63 }
 0x2ba   : > { %v2226_v36 = vpop.f32.mrf.mxu3  ;;  %v2184_v38 = vpop.f32.mrf.mxu2 }
 0x2bb   : > { %v2227_v4 = vadd.f32 %v2226_v36, %v2178_v9  ;;  %v2285_v2 = vpop.f32.mrf.mxu0  ;;  %v2185_v22 = vadd.f32 %v2184_v38, %v7917_v39  ;;  %v5446_v36 = vld [vmem:[%s9099_s8 + $0x70] sm:$0xf] }
 0x2bc   : > { %v2326_v17 = vpop.f32.mrf.mxu1  ;;  %v2286_v32 = vadd.f32 %v2285_v2, %v7908_v47 }
 0x2bd   : > { %2361 = vst [vmem:[%s7915_s23 + $0x60] sm:$0xff] %v2227_v4  ;;  %v2327_v14 = vadd.f32 %v2326_v17, %v2278_v48  ;;  %v2419_v34 = vadd.f32 %v2403_v8, %v2227_v4  ;;  %v6002_v48 = vld [vmem:[%s9099_s8 + $0x88] sm:$0xf0] }
 0x2be   : > { %v5447_v4 = vor.u32 %v6002_v48, %v5446_v36  ;;  %v6058_v17 = vld [vmem:[%s9099_s8 + $0x248] sm:$0xf0] }
 0x2bf   : > { %2364 = vst [vmem:[%s7915_s23 + $0x78] sm:$0xff] %v2327_v14  ;;  %v2404_v20 = vmul.f32 %v2388_v18, %v2327_v14  ;;  %v5671_v24 = vor.u32 %v6058_v17, %v5670_v13  ;;  %v5504_v13 = vld [vmem:[%s9099_s8 + $0xfc] sm:$0xf0]  ;;  %v6069_v17 = vld [vmem:[%s9099_s8 + $0x2a4] sm:$0xf] }
 0x2c0   : > { %3410 = vmatpush.bf16.msrb.mxu0 %v5447_v4 }
 0x2c1   : > { %3459 = vmatpush.bf16.msrb.mxu1 %v5671_v24 }
 0x2c2   : > { %v2228_v35 = vpop.f32.mrf.mxu3  ;;  %v2187_v42 = vpop.f32.mrf.mxu2 }
 0x2c3   : > { %v2229_v40 = vadd.f32 %v2228_v35, %v2180_v62  ;;  %v2287_v29 = vpop.f32.mrf.mxu0  ;;  %v2188_v45 = vadd.f32 %v2187_v42, %v7917_v39 }
 0x2c4   : > { %v2329_v56 = vpop.f32.mrf.mxu1  ;;  %v2288_v7 = vadd.f32 %v2287_v29, %v7908_v47  ;;  %v5643_v29 = vor.u32 %v6051_v5, %v5642_v6  ;;  %v5672_v5 = vld [vmem:[%s9099_s8 + $0x24c] sm:$0xf0] }
 0x2c5   : > { %2363 = vst [vmem:[%s7915_s23 + $0x70] sm:$0xff] %v2229_v40  ;;  %v2420_v30 = vadd.f32 %v2404_v20, %v2229_v40  ;;  %v2330_v61 = vadd.f32 %v2329_v56, %v2281_v11 }
 0x2c6   : > { %3460 = vmatpush.bf16.msrb.mxu1 %v5643_v29 }
 0x2c7   : > { %2366 = vst [vmem:[%s7915_s23 + $0x88] sm:$0xff] %v2330_v61  ;;  %v2432_v55 = vpack.c.bf16 %v2420_v30, %v2419_v34  ;;  %v2405_v57 = vmul.f32 %v2389_v26, %v2330_v61  ;;  %v5418_v34 = vld [vmem:[%s9099_s8 + $0x38] sm:$0xf]  ;;  %v5995_v30 = vld [vmem:[%s9099_s8 + $0x50] sm:$0xf0] }
 0x2c8   : > { %v6034_v61 = vld [vmem:[%s9099_s8 + $0x18c] sm:$0xf]  ;;  %v5560_v26 = vld [vmem:[%s9099_s8 + $0x16c] sm:$0xf0] }
 0x2c9   : > { %2562 = vmatmul.bf16.gmra.mxu2 %v2432_v55  ;;  %2611 = vmatmul.bf16.gmra.mxu3 %v2432_v55 }
 0x2ca   : > { %v2231_v12 = vpop.f32.mrf.mxu3  ;;  %v2189_v10 = vpop.f32.mrf.mxu2 }
 0x2cb   : > { %v2232_v19 = vadd.f32 %v2231_v12, %v2183_v59  ;;  %v2290_v46 = vpop.f32.mrf.mxu0  ;;  %v2190_v27 = vadd.f32 %v2189_v10, %v7917_v39  ;;  %v5419_v59 = vor.u32 %v5995_v30, %v5418_v34  ;;  %v5588_v12 = vld [vmem:[%s9099_s8 + $0x1a4] sm:$0xf0] }
 0x2cc   : > { %v2331_v25 = vpop.f32.mrf.mxu1  ;;  %v2291_v50 = vadd.f32 %v2290_v46, %v7908_v47  ;;  %v2394_v10 = vld [vmem:[%s7926_s26 + $0x68] sm:$0xff] }
 0x2cd   : > { %2365 = vst [vmem:[%s7915_s23 + $0x80] sm:$0xff] %v2232_v19  ;;  %v2332_v41 = vadd.f32 %v2331_v25, %v2283_v43  ;;  %v2421_v31 = vadd.f32 %v2405_v57, %v2232_v19  ;;  %v6090_v43 = vld [vmem:[%s9099_s8 + $0x34c] sm:$0xf]  ;;  %v5812_v19 = vld [vmem:[%s9099_s8 + $0x364] sm:$0xf0]  ;;  %3411 = vmatpush.bf16.msrb.mxu0 %v5419_v59 }
 0x2ce   : > { %v5815_v60 = vor.u32 %v6090_v43, %v5812_v19  ;;  %v5700_v30 = vld [vmem:[%s9099_s8 + $0x284] sm:$0xf0]  ;;  %v6055_v43 = vld [vmem:[%s9099_s8 + $0x234] sm:$0xf]  ;;  %v5614_v19 = vld [vmem:[%s9099_s8 + $0x1c0] sm:$0xf] }
 0x2cf   : > { %2368 = vst [vmem:[%s7915_s23 + $0x98] sm:$0xff] %v2332_v41  ;;  %v2406_v52 = vmul.f32 %v2390_v16, %v2332_v41  ;;  %v5591_v41 = vor.u32 %v6034_v61, %v5588_v12  ;;  %v6083_v16 = vld [vmem:[%s9099_s8 + $0x314] sm:$0xf] }
 0x2d0   : > { %3552 = vmatpush.bf16.msra.mxu3 %v5815_v60  ;;  %v5999_v12 = vld [vmem:[%s9099_s8 + $0x74] sm:$0xf]  ;;  %v2396_v60 = vld [vmem:[%s7926_s26 + $0x78] sm:$0xff] }
 0x2d1   : > { %3503 = vmatpush.bf16.msra.mxu2 %v5591_v41  ;;  %v2395_v41 = vld [vmem:[%s7926_s26 + $0x70] sm:$0xff] }
 0x2d2   : > { %v2233_v51 = vpop.f32.mrf.mxu3  ;;  %v2192_v14 = vpop.f32.mrf.mxu2 }
 0x2d3   : > { %v2234_v0 = vadd.f32 %v2233_v51, %v2185_v22  ;;  %v2292_v38 = vpop.f32.mrf.mxu0  ;;  %v2193_v56 = vadd.f32 %v2192_v14, %v7917_v39  ;;  %v5563_v51 = vor.u32 %v6027_v3, %v5560_v26  ;;  %v5728_v14 = vld [vmem:[%s9099_s8 + $0x2bc] sm:$0xf0]  ;;  %v5992_v26 = vld [vmem:[%s9099_s8 + $0x3c] sm:$0xf] }
 0x2d4   : > { %v2334_v1 = vpop.f32.mrf.mxu1  ;;  %v2293_v42 = vadd.f32 %v2292_v38, %v7908_v47 }
 0x2d5   : > { %2367 = vst [vmem:[%s7915_s23 + $0x90] sm:$0xff] %v2234_v0  ;;  %v2422_v21 = vadd.f32 %v2406_v52, %v2234_v0  ;;  %v2335_v49 = vadd.f32 %v2334_v1, %v2286_v32  ;;  %v6020_v32 = vld [vmem:[%s9099_s8 + $0x11c] sm:$0xf]  ;;  %v5787_v52 = vor.u32 %v6083_v16, %v5784_v54  ;;  %v5532_v0 = vld [vmem:[%s9099_s8 + $0x134] sm:$0xf0]  ;;  %3504 = vmatpush.bf16.msra.mxu2 %v5563_v51 }
 0x2d6   : > { %v6076_v1 = vld [vmem:[%s9099_s8 + $0x2dc] sm:$0xf]  ;;  %v5535_v46 = vor.u32 %v6020_v32, %v5532_v0  ;;  %v5420_v16 = vld [vmem:[%s9099_s8 + $0x54] sm:$0xf0] }
 0x2d7   : > { %2370 = vst [vmem:[%s7915_s23 + $0xa8] sm:$0xff] %v2335_v49  ;;  %v2433_v37 = vpack.c.bf16 %v2422_v21, %v2421_v31  ;;  %v2407_v18 = vmul.f32 %v2391_v33, %v2335_v49  ;;  %v5756_v31 = vld [vmem:[%s9099_s8 + $0x2f4] sm:$0xf0]  ;;  %v2393_v21 = vld [vmem:[%s7926_s26 + $0x60] sm:$0xff]  ;;  %3553 = vmatpush.bf16.msra.mxu3 %v5787_v52  ;;  %v6048_v54 = vld [vmem:[%s9099_s8 + $0x1fc] sm:$0xf]  ;;  %v5423_v32 = vor.u32 %v5992_v26, %v5420_v16  ;;  %s8555_s26 = scalar_lea.vmem %s9101_s10, %s6114_s19 }
 0x2d9   : > { %2567 = vmatmul.bf16.gmra.mxu2 %v2433_v37  ;;  %2616 = vmatmul.bf16.gmra.mxu3 %v2433_v37  ;;  %v5390_v37 = vld [vmem:[%s9099_s8] sm:$0xf] }
 0x2da   : > { %v2236_v23 = vpop.f32.mrf.mxu3  ;;  %v2194_v2 = vpop.f32.mrf.mxu2  ;;  %3505 = vmatpush.bf16.msra.mxu2 %v5535_v46 }
 0x2db   : > { %v2237_v63 = vadd.f32 %v2236_v23, %v2188_v45  ;;  %v2295_v57 = vpop.f32.mrf.mxu0  ;;  %v2195_v49 = vadd.f32 %v2194_v2, %v7917_v39  ;;  %v5988_v45 = vld [vmem:[%s9099_s8 + $0x18] sm:$0xf0]  ;;  %v5759_v23 = vor.u32 %v6076_v1, %v5756_v31  ;;  %v5985_v31 = vld [vmem:[%s9099_s8 + $0x4] sm:$0xf] }
 0x2dc   : > { %v2336_v44 = vpop.f32.mrf.mxu1 }
 0x2dd   : > { %2369 = vst [vmem:[%s7915_s23 + $0xa0] sm:$0xff] %v2237_v63  ;;  %v2337_v9 = vadd.f32 %v2336_v44, %v2288_v7  ;;  %v2423_v11 = vadd.f32 %v2407_v18, %v2237_v63  ;;  %v5391_v7 = vor.u32 %v5988_v45, %v5390_v37  ;;  %v6013_v44 = vld [vmem:[%s9099_s8 + $0xe4] sm:$0xf]  ;;  %3554 = vmatpush.bf16.msra.mxu3 %v5759_v23  ;;  %v5616_v45 = vld [vmem:[%s9099_s8 + $0x1dc] sm:$0xf0] }
 0x2de   : > { %v5731_v18 = vor.u32 %v6069_v17, %v5728_v14  ;;  %v5594_v23 = vld [vmem:[%s9099_s8 + $0x190] sm:$0xf]  ;;  %v5566_v17 = vld [vmem:[%s9099_s8 + $0x158] sm:$0xf]  ;;  %v6031_v14 = vld [vmem:[%s9099_s8 + $0x170] sm:$0xf0] }
 0x2df   : > { %2372 = vst [vmem:[%s7915_s23 + $0xb8] sm:$0xff] %v2337_v9  ;;  %v2408_v53 = vmul.f32 %v2392_v15, %v2337_v9  ;;  %v2296_v9 = vadd.f32 %v2295_v57, %v7908_v47  ;;  %3412 = vmatpush.bf16.msrb.mxu0 %v5391_v7  ;;  %v5644_v57 = vld [vmem:[%s9099_s8 + $0x214] sm:$0xf0]  ;;  %v6038_v7 = vld [vmem:[%s9099_s8 + $0x1a8] sm:$0xf0] }
 0x2e0   : > { %v5647_v52 = vor.u32 %v6048_v54, %v5644_v57 }
 0x2e1   : > { %3555 = vmatpush.bf16.msra.mxu3 %v5731_v18 }
 0x2e2   : > { %v2238_v58 = vpop.f32.mrf.mxu3  ;;  %v2197_v33 = vpop.f32.mrf.mxu2 }
 0x2e3   : > { %v2239_v62 = vadd.f32 %v2238_v58, %v2190_v27  ;;  %v2198_v38 = vadd.f32 %v2197_v33, %v7917_v39  ;;  %v5567_v33 = vor.u32 %v6031_v14, %v5566_v17  ;;  %v5706_v14 = vld [vmem:[%s9099_s8 + $0x270] sm:$0xf] }
 0x2e4   : > { %v2339_v35 = vpop.f32.mrf.mxu1 }
 0x2e5   : > { %2371 = vst [vmem:[%s7915_s23 + $0xb0] sm:$0xff] %v2239_v62  ;;  %v2424_v8 = vadd.f32 %v2408_v53, %v2239_v62  ;;  %v2340_v20 = vadd.f32 %v2339_v35, %v2291_v50  ;;  %v5507_v50 = vor.u32 %v6013_v44, %v5504_v13  ;;  %v2297_v62 = vpop.f32.mrf.mxu0  ;;  %v5818_v44 = vld [vmem:[%s9099_s8 + $0x350] sm:$0xf] }
 0x2e7   : > { %2374 = vst [vmem:[%s7915_s23 + $0xc8] sm:$0xff] %v2340_v20  ;;  %v2434_v40 = vpack.c.bf16 %v2424_v8, %v2423_v11  ;;  %v2409_v36 = vmul.f32 %v2393_v21, %v2340_v20  ;;  %3506 = vmatpush.bf16.msra.mxu2 %v5507_v50  ;;  %v6006_v11 = vld [vmem:[%s9099_s8 + $0xac] sm:$0xf]  ;;  %v5476_v8 = vld [vmem:[%s9099_s8 + $0xc4] sm:$0xf0] }
 0x2e8   : > { %v6062_v20 = vld [vmem:[%s9099_s8 + $0x26c] sm:$0xf]  ;;  %v5479_v34 = vor.u32 %v6006_v11, %v5476_v8  ;;  %v5392_v21 = vld [vmem:[%s9099_s8 + $0x1c] sm:$0xf0] }
 0x2e9   : > { %2572 = vmatmul.bf16.gmra.mxu2 %v2434_v40  ;;  %2621 = vmatmul.bf16.gmra.mxu3 %v2434_v40  ;;  %v2298_v40 = vadd.f32 %v2297_v62, %v7908_v47  ;;  %v5703_v2 = vor.u32 %v6062_v20, %v5700_v30  ;;  %v5448_v47 = vld [vmem:[%s9099_s8 + $0x8c] sm:$0xf0]  ;;  %v5395_v37 = vor.u32 %v5985_v31, %v5392_v21 }
 0x2ea   : > { %v2241_v55 = vpop.f32.mrf.mxu3  ;;  %v2199_v59 = vpop.f32.mrf.mxu2 }
 0x2eb   : > { %v2242_v25 = vadd.f32 %v2241_v55, %v2193_v56  ;;  %3507 = vmatpush.bf16.msra.mxu2 %v5479_v34  ;;  %3556 = vmatpush.bf16.msra.mxu3 %v5703_v2  ;;  %v2200_v3 = vadd.f32 %v2199_v59, %v7917_v39  ;;  %v6024_v59 = vld [vmem:[%s9099_s8 + $0x138] sm:$0xf0] }
 0x2ec   : > { %v2341_v28 = vpop.f32.mrf.mxu1 }
 0x2ed   : > { %2373 = vst [vmem:[%s7915_s23 + $0xc0] sm:$0xff] %v2242_v25  ;;  %v2342_v22 = vadd.f32 %v2341_v28, %v2293_v42  ;;  %v2425_v24 = vadd.f32 %v2409_v36, %v2242_v25  ;;  %v6044_v42 = vld [vmem:[%s9099_s8 + $0x1d8] sm:$0xf0]  ;;  %v5451_v25 = vor.u32 %v5999_v12, %v5448_v47  ;;  %v5675_v28 = vor.u32 %v6055_v43, %v5672_v5  ;;  %v5762_v47 = vld [vmem:[%s9099_s8 + $0x2e0] sm:$0xf] }
 0x2ee   : > { %v5615_v6 = vor.u32 %v6044_v42, %v5614_v19  ;;  %v6080_v43 = vld [vmem:[%s9099_s8 + $0x2f8] sm:$0xf0] }
 0x2ef   : > { %2376 = vst [vmem:[%s7915_s23 + $0xd8] sm:$0xff] %v2342_v22  ;;  %v2410_v48 = vmul.f32 %v2394_v10, %v2342_v22  ;;  %3508 = vmatpush.bf16.msra.mxu2 %v5451_v25  ;;  %3557 = vmatpush.bf16.msra.mxu3 %v5675_v28  ;;  %v5763_v19 = vor.u32 %v6080_v43, %v5762_v47  ;;  %v5678_v47 = vld [vmem:[%s9099_s8 + $0x238] sm:$0xf]  ;;  %v6059_v43 = vld [vmem:[%s9099_s8 + $0x250] sm:$0xf0] }
 0x2f0   : > { %3461 = vmatpush.bf16.msrb.mxu1 %v5615_v6 }
 0x2f2   : > { %v2243_v63 = vpop.f32.mrf.mxu3 }
 0x2f3   : > { %v2244_v4 = vadd.f32 %v2243_v63, %v2195_v49  ;;  %3509 = vmatpush.bf16.msra.mxu2 %v5423_v32  ;;  %v6041_v49 = vld [vmem:[%s9099_s8 + $0x1c4] sm:$0xf]  ;;  %3558 = vmatpush.bf16.msra.mxu3 %v5647_v52  ;;  %v5595_v63 = vor.u32 %v6038_v7, %v5594_v23  ;;  %v5734_v52 = vld [vmem:[%s9099_s8 + $0x2a8] sm:$0xf] }
 0x2f4   : > { %v2344_v15 = vpop.f32.mrf.mxu1  ;;  %v5619_v46 = vor.u32 %v6041_v49, %v5616_v45  ;;  %v6017_v32 = vld [vmem:[%s9099_s8 + $0x100] sm:$0xf0] }
 0x2f5   : > { %2375 = vst [vmem:[%s7915_s23 + $0xd0] sm:$0xff] %v2244_v4  ;;  %v2426_v27 = vadd.f32 %v2410_v48, %v2244_v4  ;;  %v2345_v58 = vadd.f32 %v2344_v15, %v2296_v9  ;;  %3601 = vmatpush.bf16.msra.mxu0 %v5595_v63  ;;  %v6094_v9 = vld [vmem:[%s9099_s8 + $0x368] sm:$0xf0]  ;;  %v2453_v48 = vld [vmem:[%s9098_s7] sm:$0x3] }
 0x2f6   : > { %v5819_v36 = vor.u32 %v6094_v9, %v5818_v44  ;;  %v8217_v15 = vperm.slane %v2453_v48, 0 }
 0x2f7   : > { %2378 = vst [vmem:[%s7915_s23 + $0xe8] sm:$0xff] %v2345_v58  ;;  %v2435_v53 = vpack.c.bf16 %v2426_v27, %v2425_v24  ;;  %v2411_v22 = vmul.f32 %v2395_v41, %v2345_v58  ;;  %3510 = vmatpush.bf16.msra.mxu2 %v5395_v37  ;;  %3559 = vmatpush.bf16.msra.mxu3 %v5619_v46  ;;  %v8219_v24 = vperm.slane %v2453_v48, 1  ;;  %v5790_v27 = vld [vmem:[%s9099_s8 + $0x318] sm:$0xf]  ;;  %v6087_v58 = vld [vmem:[%s9099_s8 + $0x330] sm:$0xf0] }
 0x2f8   : > { %3650 = vmatpush.bf16.msra.mxu1 %v5819_v36  ;;  %v5791_v50 = vor.u32 %v6087_v58, %v5790_v27 }
 0x2f9   : > { %2577 = vmatmul.bf16.gmra.mxu2 %v2435_v53  ;;  %2626 = vmatmul.bf16.gmra.mxu3 %v2435_v53 }
 0x2fa   : > { %v2246_v35 = vpop.f32.mrf.mxu3  ;;  %3602 = vmatpush.bf16.msra.mxu0 %v5567_v33  ;;  %v6066_v33 = vld [vmem:[%s9099_s8 + $0x288] sm:$0xf0] }
 0x2fb   : > { %v2247_v56 = vadd.f32 %v2246_v35, %v2198_v38  ;;  %v5707_v27 = vor.u32 %v6066_v33, %v5706_v14  ;;  %v6021_v14 = vld [vmem:[%s9099_s8 + $0x124] sm:$0xf]  ;;  %v5540_v33 = vld [vmem:[%s9099_s8 + $0x13c] sm:$0xf0] }
 0x2fc   : > { %v2346_v61 = vpop.f32.mrf.mxu1  ;;  %3651 = vmatpush.bf16.msra.mxu1 %v5791_v50 }
 0x2fd   : > { %2377 = vst [vmem:[%s7915_s23 + $0xe0] sm:$0xff] %v2247_v56  ;;  %v2347_v55 = vadd.f32 %v2346_v61, %v2298_v40  ;;  %v2427_v0 = vadd.f32 %v2411_v22, %v2247_v56 }
 0x2ff   : > { %2380 = vst [vmem:[%s7915_s23 + $0xf8] sm:$0xff] %v2347_v55  ;;  %v2412_v51 = vmul.f32 %v2396_v60, %v2347_v55  ;;  %v5538_v55 = vld [vmem:[%s9099_s8 + $0x120] sm:$0xf] }
 0x300   : > { %v5539_v12 = vor.u32 %v6024_v59, %v5538_v55  ;;  %3652 = vmatpush.bf16.msra.mxu1 %v5763_v19  ;;  %v5454_v55 = vld [vmem:[%s9099_s8 + $0x78] sm:$0xf]  ;;  %v6003_v59 = vld [vmem:[%s9099_s8 + $0x90] sm:$0xf0]  ;;  %v5679_v19 = vor.u32 %v6059_v43, %v5678_v47  ;;  %v5736_v43 = vld [vmem:[%s9099_s8 + $0x2c4] sm:$0xf0] }
 0x302   : > { %v2248_v29 = vpop.f32.mrf.mxu3  ;;  %3603 = vmatpush.bf16.msra.mxu0 %v5539_v12  ;;  %v5455_v12 = vor.u32 %v6003_v59, %v5454_v55 }
 0x303   : > { %v2249_v39 = vadd.f32 %v2248_v29, %v2200_v3 }
 0x305   : > { %2379 = vst [vmem:[%s7915_s23 + $0xf0] sm:$0xff] %v2249_v39  ;;  %v2428_v1 = vadd.f32 %v2412_v51, %v2249_v39  ;;  %v5510_v39 = vld [vmem:[%s9099_s8 + $0xe8] sm:$0xf] }
 0x306   : > { %v5511_v57 = vor.u32 %v6017_v32, %v5510_v39  ;;  %v6035_v39 = vld [vmem:[%s9099_s8 + $0x194] sm:$0xf]  ;;  %v5596_v32 = vld [vmem:[%s9099_s8 + $0x1ac] sm:$0xf0] }
 0x307   : > { %v2436_v10 = vpack.c.bf16 %v2428_v1, %v2427_v0  ;;  %v6073_v0 = vld [vmem:[%s9099_s8 + $0x2c0] sm:$0xf0] }
 0x308   : > { %3604 = vmatpush.bf16.msra.mxu0 %v5511_v57  ;;  %v5735_v1 = vor.u32 %v6073_v0, %v5734_v52  ;;  %v6091_v57 = vld [vmem:[%s9099_s8 + $0x354] sm:$0xf]  ;;  %v5599_v52 = vor.u32 %v6035_v39, %v5596_v32  ;;  %v5820_v0 = vld [vmem:[%s9099_s8 + $0x36c] sm:$0xf0]  ;;  %v5989_v39 = vld [vmem:[%s9099_s8 + $0x20] sm:$0xf0] }
 0x309   : > { %2582 = vmatmul.bf16.gmra.mxu2 %v2436_v10  ;;  %2631 = vmatmul.bf16.gmra.mxu3 %v2436_v10  ;;  %v5622_v32 = vld [vmem:[%s9099_s8 + $0x1c8] sm:$0xf] }
 0x30a   : > { %3653 = vmatpush.bf16.msra.mxu1 %v5735_v1  ;;  %3699 = vmatpush.bf16.msrb.mxu2 %v5599_v52 }
 0x30e   : > { %3654 = vmatpush.bf16.msra.mxu1 %v5707_v27  ;;  %v6077_v27 = vld [vmem:[%s9099_s8 + $0x2e4] sm:$0xf] }
 0x312   : > { %3655 = vmatpush.bf16.msra.mxu1 %v5679_v19 }
 0x31c   : > { %v2548_v4 = vpop.f32.mrf.mxu2  ;;  %v2597_v13 = vpop.f32.mrf.mxu3 }
 0x31d   : > { %v2549_v18 = vadd.f32 %v2548_v4, %v8217_v15  ;;  %v2598_v53 = vadd.f32 %v2597_v13, %v8219_v24  ;;  %v5482_v4 = vld [vmem:[%s9099_s8 + $0xb0] sm:$0xf]  ;;  %v6010_v13 = vld [vmem:[%s9099_s8 + $0xc8] sm:$0xf0] }
 0x31e   : > { %v5483_v17 = vor.u32 %v6010_v13, %v5482_v4  ;;  %v5792_v4 = vld [vmem:[%s9099_s8 + $0x334] sm:$0xf0] }
 0x31f   : > { %v2637_v8 = vmax.f32 %v2549_v18, 0.0  ;;  %v2638_v20 = vmax.f32 %v2598_v53, 0.0 }
 0x320   : > { %3605 = vmatpush.bf16.msra.mxu0 %v5483_v17 }
 0x324   : > { %v2550_v62 = vpop.f32.mrf.mxu2  ;;  %v2599_v38 = vpop.f32.mrf.mxu3  ;;  %3606 = vmatpush.bf16.msra.mxu0 %v5455_v12 }
 0x325   : > { %v2551_v35 = vadd.f32 %v2550_v62, %v8217_v15  ;;  %v2600_v11 = vadd.f32 %v2599_v38, %v8219_v24 }
 0x327   : > { %v2639_v40 = vmax.f32 %v2551_v35, 0.0  ;;  %v2640_v56 = vmax.f32 %v2600_v11, 0.0 }
 0x329   : > { %v8231_v34 = vpack.c.bf16 %v2639_v40, %v2637_v8  ;;  %v8233_v30 = vpack.c.bf16 %v2640_v56, %v2638_v20 }
 0x32b   : > { %3413 = vmatmul.bf16.vlgmr.msrb.gmra.mxu0 %v8231_v34  ;;  %3462 = vmatmul.bf16.vlgmr.msrb.gmra.mxu1 %v8233_v30 }
 0x32c   : > { %3511 = vmatmul.bf16.vlgmr.msra.gmra.mxu2 %v8231_v34  ;;  %3560 = vmatmul.bf16.vlgmr.msra.gmra.mxu3 %v8233_v30  ;;  %v2553_v61 = vpop.f32.mrf.mxu2  ;;  %v2602_v2 = vpop.f32.mrf.mxu3 }
 0x32d   : > { %v2554_v42 = vadd.f32 %v2553_v61, %v8217_v15  ;;  %v2603_v25 = vadd.f32 %v2602_v2, %v8219_v24 }
 0x32f   : > { %v2641_v3 = vmax.f32 %v2554_v42, 0.0  ;;  %v2642_v28 = vmax.f32 %v2603_v25, 0.0 }
 0x334   : > { %v2555_v41 = vpop.f32.mrf.mxu2  ;;  %v2604_v60 = vpop.f32.mrf.mxu3 }
 0x335   : > { %v2556_v6 = vadd.f32 %v2555_v41, %v8217_v15  ;;  %v2605_v5 = vadd.f32 %v2604_v60, %v8219_v24 }
 0x337   : > { %v2643_v29 = vmax.f32 %v2556_v6, 0.0  ;;  %v2644_v26 = vmax.f32 %v2605_v5, 0.0 }
 0x339   : > { %v8255_v16 = vpack.c.bf16 %v2643_v29, %v2641_v3  ;;  %v8257_v54 = vpack.c.bf16 %v2644_v26, %v2642_v28 }
 0x33b   : > { %3418 = vmatmul.bf16.gmra.mxu0 %v8255_v16  ;;  %3467 = vmatmul.bf16.gmra.mxu1 %v8257_v54 }
 0x33c   : > { %3516 = vmatmul.bf16.gmra.mxu2 %v8255_v16  ;;  %3565 = vmatmul.bf16.gmra.mxu3 %v8257_v54  ;;  %v2558_v22 = vpop.f32.mrf.mxu2  ;;  %v2607_v51 = vpop.f32.mrf.mxu3 }
 0x33d   : > { %v2559_v31 = vadd.f32 %v2558_v22, %v8217_v15  ;;  %v2608_v21 = vadd.f32 %v2607_v51, %v8219_v24 }
 0x33f   : > { %v2645_v46 = vmax.f32 %v2559_v31, 0.0  ;;  %v2646_v23 = vmax.f32 %v2608_v21, 0.0  ;;  %v5426_v21 = vld [vmem:[%s9099_s8 + $0x40] sm:$0xf] }
 0x344   : > { %v2560_v49 = vpop.f32.mrf.mxu2  ;;  %v2609_v10 = vpop.f32.mrf.mxu3 }
 0x345   : > { %v2561_v37 = vadd.f32 %v2560_v49, %v8217_v15  ;;  %v2610_v45 = vadd.f32 %v2609_v10, %v8219_v24  ;;  %v5996_v49 = vld [vmem:[%s9099_s8 + $0x58] sm:$0xf0]  ;;  %v5823_v10 = vor.u32 %v6091_v57, %v5820_v0  ;;  %v6045_v0 = vld [vmem:[%s9099_s8 + $0x1e0] sm:$0xf0] }
 0x347   : > { %v2647_v7 = vmax.f32 %v2561_v37, 0.0  ;;  %v2648_v63 = vmax.f32 %v2610_v45, 0.0  ;;  %v5427_v37 = vor.u32 %v5996_v49, %v5426_v21  ;;  %3748 = vmatpush.bf16.msrb.mxu3 %v5823_v10  ;;  %v6028_v45 = vld [vmem:[%s9099_s8 + $0x15c] sm:$0xf]  ;;  %v5623_v21 = vor.u32 %v6045_v0, %v5622_v32  ;;  %v8506_v0 = vld [vmem:[%s9100_s9] sm:$0x7f] }
 0x348   : > { %v6056_v10 = vld [vmem:[%s9099_s8 + $0x23c] sm:$0xf] }
 0x349   : > { %v8279_v44 = vpack.c.bf16 %v2647_v7, %v2645_v46  ;;  %v8281_v9 = vpack.c.bf16 %v2648_v63, %v2646_v23  ;;  %v5568_v46 = vld [vmem:[%s9099_s8 + $0x174] sm:$0xf0]  ;;  %v6084_v23 = vld [vmem:[%s9099_s8 + $0x31c] sm:$0xf]  ;;  %3607 = vmatpush.bf16.msra.mxu0 %v5427_v37  ;;  %v5650_v7 = vld [vmem:[%s9099_s8 + $0x200] sm:$0xf] }
 0x34a   : > { %v6052_v63 = vld [vmem:[%s9099_s8 + $0x218] sm:$0xf0]  ;;  %v5795_v17 = vor.u32 %v6084_v23, %v5792_v4  ;;  %v5680_v37 = vld [vmem:[%s9099_s8 + $0x254] sm:$0xf0] }
 0x34b   : > { %3423 = vmatmul.bf16.gmra.mxu0 %v8279_v44  ;;  %3472 = vmatmul.bf16.gmra.mxu1 %v8281_v9 }
 0x34c   : > { %3521 = vmatmul.bf16.gmra.mxu2 %v8279_v44  ;;  %3570 = vmatmul.bf16.gmra.mxu3 %v8281_v9  ;;  %v2563_v36 = vpop.f32.mrf.mxu2  ;;  %v2612_v48 = vpop.f32.mrf.mxu3 }
 0x34d   : > { %v2564_v58 = vadd.f32 %v2563_v36, %v8217_v15  ;;  %v2613_v50 = vadd.f32 %v2612_v48, %v8219_v24  ;;  %v5571_v36 = vor.u32 %v6028_v45, %v5568_v46  ;;  %v5651_v48 = vor.u32 %v6052_v63, %v5650_v7  ;;  %3749 = vmatpush.bf16.msrb.mxu3 %v5795_v17  ;;  %v5993_v45 = vld [vmem:[%s9099_s8 + $0x44] sm:$0xf]  ;;  %v5428_v46 = vld [vmem:[%s9099_s8 + $0x5c] sm:$0xf0] }
 0x34e   : > { %v5683_v7 = vor.u32 %v6056_v10, %v5680_v37  ;;  %v5431_v63 = vor.u32 %v5993_v45, %v5428_v46  ;;  %v5574_v37 = vld [vmem:[%s9099_s8 + $0x160] sm:$0xf]  ;;  %v6032_v45 = vld [vmem:[%s9099_s8 + $0x178] sm:$0xf0] }
 0x34f   : > { %v2649_v35 = vmax.f32 %v2564_v58, 0.0  ;;  %v2650_v11 = vmax.f32 %v2613_v50, 0.0  ;;  %3700 = vmatpush.bf16.msrb.mxu2 %v5571_v36  ;;  %3656 = vmatpush.bf16.msra.mxu1 %v5651_v48  ;;  %v5543_v50 = vor.u32 %v6021_v14, %v5540_v33  ;;  %v6049_v36 = vld [vmem:[%s9099_s8 + $0x204] sm:$0xf]  ;;  %v5652_v48 = vld [vmem:[%s9099_s8 + $0x21c] sm:$0xf0] }
 0x350   : > { %v5798_v46 = vld [vmem:[%s9099_s8 + $0x320] sm:$0xf] }
 0x353   : > { %3701 = vmatpush.bf16.msrb.mxu2 %v5543_v50  ;;  %3657 = vmatpush.bf16.msra.mxu1 %v5623_v21  ;;  %v5986_v50 = vld [vmem:[%s9099_s8 + $0xc] sm:$0xf] }
 0x354   : > { %v2565_v18 = vpop.f32.mrf.mxu2  ;;  %v2614_v53 = vpop.f32.mrf.mxu3 }
 0x355   : > { %v2566_v62 = vadd.f32 %v2565_v18, %v8217_v15  ;;  %v2615_v38 = vadd.f32 %v2614_v53, %v8219_v24  ;;  %v5764_v18 = vld [vmem:[%s9099_s8 + $0x2fc] sm:$0xf0] }
 0x357   : > { %v2651_v8 = vmax.f32 %v2566_v62, 0.0  ;;  %v2652_v20 = vmax.f32 %v2615_v38, 0.0  ;;  %v5767_v38 = vor.u32 %v6077_v27, %v5764_v18  ;;  %v5400_v18 = vld [vmem:[%s9099_s8 + $0x24] sm:$0xf0] }
 0x359   : > { %v8303_v40 = vpack.c.bf16 %v2651_v8, %v2649_v35  ;;  %v8305_v56 = vpack.c.bf16 %v2652_v20, %v2650_v11  ;;  %v6014_v20 = vld [vmem:[%s9099_s8 + $0xec] sm:$0xf]  ;;  %3750 = vmatpush.bf16.msrb.mxu3 %v5767_v38 }
 0x35b   : > { %3428 = vmatmul.bf16.gmra.mxu0 %v8303_v40  ;;  %3477 = vmatmul.bf16.gmra.mxu1 %v8305_v56 }
 0x35c   : > { %3526 = vmatmul.bf16.gmra.mxu2 %v8303_v40  ;;  %3575 = vmatmul.bf16.gmra.mxu3 %v8305_v56  ;;  %v2568_v61 = vpop.f32.mrf.mxu2  ;;  %v2617_v2 = vpop.f32.mrf.mxu3 }
 0x35d   : > { %v2569_v42 = vadd.f32 %v2568_v61, %v8217_v15  ;;  %v2618_v25 = vadd.f32 %v2617_v2, %v8219_v24  ;;  %v5512_v61 = vld [vmem:[%s9099_s8 + $0x104] sm:$0xf0]  ;;  %v6070_v2 = vld [vmem:[%s9099_s8 + $0x2ac] sm:$0xf] }
 0x35e   : > { %v5515_v47 = vor.u32 %v6014_v20, %v5512_v61 }
 0x35f   : > { %v2653_v3 = vmax.f32 %v2569_v42, 0.0  ;;  %v2654_v28 = vmax.f32 %v2618_v25, 0.0  ;;  %v5739_v25 = vor.u32 %v6070_v2, %v5736_v43 }
 0x360   : > { %3702 = vmatpush.bf16.msrb.mxu2 %v5515_v47 }
 0x361   : > { %3751 = vmatpush.bf16.msrb.mxu3 %v5739_v25 }
 0x364   : > { %v2570_v41 = vpop.f32.mrf.mxu2  ;;  %v2619_v60 = vpop.f32.mrf.mxu3 }
 0x365   : > { %v2571_v6 = vadd.f32 %v2570_v41, %v8217_v15  ;;  %v2620_v5 = vadd.f32 %v2619_v60, %v8219_v24  ;;  %v6007_v41 = vld [vmem:[%s9099_s8 + $0xb4] sm:$0xf]  ;;  %v5484_v60 = vld [vmem:[%s9099_s8 + $0xcc] sm:$0xf0] }
 0x367   : > { %v2655_v29 = vmax.f32 %v2571_v6, 0.0  ;;  %v2656_v26 = vmax.f32 %v2620_v5, 0.0  ;;  %v6063_v6 = vld [vmem:[%s9099_s8 + $0x274] sm:$0xf]  ;;  %v5487_v5 = vor.u32 %v6007_v41, %v5484_v60 }
 0x369   : > { %v8327_v22 = vpack.c.bf16 %v2655_v29, %v2653_v3  ;;  %v8329_v51 = vpack.c.bf16 %v2656_v26, %v2654_v28  ;;  %v5708_v3 = vld [vmem:[%s9099_s8 + $0x28c] sm:$0xf0]  ;;  %v5398_v26 = vld [vmem:[%s9099_s8 + $0x8] sm:$0xf]  ;;  %3703 = vmatpush.bf16.msrb.mxu2 %v5487_v5 }
 0x36a   : > { %v5399_v57 = vor.u32 %v5989_v39, %v5398_v26  ;;  %v5711_v52 = vor.u32 %v6063_v6, %v5708_v3  ;;  %v6039_v26 = vld [vmem:[%s9099_s8 + $0x1b0] sm:$0xf0]  ;;  %v5826_v39 = vld [vmem:[%s9099_s8 + $0x358] sm:$0xf] }
 0x36b   : > { %3433 = vmatmul.bf16.gmra.mxu0 %v8327_v22  ;;  %3482 = vmatmul.bf16.gmra.mxu1 %v8329_v51 }
 0x36c   : > { %3531 = vmatmul.bf16.gmra.mxu2 %v8327_v22  ;;  %3580 = vmatmul.bf16.gmra.mxu3 %v8329_v51  ;;  %v2573_v1 = vpop.f32.mrf.mxu2  ;;  %v2622_v31 = vpop.f32.mrf.mxu3 }
 0x36d   : > { %v2574_v13 = vadd.f32 %v2573_v1, %v8217_v15  ;;  %v2623_v58 = vadd.f32 %v2622_v31, %v8219_v24  ;;  %v6000_v1 = vld [vmem:[%s9099_s8 + $0x7c] sm:$0xf]  ;;  %v5456_v31 = vld [vmem:[%s9099_s8 + $0x94] sm:$0xf0]  ;;  %3608 = vmatpush.bf16.msra.mxu0 %v5399_v57  ;;  %3752 = vmatpush.bf16.msrb.mxu3 %v5711_v52  ;;  %v6095_v57 = vld [vmem:[%s9099_s8 + $0x370] sm:$0xf0] }
 0x36e   : > { %v5459_v49 = vor.u32 %v6000_v1, %v5456_v31  ;;  %v5827_v52 = vor.u32 %v6095_v57, %v5826_v39  ;;  %v8509_v1 = vperm.slane %v8506_v0, 0 }
 0x36f   : > { %v2657_v35 = vmax.f32 %v2574_v13, 0.0  ;;  %v2658_v55 = vmax.f32 %v2623_v58, 0.0  ;;  %v5655_v58 = vor.u32 %v6049_v36, %v5652_v48 }
 0x370   : > { %3704 = vmatpush.bf16.msrb.mxu2 %v5459_v49  ;;  %3846 = vmatpush.bf16.msrb.mxu1 %v5827_v52 }
 0x371   : > { %3753 = vmatpush.bf16.msrb.mxu3 %v5683_v7  ;;  %v5575_v7 = vor.u32 %v6032_v45, %v5574_v37 }
 0x374   : > { %v2575_v53 = vpop.f32.mrf.mxu2  ;;  %v2624_v62 = vpop.f32.mrf.mxu3  ;;  %3705 = vmatpush.bf16.msrb.mxu2 %v5431_v63  ;;  %v6088_v63 = vld [vmem:[%s9099_s8 + $0x338] sm:$0xf0] }
 0x375   : > { %v2576_v11 = vadd.f32 %v2575_v53, %v8217_v15  ;;  %v2625_v8 = vadd.f32 %v2624_v62, %v8219_v24  ;;  %v6042_v53 = vld [vmem:[%s9099_s8 + $0x1cc] sm:$0xf]  ;;  %3754 = vmatpush.bf16.msrb.mxu3 %v5655_v58  ;;  %v5799_v48 = vor.u32 %v6088_v63, %v5798_v46 }
 0x377   : > { %v2659_v59 = vmax.f32 %v2576_v11, 0.0  ;;  %v2660_v12 = vmax.f32 %v2625_v8, 0.0  ;;  %v5403_v11 = vor.u32 %v5986_v50, %v5400_v18  ;;  %v5624_v8 = vld [vmem:[%s9099_s8 + $0x1e4] sm:$0xf0]  ;;  %3847 = vmatpush.bf16.msrb.mxu1 %v5799_v48 }
 0x378   : > { %v5627_v2 = vor.u32 %v6042_v53, %v5624_v8 }
 0x379   : > { %v8399_v19 = vpack.c.bf16 %v2659_v59, %v2657_v35  ;;  %v8401_v42 = vpack.c.bf16 %v2660_v12, %v2658_v55  ;;  %3706 = vmatpush.bf16.msrb.mxu2 %v5403_v11 }
 0x37a   : > { %3755 = vmatpush.bf16.msrb.mxu3 %v5627_v2 }
 0x37b   : > { %3438 = vmatmul.bf16.gmra.mxu0 %v8399_v19  ;;  %3487 = vmatmul.bf16.gmra.mxu1 %v8401_v42 }
 0x37c   : > { %3536 = vmatmul.bf16.gmra.mxu2 %v8399_v19  ;;  %3585 = vmatmul.bf16.gmra.mxu3 %v8401_v42  ;;  %v2578_v28 = vpop.f32.mrf.mxu2  ;;  %v2627_v29 = vpop.f32.mrf.mxu3 }
 0x37d   : > { %v2579_v23 = vadd.f32 %v2578_v28, %v8217_v15  ;;  %v2628_v4 = vadd.f32 %v2627_v29, %v8219_v24  ;;  %v5602_v29 = vld [vmem:[%s9099_s8 + $0x198] sm:$0xf] }
 0x37f   : > { %v2661_v14 = vmax.f32 %v2579_v23, 0.0  ;;  %v2662_v62 = vmax.f32 %v2628_v4, 0.0  ;;  %v8526_v23 = vperm.slane %v8506_v0, 1 }
 0x384   : > { %v2580_v13 = vpop.f32.mrf.mxu2  ;;  %v2629_v17 = vpop.f32.mrf.mxu3 }
 0x385   : > { %v2581_v33 = vadd.f32 %v2580_v13, %v8217_v15  ;;  %v2630_v27 = vadd.f32 %v2629_v17, %v8219_v24 }
 0x387   : > { %v2663_v38 = vmax.f32 %v2581_v33, 0.0  ;;  %v2664_v35 = vmax.f32 %v2630_v27, 0.0 }
 0x389   : > { %v8471_v20 = vpack.c.bf16 %v2663_v38, %v2661_v14  ;;  %v8473_v61 = vpack.c.bf16 %v2664_v35, %v2662_v62 }
 0x38b   : > { %3443 = vmatmul.bf16.gmra.mxu0 %v8471_v20  ;;  %3492 = vmatmul.bf16.gmra.mxu1 %v8473_v61 }
 0x38c   : > { %3541 = vmatmul.bf16.gmra.mxu2 %v8471_v20  ;;  %3590 = vmatmul.bf16.gmra.mxu3 %v8473_v61  ;;  %v2583_v55 = vpop.f32.mrf.mxu2  ;;  %v2632_v59 = vpop.f32.mrf.mxu3 }
 0x38d   : > { %v2584_v12 = vadd.f32 %v2583_v55, %v8217_v15  ;;  %v2633_v47 = vadd.f32 %v2632_v59, %v8219_v24 }
 0x38f   : > { %v2665_v6 = vmax.f32 %v2584_v12, 0.0  ;;  %v2666_v5 = vmax.f32 %v2633_v47, 0.0 }
 0x394   : > { %v2585_v43 = vpop.f32.mrf.mxu2  ;;  %v2634_v25 = vpop.f32.mrf.mxu3 }
 0x395   : > { %v2586_v41 = vadd.f32 %v2585_v43, %v8217_v15  ;;  %v2635_v60 = vadd.f32 %v2634_v25, %v8219_v24  ;;  %v5603_v24 = vor.u32 %v6039_v26, %v5602_v29  ;;  %v5546_v43 = vld [vmem:[%s9099_s8 + $0x128] sm:$0xf]  ;;  %v6025_v25 = vld [vmem:[%s9099_s8 + $0x140] sm:$0xf0] }
 0x397   : > { %v2667_v3 = vmax.f32 %v2586_v41, 0.0  ;;  %v2668_v28 = vmax.f32 %v2635_v60, 0.0  ;;  %3797 = vmatpush.bf16.msrb.mxu0 %v5603_v24  ;;  %v5770_v41 = vld [vmem:[%s9099_s8 + $0x2e8] sm:$0xf] }
 0x399   : > { %v8492_v32 = vpack.c.bf16 %v2667_v3, %v2665_v6  ;;  %v8494_v15 = vpack.c.bf16 %v2668_v28, %v2666_v5  ;;  %v5547_v5 = vor.u32 %v6025_v25, %v5546_v43  ;;  %v6081_v3 = vld [vmem:[%s9099_s8 + $0x300] sm:$0xf0]  ;;  %v5742_v43 = vld [vmem:[%s9099_s8 + $0x2b0] sm:$0xf]  ;;  %v6074_v25 = vld [vmem:[%s9099_s8 + $0x2c8] sm:$0xf0] }
 0x39a   : > { %v5771_v29 = vor.u32 %v6081_v3, %v5770_v41 }
 0x39b   : > { %3448 = vmatmul.bf16.gmra.mxu0 %v8492_v32  ;;  %3497 = vmatmul.bf16.gmra.mxu1 %v8494_v15 }
 0x39c   : > { %3546 = vmatmul.bf16.gmra.mxu2 %v8492_v32  ;;  %3595 = vmatmul.bf16.gmra.mxu3 %v8494_v15 }
 0x39d   : > { %3798 = vmatpush.bf16.msrb.mxu0 %v5575_v7  ;;  %3848 = vmatpush.bf16.msrb.mxu1 %v5771_v29 }
 0x3a1   : > { %3799 = vmatpush.bf16.msrb.mxu0 %v5547_v5 }
 0x3a8   : > { %v3414_v31 = vpop.f32.mrf.mxu0  ;;  %v3463_v21 = vpop.f32.mrf.mxu1 }
 0x3a9   : > { %v3415_v49 = vadd.f32 %v3414_v31, %v8509_v1 }
 0x3ab   : > { %v3464_v10 = vadd.f32 %v3463_v21, %v3415_v49  ;;  %3609 = vmatmul.bf16.vlgmr.msra.gmra.mxu0 %v8231_v34  ;;  %3658 = vmatmul.bf16.vlgmr.msra.gmra.mxu1 %v8233_v30 }
 0x3ac   : > { %3707 = vmatmul.bf16.vlgmr.msrb.gmra.mxu2 %v8231_v34  ;;  %3756 = vmatmul.bf16.vlgmr.msrb.gmra.mxu3 %v8233_v30 }
 0x3ad   : > { %v4091_v36 = vmul.f32 0.5, %v3464_v10 }
 0x3af   : > { %v3512_v4 = vpop.f32.mrf.mxu2  ;;  %v3561_v13 = vpop.f32.mrf.mxu3  ;;  %6123 = vtanh.f32 %v4091_v36 }
 0x3b0   : > { %v3513_v17 = vadd.f32 %v3512_v4, %v8526_v23  ;;  %v3416_v14 = vpop.f32.mrf.mxu0  ;;  %v3465_v33 = vpop.f32.mrf.mxu1 }
 0x3b1   : > { %v3417_v27 = vadd.f32 %v3416_v14, %v8509_v1 }
 0x3b2   : > { %v3562_v58 = vadd.f32 %v3561_v13, %v3513_v17 }
 0x3b3   : > { %v3466_v50 = vadd.f32 %v3465_v33, %v3417_v27 }
 0x3b4   : > { %v4092_v18 = vmul.f32 0.5, %v3562_v58 }
 0x3b5   : > { %v4098_v53 = vmul.f32 0.5, %v3466_v50  ;;  %v6124_v62 = vpop.eup %6123 }
 0x3b6   : > { %6125 = vtanh.f32 %v4092_v18  ;;  %v4315_v59 = vmul.f32 0.5, %v6124_v62 }
 0x3b7   : > { %v3514_v38 = vpop.f32.mrf.mxu2  ;;  %v3563_v35 = vpop.f32.mrf.mxu3  ;;  %6127 = vtanh.f32 %v4098_v53 }
 0x3b8   : > { %v3515_v11 = vadd.f32 %v3514_v38, %v8526_v23  ;;  %v3419_v8 = vpop.f32.mrf.mxu0  ;;  %v3468_v2 = vpop.f32.mrf.mxu1  ;;  %v4427_v39 = vadd.f32 0.5, %v4315_v59 }
 0x3b9   : > { %v3420_v55 = vadd.f32 %v3419_v8, %v8509_v1 }
 0x3ba   : > { %v3564_v12 = vadd.f32 %v3563_v35, %v3515_v11 }
 0x3bb   : > { %v3469_v47 = vadd.f32 %v3468_v2, %v3420_v55  ;;  %3614 = vmatmul.bf16.gmra.mxu0 %v8255_v16  ;;  %3663 = vmatmul.bf16.gmra.mxu1 %v8257_v54  ;;  %v5518_v2 = vld [vmem:[%s9099_s8 + $0xf0] sm:$0xf]  ;;  %v6018_v55 = vld [vmem:[%s9099_s8 + $0x108] sm:$0xf0] }
 0x3bc   : > { %v6126_v60 = vpop.eup %6125  ;;  %v4099_v6 = vmul.f32 0.5, %v3564_v12  ;;  %3712 = vmatmul.bf16.gmra.mxu2 %v8255_v16  ;;  %3761 = vmatmul.bf16.gmra.mxu3 %v8257_v54 }
 0x3bd   : > { %v4316_v28 = vmul.f32 0.5, %v6126_v60  ;;  %v4105_v26 = vmul.f32 0.5, %v3469_v47  ;;  %v6128_v31 = vpop.eup %6127  ;;  %v5519_v47 = vor.u32 %v6018_v55, %v5518_v2  ;;  %v5743_v60 = vor.u32 %v6074_v25, %v5742_v43  ;;  %v5714_v2 = vld [vmem:[%s9099_s8 + $0x278] sm:$0xf]  ;;  %v6067_v55 = vld [vmem:[%s9099_s8 + $0x290] sm:$0xf0] }
 0x3be   : > { %6129 = vtanh.f32 %v4099_v6  ;;  %v4322_v7 = vmul.f32 0.5, %v6128_v31 }
 0x3bf   : > { %v4428_v24 = vadd.f32 0.5, %v4316_v28  ;;  %v3517_v57 = vpop.f32.mrf.mxu2  ;;  %v3566_v52 = vpop.f32.mrf.mxu3  ;;  %6131 = vtanh.f32 %v4105_v26  ;;  %3800 = vmatpush.bf16.msrb.mxu0 %v5519_v47  ;;  %3849 = vmatpush.bf16.msrb.mxu1 %v5743_v60 }
 0x3c0   : > { %v3518_v21 = vadd.f32 %v3517_v57, %v8526_v23  ;;  %v3421_v49 = vpop.f32.mrf.mxu0  ;;  %v3470_v10 = vpop.f32.mrf.mxu1  ;;  %v4434_v17 = vadd.f32 0.5, %v4322_v7 }
 0x3c1   : > { %v4539_v37 = vpack.c.bf16 %v4428_v24, %v4427_v39  ;;  %v3422_v45 = vadd.f32 %v3421_v49, %v8509_v1 }
 0x3c2   : > { %v3567_v46 = vadd.f32 %v3566_v52, %v3518_v21 }
 0x3c3   : > { %4603 = vst [vmem:[%s8555_s26] sm:$0xff] %v4539_v37  ;;  %v3471_v63 = vadd.f32 %v3470_v10, %v3422_v45 }
 0x3c4   : > { %v6130_v36 = vpop.eup %6129  ;;  %v4106_v48 = vmul.f32 0.5, %v3567_v46 }
 0x3c5   : > { %v4323_v4 = vmul.f32 0.5, %v6130_v36  ;;  %v4112_v13 = vmul.f32 0.5, %v3471_v63  ;;  %v6132_v58 = vpop.eup %6131 }
 0x3c6   : > { %6133 = vtanh.f32 %v4106_v48  ;;  %v4329_v11 = vmul.f32 0.5, %v6132_v58 }
 0x3c7   : > { %v4435_v14 = vadd.f32 0.5, %v4323_v4  ;;  %v3519_v33 = vpop.f32.mrf.mxu2  ;;  %v3568_v27 = vpop.f32.mrf.mxu3  ;;  %6135 = vtanh.f32 %v4112_v13 }
 0x3c8   : > { %v3520_v50 = vadd.f32 %v3519_v33, %v8526_v23  ;;  %v3424_v18 = vpop.f32.mrf.mxu0  ;;  %v3473_v53 = vpop.f32.mrf.mxu1  ;;  %v4441_v5 = vadd.f32 0.5, %v4329_v11 }
 0x3c9   : > { %v4543_v62 = vpack.c.bf16 %v4435_v14, %v4434_v17  ;;  %v3425_v38 = vadd.f32 %v3424_v18, %v8509_v1 }
 0x3ca   : > { %v3569_v35 = vadd.f32 %v3568_v27, %v3520_v50 }
 0x3cb   : > { %4608 = vst [vmem:[%s8555_s26 + $0x1c] sm:$0xff] %v4543_v62  ;;  %v3474_v8 = vadd.f32 %v3473_v53, %v3425_v38  ;;  %3619 = vmatmul.bf16.gmra.mxu0 %v8279_v44  ;;  %3668 = vmatmul.bf16.gmra.mxu1 %v8281_v9  ;;  %v5490_v62 = vld [vmem:[%s9099_s8 + $0xb8] sm:$0xf]  ;;  %v6011_v38 = vld [vmem:[%s9099_s8 + $0xd0] sm:$0xf0] }
 0x3cc   : > { %v6134_v59 = vpop.eup %6133  ;;  %v4113_v12 = vmul.f32 0.5, %v3569_v35  ;;  %3717 = vmatmul.bf16.gmra.mxu2 %v8279_v44  ;;  %3766 = vmatmul.bf16.gmra.mxu3 %v8281_v9 }
 0x3cd   : > { %v4330_v41 = vmul.f32 0.5, %v6134_v59  ;;  %v4119_v6 = vmul.f32 0.5, %v3474_v8  ;;  %v6136_v26 = vpop.eup %6135  ;;  %v5491_v8 = vor.u32 %v6011_v38, %v5490_v62 }
 0x3ce   : > { %6137 = vtanh.f32 %v4113_v12  ;;  %v4336_v49 = vmul.f32 0.5, %v6136_v26  ;;  %v5715_v12 = vor.u32 %v6067_v55, %v5714_v2  ;;  %v6060_v2 = vld [vmem:[%s9099_s8 + $0x258] sm:$0xf0] }
 0x3cf   : > { %v4442_v3 = vadd.f32 0.5, %v4330_v41  ;;  %v3522_v28 = vpop.f32.mrf.mxu2  ;;  %v3571_v29 = vpop.f32.mrf.mxu3  ;;  %6139 = vtanh.f32 %v4119_v6  ;;  %3801 = vmatpush.bf16.msrb.mxu0 %v5491_v8  ;;  %v5686_v8 = vld [vmem:[%s9099_s8 + $0x240] sm:$0xf] }
 0x3d0   : > { %v3523_v39 = vadd.f32 %v3522_v28, %v8526_v23  ;;  %v3426_v24 = vpop.f32.mrf.mxu0  ;;  %v3475_v57 = vpop.f32.mrf.mxu1  ;;  %v4448_v63 = vadd.f32 0.5, %v4336_v49  ;;  %3850 = vmatpush.bf16.msrb.mxu1 %v5715_v12  ;;  %v5828_v12 = vld [vmem:[%s9099_s8 + $0x374] sm:$0xf0] }
 0x3d1   : > { %v4547_v52 = vpack.c.bf16 %v4442_v3, %v4441_v5  ;;  %v3427_v31 = vadd.f32 %v3426_v24, %v8509_v1 }
 0x3d2   : > { %v3572_v21 = vadd.f32 %v3571_v29, %v3523_v39 }
 0x3d3   : > { %4612 = vst [vmem:[%s8555_s26 + $0x38] sm:$0xff] %v4547_v52  ;;  %v3476_v10 = vadd.f32 %v3475_v57, %v3427_v31 }
 0x3d4   : > { %v6138_v37 = vpop.eup %6137  ;;  %v4120_v45 = vmul.f32 0.5, %v3572_v21 }
 0x3d5   : > { %v4337_v46 = vmul.f32 0.5, %v6138_v37  ;;  %v4126_v7 = vmul.f32 0.5, %v3476_v10  ;;  %v6140_v13 = vpop.eup %6139 }
 0x3d6   : > { %6141 = vtanh.f32 %v4120_v45  ;;  %v4343_v18 = vmul.f32 0.5, %v6140_v13 }
 0x3d7   : > { %v4449_v36 = vadd.f32 0.5, %v4337_v46  ;;  %v3524_v48 = vpop.f32.mrf.mxu2  ;;  %v3573_v4 = vpop.f32.mrf.mxu3  ;;  %6143 = vtanh.f32 %v4126_v7 }
 0x3d8   : > { %v3525_v17 = vadd.f32 %v3524_v48, %v8526_v23  ;;  %v3429_v14 = vpop.f32.mrf.mxu0  ;;  %v3478_v33 = vpop.f32.mrf.mxu1  ;;  %v4455_v43 = vadd.f32 0.5, %v4343_v18  ;;  %v5462_v18 = vld [vmem:[%s9099_s8 + $0x80] sm:$0xf] }
 0x3d9   : > { %v4551_v27 = vpack.c.bf16 %v4449_v36, %v4448_v63  ;;  %v3430_v58 = vadd.f32 %v3429_v14, %v8509_v1  ;;  %v6036_v14 = vld [vmem:[%s9099_s8 + $0x19c] sm:$0xf] }
 0x3da   : > { %v3574_v50 = vadd.f32 %v3573_v4, %v3525_v17 }
 0x3db   : > { %4616 = vst [vmem:[%s8555_s26 + $0x54] sm:$0xff] %v4551_v27  ;;  %v3479_v53 = vadd.f32 %v3478_v33, %v3430_v58  ;;  %3624 = vmatmul.bf16.gmra.mxu0 %v8303_v40  ;;  %3673 = vmatmul.bf16.gmra.mxu1 %v8305_v56  ;;  %v5604_v33 = vld [vmem:[%s9099_s8 + $0x1b4] sm:$0xf0]  ;;  %v6092_v27 = vld [vmem:[%s9099_s8 + $0x35c] sm:$0xf] }
 0x3dc   : > { %v6142_v35 = vpop.eup %6141  ;;  %v4127_v11 = vmul.f32 0.5, %v3574_v50  ;;  %3722 = vmatmul.bf16.gmra.mxu2 %v8303_v40  ;;  %3771 = vmatmul.bf16.gmra.mxu3 %v8305_v56  ;;  %v5607_v62 = vor.u32 %v6036_v14, %v5604_v33 }
 0x3dd   : > { %v4344_v59 = vmul.f32 0.5, %v6142_v35  ;;  %v4133_v47 = vmul.f32 0.5, %v3479_v53  ;;  %v6144_v6 = vpop.eup %6143  ;;  %v6004_v53 = vld [vmem:[%s9099_s8 + $0x98] sm:$0xf0] }
 0x3de   : > { %6145 = vtanh.f32 %v4127_v11  ;;  %v4350_v24 = vmul.f32 0.5, %v6144_v6  ;;  %v5463_v11 = vor.u32 %v6004_v53, %v5462_v18  ;;  %3895 = vmatpush.bf16.msra.mxu2 %v5607_v62 }
 0x3df   : > { %v4456_v25 = vadd.f32 0.5, %v4344_v59  ;;  %v3527_v41 = vpop.f32.mrf.mxu2  ;;  %v3576_v60 = vpop.f32.mrf.mxu3  ;;  %6147 = vtanh.f32 %v4133_v47  ;;  %v5687_v59 = vor.u32 %v6060_v2, %v5686_v8 }
 0x3e0   : > { %v3528_v5 = vadd.f32 %v3527_v41, %v8526_v23  ;;  %v3431_v3 = vpop.f32.mrf.mxu0  ;;  %v3480_v28 = vpop.f32.mrf.mxu1  ;;  %v4462_v10 = vadd.f32 0.5, %v4350_v24  ;;  %3802 = vmatpush.bf16.msrb.mxu0 %v5463_v11  ;;  %v5576_v41 = vld [vmem:[%s9099_s8 + $0x17c] sm:$0xf0]  ;;  %v5744_v11 = vld [vmem:[%s9099_s8 + $0x2cc] sm:$0xf0] }
 0x3e1   : > { %v4555_v29 = vpack.c.bf16 %v4456_v25, %v4455_v43  ;;  %v3432_v26 = vadd.f32 %v3431_v3, %v8509_v1  ;;  %v5831_v43 = vor.u32 %v6092_v27, %v5828_v12  ;;  %v6029_v25 = vld [vmem:[%s9099_s8 + $0x164] sm:$0xf]  ;;  %3851 = vmatpush.bf16.msrb.mxu1 %v5687_v59  ;;  %v6015_v27 = vld [vmem:[%s9099_s8 + $0xf4] sm:$0xf] }
 0x3e2   : > { %v3577_v39 = vadd.f32 %v3576_v60, %v3528_v5 }
 0x3e3   : > { %4620 = vst [vmem:[%s8555_s26 + $0x70] sm:$0xff] %v4555_v29  ;;  %v3481_v57 = vadd.f32 %v3480_v28, %v3432_v26  ;;  %v5579_v28 = vor.u32 %v6029_v25, %v5576_v41  ;;  %v6085_v29 = vld [vmem:[%s9099_s8 + $0x324] sm:$0xf]  ;;  %v5800_v26 = vld [vmem:[%s9099_s8 + $0x33c] sm:$0xf0]  ;;  %3944 = vmatpush.bf16.msra.mxu3 %v5831_v43 }
 0x3e4   : > { %v6146_v52 = vpop.eup %6145  ;;  %v4134_v31 = vmul.f32 0.5, %v3577_v39  ;;  %v6008_v41 = vld [vmem:[%s9099_s8 + $0xbc] sm:$0xf] }
 0x3e5   : > { %v4351_v21 = vmul.f32 0.5, %v6146_v52  ;;  %v4140_v49 = vmul.f32 0.5, %v3481_v57  ;;  %v6148_v7 = vpop.eup %6147  ;;  %3896 = vmatpush.bf16.msra.mxu2 %v5579_v28  ;;  %v5434_v28 = vld [vmem:[%s9099_s8 + $0x48] sm:$0xf] }
 0x3e6   : > { %6149 = vtanh.f32 %v4134_v31  ;;  %v4357_v58 = vmul.f32 0.5, %v6148_v7  ;;  %v5803_v31 = vor.u32 %v6085_v29, %v5800_v26  ;;  %v5997_v29 = vld [vmem:[%s9099_s8 + $0x60] sm:$0xf0] }
 0x3e7   : > { %v4463_v37 = vadd.f32 0.5, %v4351_v21  ;;  %v3529_v45 = vpop.f32.mrf.mxu2  ;;  %v3578_v46 = vpop.f32.mrf.mxu3  ;;  %6151 = vtanh.f32 %v4140_v49 }
 0x3e8   : > { %v3530_v63 = vadd.f32 %v3529_v45, %v8526_v23  ;;  %v3434_v36 = vpop.f32.mrf.mxu0  ;;  %v3483_v48 = vpop.f32.mrf.mxu1  ;;  %v4469_v60 = vadd.f32 0.5, %v4357_v58  ;;  %v5548_v45 = vld [vmem:[%s9099_s8 + $0x144] sm:$0xf0]  ;;  %3945 = vmatpush.bf16.msra.mxu3 %v5803_v31  ;;  %v5520_v58 = vld [vmem:[%s9099_s8 + $0x10c] sm:$0xf0] }
 0x3e9   : > { %v4559_v4 = vpack.c.bf16 %v4463_v37, %v4462_v10  ;;  %v3435_v13 = vadd.f32 %v3434_v36, %v8509_v1  ;;  %v6022_v37 = vld [vmem:[%s9099_s8 + $0x12c] sm:$0xf]  ;;  %v6053_v31 = vld [vmem:[%s9099_s8 + $0x220] sm:$0xf0] }
 0x3ea   : > { %v3579_v17 = vadd.f32 %v3578_v46, %v3530_v63  ;;  %v6078_v46 = vld [vmem:[%s9099_s8 + $0x2ec] sm:$0xf]  ;;  %v5551_v36 = vor.u32 %v6022_v37, %v5548_v45 }
 0x3eb   : > { %4624 = vst [vmem:[%s8555_s26 + $0x8c] sm:$0xff] %v4559_v4  ;;  %v3484_v50 = vadd.f32 %v3483_v48, %v3435_v13  ;;  %3629 = vmatmul.bf16.gmra.mxu0 %v8327_v22  ;;  %3678 = vmatmul.bf16.gmra.mxu1 %v8329_v51  ;;  %v5772_v48 = vld [vmem:[%s9099_s8 + $0x304] sm:$0xf0] }
 0x3ec   : > { %v6150_v38 = vpop.eup %6149  ;;  %v4141_v35 = vmul.f32 0.5, %v3579_v17  ;;  %3727 = vmatmul.bf16.gmra.mxu2 %v8327_v22  ;;  %3776 = vmatmul.bf16.gmra.mxu3 %v8329_v51  ;;  %v5775_v17 = vor.u32 %v6078_v46, %v5772_v48  ;;  %v6001_v46 = vld [vmem:[%s9099_s8 + $0x84] sm:$0xf] }
 0x3ed   : > { %v4358_v55 = vmul.f32 0.5, %v6150_v38  ;;  %v4147_v47 = vmul.f32 0.5, %v3484_v50  ;;  %v6152_v39 = vpop.eup %6151  ;;  %3897 = vmatpush.bf16.msra.mxu2 %v5551_v36  ;;  %v5523_v38 = vor.u32 %v6015_v27, %v5520_v58 }
 0x3ee   : > { %6153 = vtanh.f32 %v4141_v35  ;;  %v4364_v7 = vmul.f32 0.5, %v6152_v39  ;;  %v6071_v35 = vld [vmem:[%s9099_s8 + $0x2b4] sm:$0xf]  ;;  %3946 = vmatpush.bf16.msra.mxu3 %v5775_v17  ;;  %v6057_v17 = vld [vmem:[%s9099_s8 + $0x244] sm:$0xf] }
 0x3ef   : > { %v4470_v6 = vadd.f32 0.5, %v4358_v55  ;;  %v3532_v5 = vpop.f32.mrf.mxu2  ;;  %v3581_v3 = vpop.f32.mrf.mxu3  ;;  %6155 = vtanh.f32 %v4147_v47  ;;  %v5747_v43 = vor.u32 %v6071_v35, %v5744_v11  ;;  %v5994_v35 = vld [vmem:[%s9099_s8 + $0x4c] sm:$0xf]  ;;  %v5436_v11 = vld [vmem:[%s9099_s8 + $0x64] sm:$0xf0] }
 0x3f0   : > { %v3533_v24 = vadd.f32 %v3532_v5, %v8526_v23  ;;  %v3436_v57 = vpop.f32.mrf.mxu0  ;;  %v3485_v52 = vpop.f32.mrf.mxu1  ;;  %v4476_v50 = vadd.f32 0.5, %v4364_v7  ;;  %v5464_v7 = vld [vmem:[%s9099_s8 + $0x9c] sm:$0xf0] }
 0x3f1   : > { %v4563_v21 = vpack.c.bf16 %v4470_v6, %v4469_v60  ;;  %v3437_v49 = vadd.f32 %v3436_v57, %v8509_v1  ;;  %3898 = vmatpush.bf16.msra.mxu2 %v5523_v38  ;;  %v5492_v60 = vld [vmem:[%s9099_s8 + $0xd4] sm:$0xf0]  ;;  %v6064_v6 = vld [vmem:[%s9099_s8 + $0x27c] sm:$0xf]  ;;  %v5435_v57 = vor.u32 %v5997_v29, %v5434_v28 }
 0x3f2   : > { %v3582_v10 = vadd.f32 %v3581_v3, %v3533_v24  ;;  %v5495_v26 = vor.u32 %v6008_v41, %v5492_v60  ;;  %3947 = vmatpush.bf16.msra.mxu3 %v5747_v43 }
 0x3f3   : > { %4628 = vst [vmem:[%s8555_s26 + $0xa8] sm:$0xff] %v4563_v21  ;;  %v3486_v63 = vadd.f32 %v3485_v52, %v3437_v49  ;;  %v5658_v52 = vld [vmem:[%s9099_s8 + $0x208] sm:$0xf]  ;;  %3803 = vmatpush.bf16.msrb.mxu0 %v5435_v57  ;;  %v6046_v57 = vld [vmem:[%s9099_s8 + $0x1e8] sm:$0xf0] }
 0x3f4   : > { %v6154_v4 = vpop.eup %6153  ;;  %v4148_v13 = vmul.f32 0.5, %v3582_v10  ;;  %v5659_v49 = vor.u32 %v6053_v31, %v5658_v52  ;;  %v5716_v10 = vld [vmem:[%s9099_s8 + $0x294] sm:$0xf0] }
 0x3f5   : > { %v4365_v14 = vmul.f32 0.5, %v6154_v4  ;;  %v4154_v33 = vmul.f32 0.5, %v3486_v63  ;;  %v6156_v8 = vpop.eup %6155  ;;  %3899 = vmatpush.bf16.msra.mxu2 %v5495_v26  ;;  %v5719_v45 = vor.u32 %v6064_v6, %v5716_v10  ;;  %v5406_v6 = vld [vmem:[%s9099_s8 + $0x10] sm:$0xf] }
 0x3f6   : > { %6157 = vtanh.f32 %v4148_v13  ;;  %v4371_v5 = vmul.f32 0.5, %v6156_v8  ;;  %3852 = vmatpush.bf16.msrb.mxu1 %v5659_v49  ;;  %v5467_v13 = vor.u32 %v6001_v46, %v5464_v7  ;;  %v6050_v8 = vld [vmem:[%s9099_s8 + $0x20c] sm:$0xf] }
 0x3f7   : > { %v4477_v18 = vadd.f32 0.5, %v4365_v14  ;;  %v3534_v53 = vpop.f32.mrf.mxu2  ;;  %v3583_v62 = vpop.f32.mrf.mxu3  ;;  %6159 = vtanh.f32 %v4154_v33  ;;  %v5688_v14 = vld [vmem:[%s9099_s8 + $0x25c] sm:$0xf0]  ;;  %3948 = vmatpush.bf16.msra.mxu3 %v5719_v45  ;;  %v5408_v45 = vld [vmem:[%s9099_s8 + $0x2c] sm:$0xf0] }
 0x3f8   : > { %v3535_v2 = vadd.f32 %v3534_v53, %v8526_v23  ;;  %v3439_v55 = vpop.f32.mrf.mxu0  ;;  %v3488_v59 = vpop.f32.mrf.mxu1  ;;  %v4483_v63 = vadd.f32 0.5, %v4371_v5  ;;  %v5990_v5 = vld [vmem:[%s9099_s8 + $0x28] sm:$0xf0] }
 0x3f9   : > { %v4567_v12 = vpack.c.bf16 %v4477_v18, %v4476_v50  ;;  %v3440_v47 = vadd.f32 %v3439_v55, %v8509_v1  ;;  %3900 = vmatpush.bf16.msra.mxu2 %v5467_v13 }
 0x3fa   : > { %v3584_v25 = vadd.f32 %v3583_v62, %v3535_v2  ;;  %v5691_v62 = vor.u32 %v6057_v17, %v5688_v14 }
 0x3fb   : > { %4632 = vst [vmem:[%s8555_s26 + $0xc4] sm:$0xff] %v4567_v12  ;;  %v3489_v3 = vadd.f32 %v3488_v59, %v3440_v47  ;;  %3634 = vmatmul.bf16.gmra.mxu0 %v8399_v19  ;;  %3683 = vmatmul.bf16.gmra.mxu1 %v8401_v42  ;;  %v5439_v59 = vor.u32 %v5994_v35, %v5436_v11  ;;  %v5660_v12 = vld [vmem:[%s9099_s8 + $0x224] sm:$0xf0] }
 0x3fc   : > { %v6158_v39 = vpop.eup %6157  ;;  %v4155_v24 = vmul.f32 0.5, %v3584_v25  ;;  %3732 = vmatmul.bf16.gmra.mxu2 %v8399_v19  ;;  %3781 = vmatmul.bf16.gmra.mxu3 %v8401_v42  ;;  %v5663_v41 = vor.u32 %v6050_v8, %v5660_v12 }
 0x3fd   : > { %v4372_v21 = vmul.f32 0.5, %v6158_v39  ;;  %v4161_v37 = vmul.f32 0.5, %v3489_v3  ;;  %v6160_v33 = vpop.eup %6159  ;;  %3949 = vmatpush.bf16.msra.mxu3 %v5691_v62  ;;  %3901 = vmatpush.bf16.msra.mxu2 %v5439_v59  ;;  %v5407_v39 = vor.u32 %v5990_v5, %v5406_v6 }
 0x3fe   : > { %6161 = vtanh.f32 %v4155_v24  ;;  %v4378_v2 = vmul.f32 0.5, %v6160_v33  ;;  %v5630_v24 = vld [vmem:[%s9099_s8 + $0x1d0] sm:$0xf] }
 0x3ff   : > { %v4484_v36 = vadd.f32 0.5, %v4372_v21  ;;  %v3537_v48 = vpop.f32.mrf.mxu2  ;;  %v3586_v4 = vpop.f32.mrf.mxu3  ;;  %6163 = vtanh.f32 %v4161_v37  ;;  %v5631_v10 = vor.u32 %v6046_v57, %v5630_v24  ;;  %v5987_v37 = vld [vmem:[%s9099_s8 + $0x14] sm:$0xf]  ;;  %3804 = vmatpush.bf16.msrb.mxu0 %v5407_v39 }
 0x400   : > { %v3538_v27 = vadd.f32 %v3537_v48, %v8526_v23  ;;  %v3441_v58 = vpop.f32.mrf.mxu0  ;;  %v3490_v50 = vpop.f32.mrf.mxu1  ;;  %v4490_v3 = vadd.f32 0.5, %v4378_v2  ;;  %v5632_v48 = vld [vmem:[%s9099_s8 + $0x1ec] sm:$0xf0] }
 0x401   : > { %v4571_v18 = vpack.c.bf16 %v4484_v36, %v4483_v63  ;;  %v3442_v53 = vadd.f32 %v3441_v58, %v8509_v1  ;;  %3950 = vmatpush.bf16.msra.mxu3 %v5663_v41  ;;  %v5411_v63 = vor.u32 %v5987_v37, %v5408_v45  ;;  %v6043_v36 = vld [vmem:[%s9099_s8 + $0x1d4] sm:$0xf]  ;;  %3853 = vmatpush.bf16.msrb.mxu1 %v5631_v10  ;;  %v5610_v37 = vld [vmem:[%s9099_s8 + $0x1a0] sm:$0xf]  ;;  %v6040_v45 = vld [vmem:[%s9099_s8 + $0x1b8] sm:$0xf0] }
 0x402   : > { %v3587_v38 = vadd.f32 %v3586_v4, %v3538_v27  ;;  %v5635_v13 = vor.u32 %v6043_v36, %v5632_v48  ;;  %v5834_v36 = vld [vmem:[%s9099_s8 + $0x360] sm:$0xf]  ;;  %v6096_v48 = vld [vmem:[%s9099_s8 + $0x378] sm:$0xf0] }
 0x403   : > { %4636 = vst [vmem:[%s8555_s26 + $0xe0] sm:$0xff] %v4571_v18  ;;  %v3491_v55 = vadd.f32 %v3490_v50, %v3442_v53  ;;  %3902 = vmatpush.bf16.msra.mxu2 %v5411_v63  ;;  %v5611_v63 = vor.u32 %v6040_v45, %v5610_v37  ;;  %v5806_v37 = vld [vmem:[%s9099_s8 + $0x328] sm:$0xf]  ;;  %v6089_v45 = vld [vmem:[%s9099_s8 + $0x340] sm:$0xf0] }
 0x404   : > { %v6162_v47 = vpop.eup %6161  ;;  %v4162_v43 = vmul.f32 0.5, %v3587_v38 }
 0x405   : > { %v4379_v25 = vmul.f32 0.5, %v6162_v47  ;;  %v4168_v60 = vmul.f32 0.5, %v3491_v55  ;;  %v6164_v52 = vpop.eup %6163  ;;  %3951 = vmatpush.bf16.msra.mxu3 %v5635_v13  ;;  %v5835_v13 = vor.u32 %v6096_v48, %v5834_v36  ;;  %3993 = vmatpush.bf16.msra.mxu0 %v5611_v63 }
 0x406   : > { %6165 = vtanh.f32 %v4162_v43  ;;  %v4385_v17 = vmul.f32 0.5, %v6164_v52 }
 0x407   : > { %v4491_v28 = vadd.f32 0.5, %v4379_v25  ;;  %v3539_v29 = vpop.f32.mrf.mxu2  ;;  %v3588_v26 = vpop.f32.mrf.mxu3  ;;  %6167 = vtanh.f32 %v4168_v60  ;;  %4042 = vmatpush.bf16.msra.mxu1 %v5835_v13 }
 0x408   : > { %v3540_v31 = vadd.f32 %v3539_v29, %v8526_v23  ;;  %v3444_v21 = vpop.f32.mrf.mxu0  ;;  %v3493_v49 = vpop.f32.mrf.mxu1  ;;  %v4497_v18 = vadd.f32 0.5, %v4385_v17 }
 0x409   : > { %v4575_v46 = vpack.c.bf16 %v4491_v28, %v4490_v3  ;;  %v3445_v7 = vadd.f32 %v3444_v21, %v8509_v1 }
 0x40a   : > { %v3589_v4 = vadd.f32 %v3588_v26, %v3540_v31 }
 0x40b   : > { %4640 = vst [vmem:[%s8555_s26 + $0xfc] sm:$0xff] %v4575_v46  ;;  %v3494_v14 = vadd.f32 %v3493_v49, %v3445_v7  ;;  %3639 = vmatmul.bf16.gmra.mxu0 %v8471_v20  ;;  %3688 = vmatmul.bf16.gmra.mxu1 %v8473_v61 }
 0x40c   : > { %v6166_v33 = vpop.eup %6165  ;;  %v4169_v27 = vmul.f32 0.5, %v3589_v4  ;;  %3737 = vmatmul.bf16.gmra.mxu2 %v8471_v20  ;;  %3786 = vmatmul.bf16.gmra.mxu3 %v8473_v61 }
 0x40d   : > { %v4386_v58 = vmul.f32 0.5, %v6166_v33  ;;  %v4175_v50 = vmul.f32 0.5, %v3494_v14  ;;  %v6168_v35 = vpop.eup %6167 }
 0x40e   : > { %6169 = vtanh.f32 %v4169_v27  ;;  %v4392_v47 = vmul.f32 0.5, %v6168_v35 }
 0x40f   : > { %v4498_v53 = vadd.f32 0.5, %v4386_v58  ;;  %v3542_v62 = vpop.f32.mrf.mxu2  ;;  %v3591_v38 = vpop.f32.mrf.mxu3  ;;  %6171 = vtanh.f32 %v4175_v50 }
 0x410   : > { %v3543_v11 = vadd.f32 %v3542_v62, %v8526_v23  ;;  %v3446_v8 = vpop.f32.mrf.mxu0  ;;  %v3495_v2 = vpop.f32.mrf.mxu1  ;;  %v4504_v5 = vadd.f32 0.5, %v4392_v47  ;;  %v8789_v47 = vperm.slane %v8506_v0, 2 }
 0x411   : > { %v4579_v55 = vpack.c.bf16 %v4498_v53, %v4497_v18  ;;  %v3447_v59 = vadd.f32 %v3446_v8, %v8509_v1 }
 0x412   : > { %v3592_v12 = vadd.f32 %v3591_v38, %v3543_v11 }
 0x413   : > { %4644 = vst [vmem:[%s8555_s26 + $0x118] sm:$0xff] %v4579_v55  ;;  %v3496_v43 = vadd.f32 %v3495_v2, %v3447_v59 }
 0x414   : > { %v6170_v25 = vpop.eup %6169  ;;  %v4176_v41 = vmul.f32 0.5, %v3592_v12 }
 0x415   : > { %v4393_v60 = vmul.f32 0.5, %v6170_v25  ;;  %v4182_v6 = vmul.f32 0.5, %v3496_v43  ;;  %v6172_v26 = vpop.eup %6171 }
 0x416   : > { %6173 = vtanh.f32 %v4176_v41  ;;  %v4399_v49 = vmul.f32 0.5, %v6172_v26 }
 0x417   : > { %v4505_v3 = vadd.f32 0.5, %v4393_v60  ;;  %v3544_v28 = vpop.f32.mrf.mxu2  ;;  %v3593_v29 = vpop.f32.mrf.mxu3  ;;  %6175 = vtanh.f32 %v4182_v6 }
 0x418   : > { %v3545_v39 = vadd.f32 %v3544_v28, %v8526_v23  ;;  %v3449_v24 = vpop.f32.mrf.mxu0  ;;  %v3498_v57 = vpop.f32.mrf.mxu1  ;;  %v4511_v14 = vadd.f32 0.5, %v4399_v49  ;;  %v8805_v49 = vperm.slane %v8506_v0, 3 }
 0x419   : > { %v4583_v52 = vpack.c.bf16 %v4505_v3, %v4504_v5  ;;  %v3450_v31 = vadd.f32 %v3449_v24, %v8509_v1 }
 0x41a   : > { %v3594_v21 = vadd.f32 %v3593_v29, %v3545_v39 }
 0x41b   : > { %4648 = vst [vmem:[%s8555_s26 + $0x134] sm:$0xff] %v4583_v52  ;;  %v3499_v10 = vadd.f32 %v3498_v57, %v3450_v31  ;;  %3644 = vmatmul.bf16.gmra.mxu0 %v8492_v32  ;;  %3693 = vmatmul.bf16.gmra.mxu1 %v8494_v15  ;;  %v5582_v52 = vld [vmem:[%s9099_s8 + $0x168] sm:$0xf] }
 0x41c   : > { %v6174_v46 = vpop.eup %6173  ;;  %v4183_v7 = vmul.f32 0.5, %v3594_v21  ;;  %3742 = vmatmul.bf16.gmra.mxu2 %v8492_v32  ;;  %3791 = vmatmul.bf16.gmra.mxu3 %v8494_v15 }
 0x41d   : > { %v4400_v4 = vmul.f32 0.5, %v6174_v46  ;;  %v4189_v17 = vmul.f32 0.5, %v3499_v10  ;;  %v6176_v50 = vpop.eup %6175 }
 0x41e   : > { %6177 = vtanh.f32 %v4183_v7  ;;  %v4406_v8 = vmul.f32 0.5, %v6176_v50  ;;  %v5807_v7 = vor.u32 %v6089_v45, %v5806_v37 }
 0x41f   : > { %v4512_v33 = vadd.f32 0.5, %v4400_v4  ;;  %v3547_v27 = vpop.f32.mrf.mxu2  ;;  %v3596_v58 = vpop.f32.mrf.mxu3  ;;  %6179 = vtanh.f32 %v4189_v17 }
 0x420   : > { %v3548_v18 = vadd.f32 %v3547_v27, %v8526_v23  ;;  %v3451_v53 = vpop.f32.mrf.mxu0  ;;  %v3500_v62 = vpop.f32.mrf.mxu1  ;;  %v4518_v25 = vadd.f32 0.5, %v4406_v8  ;;  %4043 = vmatpush.bf16.msra.mxu1 %v5807_v7 }
 0x421   : > { %v4587_v38 = vpack.c.bf16 %v4512_v33, %v4511_v14  ;;  %v3452_v35 = vadd.f32 %v3451_v53, %v8509_v1 }
 0x422   : > { %v3597_v11 = vadd.f32 %v3596_v58, %v3548_v18 }
 0x423   : > { %4652 = vst [vmem:[%s8555_s26 + $0x150] sm:$0xff] %v4587_v38  ;;  %v3501_v2 = vadd.f32 %v3500_v62, %v3452_v35 }
 0x424   : > { %v6178_v55 = vpop.eup %6177  ;;  %v4190_v59 = vmul.f32 0.5, %v3597_v11 }
 0x425   : > { %v4407_v12 = vmul.f32 0.5, %v6178_v55  ;;  %v4196_v43 = vmul.f32 0.5, %v3501_v2  ;;  %v6180_v5 = vpop.eup %6179 }
 0x426   : > { %6181 = vtanh.f32 %v4190_v59  ;;  %v4413_v24 = vmul.f32 0.5, %v6180_v5 }
 0x427   : > { %v4519_v41 = vadd.f32 0.5, %v4407_v12  ;;  %v3549_v60 = vpop.f32.mrf.mxu2  ;;  %v3598_v6 = vpop.f32.mrf.mxu3  ;;  %6183 = vtanh.f32 %v4196_v43 }
 0x428   : > { %v3550_v1 = vadd.f32 %v3549_v60, %v8526_v23  ;;  %v3610_v3 = vpop.f32.mrf.mxu0  ;;  %v3659_v28 = vpop.f32.mrf.mxu1  ;;  %v6033_v23 = vld [vmem:[%s9099_s8 + $0x180] sm:$0xf0]  ;;  %v4525_v36 = vadd.f32 0.5, %v4413_v24 }
 0x429   : > { %v4591_v29 = vpack.c.bf16 %v4519_v41, %v4518_v25  ;;  %v3611_v26 = vadd.f32 %v3610_v3, %v8789_v47  ;;  %v5583_v10 = vor.u32 %v6033_v23, %v5582_v52  ;;  %v6082_v52 = vld [vmem:[%s9099_s8 + $0x308] sm:$0xf0] }
 0x42a   : > { %v3599_v39 = vadd.f32 %v3598_v6, %v3550_v1 }
 0x42b   : > { %4656 = vst [vmem:[%s8555_s26 + $0x16c] sm:$0xff] %v4591_v29  ;;  %v3660_v57 = vadd.f32 %v3659_v28, %v3611_v26  ;;  %3805 = vmatmul.bf16.vlgmr.msrb.gmra.mxu0 %v8231_v34  ;;  %3854 = vmatmul.bf16.vlgmr.msrb.gmra.mxu1 %v8233_v30  ;;  %v5554_v28 = vld [vmem:[%s9099_s8 + $0x130] sm:$0xf]  ;;  %v6026_v29 = vld [vmem:[%s9099_s8 + $0x148] sm:$0xf0] }
 0x42c   : > { %v6182_v31 = vpop.eup %6181  ;;  %v4197_v21 = vmul.f32 0.5, %v3599_v39  ;;  %3903 = vmatmul.bf16.vlgmr.msra.gmra.mxu2 %v8231_v34  ;;  %3952 = vmatmul.bf16.vlgmr.msra.gmra.mxu3 %v8233_v30  ;;  %v5555_v24 = vor.u32 %v6026_v29, %v5554_v28  ;;  %v6075_v28 = vld [vmem:[%s9099_s8 + $0x2d0] sm:$0xf0] }
 0x42d   : > { %v4414_v46 = vmul.f32 0.5, %v6182_v31  ;;  %v4093_v63 = vmul.f32 0.5, %v3660_v57  ;;  %3994 = vmatpush.bf16.msra.mxu0 %v5583_v10  ;;  %v6184_v13 = vpop.eup %6183  ;;  %v5778_v57 = vld [vmem:[%s9099_s8 + $0x2f0] sm:$0xf] }
 0x42e   : > { %6185 = vtanh.f32 %v4197_v21  ;;  %v4420_v18 = vmul.f32 0.5, %v6184_v13  ;;  %v5779_v31 = vor.u32 %v6082_v52, %v5778_v57 }
 0x42f   : > { %v4526_v48 = vadd.f32 0.5, %v4414_v46  ;;  %v3708_v4 = vpop.f32.mrf.mxu2  ;;  %v3757_v0 = vpop.f32.mrf.mxu3  ;;  %6187 = vtanh.f32 %v4093_v63 }
 0x430   : > { %v3709_v17 = vadd.f32 %v3708_v4, %v8805_v49  ;;  %v3612_v14 = vpop.f32.mrf.mxu0  ;;  %v3661_v33 = vpop.f32.mrf.mxu1  ;;  %v4532_v8 = vadd.f32 0.5, %v4420_v18  ;;  %4044 = vmatpush.bf16.msra.mxu1 %v5779_v31 }
 0x431   : > { %v4595_v27 = vpack.c.bf16 %v4526_v48, %v4525_v36  ;;  %v3613_v58 = vadd.f32 %v3612_v14, %v8789_v47  ;;  %3995 = vmatpush.bf16.msra.mxu0 %v5555_v24 }
 0x432   : > { %v3758_v50 = vadd.f32 %v3757_v0, %v3709_v17 }
 0x433   : > { %4660 = vst [vmem:[%s8555_s26 + $0x188] sm:$0xff] %v4595_v27  ;;  %v3662_v53 = vadd.f32 %v3661_v33, %v3613_v58 }
 0x434   : > { %v6186_v62 = vpop.eup %6185  ;;  %v4094_v38 = vmul.f32 0.5, %v3758_v50 }
 0x435   : > { %v4421_v35 = vmul.f32 0.5, %v6186_v62  ;;  %v4100_v11 = vmul.f32 0.5, %v3662_v53  ;;  %v6188_v12 = vpop.eup %6187 }
 0x436   : > { %6189 = vtanh.f32 %v4094_v38  ;;  %v4317_v1 = vmul.f32 0.5, %v6188_v12 }
 0x437   : > { %v4533_v2 = vadd.f32 0.5, %v4421_v35  ;;  %v3710_v55 = vpop.f32.mrf.mxu2  ;;  %v3759_v59 = vpop.f32.mrf.mxu3  ;;  %6191 = vtanh.f32 %v4100_v11 }
 0x438   : > { %v3711_v43 = vadd.f32 %v3710_v55, %v8805_v49  ;;  %v3615_v25 = vpop.f32.mrf.mxu0  ;;  %v3664_v41 = vpop.f32.mrf.mxu1  ;;  %v4429_v10 = vadd.f32 0.5, %v4317_v1 }
 0x439   : > { %v4599_v60 = vpack.c.bf16 %v4533_v2, %v4532_v8  ;;  %v3616_v6 = vadd.f32 %v3615_v25, %v8789_v47 }
 0x43a   : > { %v3760_v5 = vadd.f32 %v3759_v59, %v3711_v43 }
 0x43b   : > { %4664 = vst [vmem:[%s8555_s26 + $0x1a4] sm:$0xff] %v4599_v60  ;;  %v3665_v3 = vadd.f32 %v3664_v41, %v3616_v6  ;;  %3810 = vmatmul.bf16.gmra.mxu0 %v8255_v16  ;;  %3859 = vmatmul.bf16.gmra.mxu1 %v8257_v54  ;;  %v5526_v41 = vld [vmem:[%s9099_s8 + $0xf8] sm:$0xf]  ;;  %v6019_v60 = vld [vmem:[%s9099_s8 + $0x110] sm:$0xf0] }
 0x43c   : > { %v6190_v26 = vpop.eup %6189  ;;  %v4101_v39 = vmul.f32 0.5, %v3760_v5  ;;  %3908 = vmatmul.bf16.gmra.mxu2 %v8255_v16  ;;  %3957 = vmatmul.bf16.gmra.mxu3 %v8257_v54  ;;  %v5527_v1 = vor.u32 %v6019_v60, %v5526_v41  ;;  %v6068_v41 = vld [vmem:[%s9099_s8 + $0x298] sm:$0xf0] }
 0x43d   : > { %v4318_v23 = vmul.f32 0.5, %v6190_v26  ;;  %v4107_v21 = vmul.f32 0.5, %v3665_v3  ;;  %v6192_v7 = vpop.eup %6191  ;;  %v5750_v3 = vld [vmem:[%s9099_s8 + $0x2b8] sm:$0xf] }
 0x43e   : > { %6193 = vtanh.f32 %v4101_v39  ;;  %v4324_v17 = vmul.f32 0.5, %v6192_v7  ;;  %v5751_v26 = vor.u32 %v6075_v28, %v5750_v3  ;;  %3996 = vmatpush.bf16.msra.mxu0 %v5527_v1 }
 0x43f   : > { %v4430_v37 = vadd.f32 0.5, %v4318_v23  ;;  %v3713_v45 = vpop.f32.mrf.mxu2  ;;  %v3762_v46 = vpop.f32.mrf.mxu3  ;;  %6195 = vtanh.f32 %v4107_v21 }
 0x440   : > { %v3714_v63 = vadd.f32 %v3713_v45, %v8805_v49  ;;  %v3617_v36 = vpop.f32.mrf.mxu0  ;;  %v3666_v48 = vpop.f32.mrf.mxu1  ;;  %v4436_v18 = vadd.f32 0.5, %v4324_v17  ;;  %4045 = vmatpush.bf16.msra.mxu1 %v5751_v26 }
 0x441   : > { %v4540_v4 = vpack.c.bf16 %v4430_v37, %v4429_v10  ;;  %v3618_v0 = vadd.f32 %v3617_v36, %v8789_v47 }
 0x442   : > { %v3763_v13 = vadd.f32 %v3762_v46, %v3714_v63 }
 0x443   : > { %4604 = vst [vmem:[%s8555_s26 + $0x8] sm:$0xff] %v4540_v4  ;;  %v3667_v14 = vadd.f32 %v3666_v48, %v3618_v0 }
 0x444   : > { %v6194_v33 = vpop.eup %6193  ;;  %v4108_v27 = vmul.f32 0.5, %v3763_v13 }
 0x445   : > { %v4325_v58 = vmul.f32 0.5, %v6194_v33  ;;  %v4114_v50 = vmul.f32 0.5, %v3667_v14  ;;  %v6196_v35 = vpop.eup %6195 }
 0x446   : > { %6197 = vtanh.f32 %v4108_v27  ;;  %v4331_v43 = vmul.f32 0.5, %v6196_v35 }
 0x447   : > { %v4437_v53 = vadd.f32 0.5, %v4325_v58  ;;  %v3715_v62 = vpop.f32.mrf.mxu2  ;;  %v3764_v38 = vpop.f32.mrf.mxu3  ;;  %6199 = vtanh.f32 %v4114_v50 }
 0x448   : > { %v3716_v11 = vadd.f32 %v3715_v62, %v8805_v49  ;;  %v3620_v8 = vpop.f32.mrf.mxu0  ;;  %v3669_v2 = vpop.f32.mrf.mxu1  ;;  %v4443_v24 = vadd.f32 0.5, %v4331_v43 }
 0x449   : > { %v4544_v55 = vpack.c.bf16 %v4437_v53, %v4436_v18  ;;  %v3621_v59 = vadd.f32 %v3620_v8, %v8789_v47 }
 0x44a   : > { %v3765_v12 = vadd.f32 %v3764_v38, %v3716_v11 }
 0x44b   : > { %4609 = vst [vmem:[%s8555_s26 + $0x24] sm:$0xff] %v4544_v55  ;;  %v3670_v25 = vadd.f32 %v3669_v2, %v3621_v59  ;;  %3815 = vmatmul.bf16.gmra.mxu0 %v8279_v44  ;;  %3864 = vmatmul.bf16.gmra.mxu1 %v8281_v9  ;;  %v5498_v2 = vld [vmem:[%s9099_s8 + $0xc0] sm:$0xf]  ;;  %v6012_v55 = vld [vmem:[%s9099_s8 + $0xd8] sm:$0xf0] }
 0x44c   : > { %v6198_v6 = vpop.eup %6197  ;;  %v4115_v5 = vmul.f32 0.5, %v3765_v12  ;;  %3913 = vmatmul.bf16.gmra.mxu2 %v8279_v44  ;;  %3962 = vmatmul.bf16.gmra.mxu3 %v8281_v9  ;;  %v5499_v43 = vor.u32 %v6012_v55, %v5498_v2  ;;  %v6061_v2 = vld [vmem:[%s9099_s8 + $0x260] sm:$0xf0] }
 0x44d   : > { %v4332_v29 = vmul.f32 0.5, %v6198_v6  ;;  %v4121_v39 = vmul.f32 0.5, %v3670_v25  ;;  %v6200_v31 = vpop.eup %6199  ;;  %v5722_v25 = vld [vmem:[%s9099_s8 + $0x280] sm:$0xf] }
 0x44e   : > { %6201 = vtanh.f32 %v4115_v5  ;;  %v4338_v63 = vmul.f32 0.5, %v6200_v31  ;;  %v5723_v6 = vor.u32 %v6068_v41, %v5722_v25  ;;  %3997 = vmatpush.bf16.msra.mxu0 %v5499_v43 }
 0x44f   : > { %v4444_v57 = vadd.f32 0.5, %v4332_v29  ;;  %v3718_v52 = vpop.f32.mrf.mxu2  ;;  %v3767_v23 = vpop.f32.mrf.mxu3  ;;  %6203 = vtanh.f32 %v4121_v39 }
 0x450   : > { %v3719_v21 = vadd.f32 %v3718_v52, %v8805_v49  ;;  %v3622_v10 = vpop.f32.mrf.mxu0  ;;  %v3671_v37 = vpop.f32.mrf.mxu1  ;;  %v4450_v17 = vadd.f32 0.5, %v4338_v63  ;;  %4046 = vmatpush.bf16.msra.mxu1 %v5723_v6 }
 0x451   : > { %v4548_v45 = vpack.c.bf16 %v4444_v57, %v4443_v24  ;;  %v3623_v46 = vadd.f32 %v3622_v10, %v8789_v47 }
 0x452   : > { %v3768_v7 = vadd.f32 %v3767_v23, %v3719_v21 }
 0x453   : > { %4613 = vst [vmem:[%s8555_s26 + $0x40] sm:$0xff] %v4548_v45  ;;  %v3672_v36 = vadd.f32 %v3671_v37, %v3623_v46 }
 0x454   : > { %v6202_v48 = vpop.eup %6201  ;;  %v4122_v4 = vmul.f32 0.5, %v3768_v7 }
 0x455   : > { %v4339_v0 = vmul.f32 0.5, %v6202_v48  ;;  %v4128_v13 = vmul.f32 0.5, %v3672_v36  ;;  %v6204_v58 = vpop.eup %6203 }
 0x456   : > { %6205 = vtanh.f32 %v4122_v4  ;;  %v4345_v11 = vmul.f32 0.5, %v6204_v58 }
 0x457   : > { %v4451_v14 = vadd.f32 0.5, %v4339_v0  ;;  %v3720_v33 = vpop.f32.mrf.mxu2  ;;  %v3769_v27 = vpop.f32.mrf.mxu3  ;;  %6207 = vtanh.f32 %v4128_v13 }
 0x458   : > { %v3721_v50 = vadd.f32 %v3720_v33, %v8805_v49  ;;  %v3625_v18 = vpop.f32.mrf.mxu0  ;;  %v3674_v53 = vpop.f32.mrf.mxu1  ;;  %v4457_v1 = vadd.f32 0.5, %v4345_v11 }
 0x459   : > { %v4552_v62 = vpack.c.bf16 %v4451_v14, %v4450_v17  ;;  %v3626_v38 = vadd.f32 %v3625_v18, %v8789_v47 }
 0x45a   : > { %v3770_v35 = vadd.f32 %v3769_v27, %v3721_v50 }
 0x45b   : > { %4617 = vst [vmem:[%s8555_s26 + $0x5c] sm:$0xff] %v4552_v62  ;;  %v3675_v8 = vadd.f32 %v3674_v53, %v3626_v38  ;;  %3820 = vmatmul.bf16.gmra.mxu0 %v8303_v40  ;;  %3869 = vmatmul.bf16.gmra.mxu1 %v8305_v56  ;;  %v5470_v53 = vld [vmem:[%s9099_s8 + $0x88] sm:$0xf]  ;;  %v6005_v62 = vld [vmem:[%s9099_s8 + $0xa0] sm:$0xf0] }
 0x45c   : > { %v6206_v59 = vpop.eup %6205  ;;  %v4129_v12 = vmul.f32 0.5, %v3770_v35  ;;  %3918 = vmatmul.bf16.gmra.mxu2 %v8303_v40  ;;  %3967 = vmatmul.bf16.gmra.mxu3 %v8305_v56  ;;  %v5471_v11 = vor.u32 %v6005_v62, %v5470_v53  ;;  %v6054_v53 = vld [vmem:[%s9099_s8 + $0x228] sm:$0xf0] }
 0x45d   : > { %v4346_v60 = vmul.f32 0.5, %v6206_v59  ;;  %v4135_v5 = vmul.f32 0.5, %v3675_v8  ;;  %v6208_v26 = vpop.eup %6207  ;;  %v5694_v8 = vld [vmem:[%s9099_s8 + $0x248] sm:$0xf] }
 0x45e   : > { %6209 = vtanh.f32 %v4129_v12  ;;  %v4352_v21 = vmul.f32 0.5, %v6208_v26  ;;  %v5695_v59 = vor.u32 %v6061_v2, %v5694_v8  ;;  %3998 = vmatpush.bf16.msra.mxu0 %v5471_v11 }
 0x45f   : > { %v4458_v3 = vadd.f32 0.5, %v4346_v60  ;;  %v3723_v28 = vpop.f32.mrf.mxu2  ;;  %v3772_v29 = vpop.f32.mrf.mxu3  ;;  %6211 = vtanh.f32 %v4135_v5 }
 0x460   : > { %v3724_v39 = vadd.f32 %v3723_v28, %v8805_v49  ;;  %v3627_v24 = vpop.f32.mrf.mxu0  ;;  %v3676_v57 = vpop.f32.mrf.mxu1  ;;  %v4464_v63 = vadd.f32 0.5, %v4352_v21  ;;  %4047 = vmatpush.bf16.msra.mxu1 %v5695_v59 }
 0x461   : > { %v4556_v52 = vpack.c.bf16 %v4458_v3, %v4457_v1  ;;  %v3628_v23 = vadd.f32 %v3627_v24, %v8789_v47 }
 0x462   : > { %v3773_v31 = vadd.f32 %v3772_v29, %v3724_v39 }
 0x463   : > { %4621 = vst [vmem:[%s8555_s26 + $0x78] sm:$0xff] %v4556_v52  ;;  %v3677_v10 = vadd.f32 %v3676_v57, %v3628_v23 }
 0x464   : > { %v6210_v37 = vpop.eup %6209  ;;  %v4136_v45 = vmul.f32 0.5, %v3773_v31 }
 0x465   : > { %v4353_v46 = vmul.f32 0.5, %v6210_v37  ;;  %v4142_v7 = vmul.f32 0.5, %v3677_v10  ;;  %v6212_v0 = vpop.eup %6211 }
 0x466   : > { %6213 = vtanh.f32 %v4136_v45  ;;  %v4359_v50 = vmul.f32 0.5, %v6212_v0 }
 0x467   : > { %v4465_v36 = vadd.f32 0.5, %v4353_v46  ;;  %v3725_v48 = vpop.f32.mrf.mxu2  ;;  %v3774_v4 = vpop.f32.mrf.mxu3  ;;  %6215 = vtanh.f32 %v4142_v7 }
 0x468   : > { %v3726_v13 = vadd.f32 %v3725_v48, %v8805_v49  ;;  %v3630_v17 = vpop.f32.mrf.mxu0  ;;  %v3679_v14 = vpop.f32.mrf.mxu1  ;;  %v4471_v43 = vadd.f32 0.5, %v4359_v50 }
 0x469   : > { %v4560_v33 = vpack.c.bf16 %v4465_v36, %v4464_v63  ;;  %v3631_v27 = vadd.f32 %v3630_v17, %v8789_v47 }
 0x46a   : > { %v3775_v58 = vadd.f32 %v3774_v4, %v3726_v13 }
 0x46b   : > { %4625 = vst [vmem:[%s8555_s26 + $0x94] sm:$0xff] %v4560_v33  ;;  %v3680_v18 = vadd.f32 %v3679_v14, %v3631_v27  ;;  %3825 = vmatmul.bf16.gmra.mxu0 %v8327_v22  ;;  %3874 = vmatmul.bf16.gmra.mxu1 %v8329_v51  ;;  %v5442_v14 = vld [vmem:[%s9099_s8 + $0x50] sm:$0xf]  ;;  %v5998_v33 = vld [vmem:[%s9099_s8 + $0x68] sm:$0xf0] }
 0x46c   : > { %v6214_v38 = vpop.eup %6213  ;;  %v4143_v35 = vmul.f32 0.5, %v3775_v58  ;;  %3923 = vmatmul.bf16.gmra.mxu2 %v8327_v22  ;;  %3972 = vmatmul.bf16.gmra.mxu3 %v8329_v51  ;;  %v5443_v50 = vor.u32 %v5998_v33, %v5442_v14 }
 0x46d   : > { %v4360_v55 = vmul.f32 0.5, %v6214_v38  ;;  %v4149_v12 = vmul.f32 0.5, %v3680_v18  ;;  %v6216_v6 = vpop.eup %6215  ;;  %v5666_v18 = vld [vmem:[%s9099_s8 + $0x210] sm:$0xf] }
 0x46e   : > { %6217 = vtanh.f32 %v4143_v35  ;;  %v4366_v39 = vmul.f32 0.5, %v6216_v6  ;;  %v5667_v38 = vor.u32 %v6054_v53, %v5666_v18  ;;  %3999 = vmatpush.bf16.msra.mxu0 %v5443_v50 }
 0x46f   : > { %v4472_v25 = vadd.f32 0.5, %v4360_v55  ;;  %v3728_v41 = vpop.f32.mrf.mxu2  ;;  %v3777_v60 = vpop.f32.mrf.mxu3  ;;  %6219 = vtanh.f32 %v4149_v12 }
 0x470   : > { %v3729_v5 = vadd.f32 %v3728_v41, %v8805_v49  ;;  %v3632_v1 = vpop.f32.mrf.mxu0  ;;  %v3681_v3 = vpop.f32.mrf.mxu1  ;;  %v4478_v21 = vadd.f32 0.5, %v4366_v39  ;;  %4048 = vmatpush.bf16.msra.mxu1 %v5667_v38  ;;  %v5414_v39 = vld [vmem:[%s9099_s8 + $0x18] sm:$0xf] }
 0x471   : > { %v4564_v28 = vpack.c.bf16 %v4472_v25, %v4471_v43  ;;  %v3633_v29 = vadd.f32 %v3632_v1, %v8789_v47 }
 0x472   : > { %v3778_v26 = vadd.f32 %v3777_v60, %v3729_v5 }
 0x473   : > { %4629 = vst [vmem:[%s8555_s26 + $0xb0] sm:$0xff] %v4564_v28  ;;  %v3682_v24 = vadd.f32 %v3681_v3, %v3633_v29 }
 0x474   : > { %v6218_v57 = vpop.eup %6217  ;;  %v4150_v52 = vmul.f32 0.5, %v3778_v26 }
 0x475   : > { %v4367_v23 = vmul.f32 0.5, %v6218_v57  ;;  %v4156_v31 = vmul.f32 0.5, %v3682_v24  ;;  %v6220_v46 = vpop.eup %6219  ;;  %v5991_v24 = vld [vmem:[%s9099_s8 + $0x30] sm:$0xf0] }
 0x476   : > { %6221 = vtanh.f32 %v4150_v52  ;;  %v4373_v13 = vmul.f32 0.5, %v6220_v46 }
 0x477   : > { %v4479_v10 = vadd.f32 0.5, %v4367_v23  ;;  %v3730_v37 = vpop.f32.mrf.mxu2  ;;  %v3779_v45 = vpop.f32.mrf.mxu3  ;;  %6223 = vtanh.f32 %v4156_v31 }
 0x478   : > { %v3731_v7 = vadd.f32 %v3730_v37, %v8805_v49  ;;  %v3635_v63 = vpop.f32.mrf.mxu0  ;;  %v3684_v36 = vpop.f32.mrf.mxu1  ;;  %v4485_v11 = vadd.f32 0.5, %v4373_v13  ;;  %v6047_v37 = vld [vmem:[%s9099_s8 + $0x1f0] sm:$0xf0] }
 0x479   : > { %v4568_v48 = vpack.c.bf16 %v4479_v10, %v4478_v21  ;;  %v3636_v4 = vadd.f32 %v3635_v63, %v8789_v47  ;;  %v5415_v21 = vor.u32 %v5991_v24, %v5414_v39  ;;  %v5638_v10 = vld [vmem:[%s9099_s8 + $0x1d8] sm:$0xf] }
 0x47a   : > { %v3780_v0 = vadd.f32 %v3779_v45, %v3731_v7 }
 0x47b   : > { %4633 = vst [vmem:[%s8555_s26 + $0xcc] sm:$0xff] %v4568_v48  ;;  %v3685_v17 = vadd.f32 %v3684_v36, %v3636_v4  ;;  %3830 = vmatmul.bf16.gmra.mxu0 %v8399_v19  ;;  %3879 = vmatmul.bf16.gmra.mxu1 %v8401_v42  ;;  %v5639_v36 = vor.u32 %v6047_v37, %v5638_v10 }
 0x47c   : > { %v6222_v27 = vpop.eup %6221  ;;  %v4157_v58 = vmul.f32 0.5, %v3780_v0  ;;  %3928 = vmatmul.bf16.gmra.mxu2 %v8399_v19  ;;  %3977 = vmatmul.bf16.gmra.mxu3 %v8401_v42 }
 0x47d   : > { %v4374_v62 = vmul.f32 0.5, %v6222_v27  ;;  %v4163_v35 = vmul.f32 0.5, %v3685_v17  ;;  %v6224_v59 = vpop.eup %6223  ;;  %4000 = vmatpush.bf16.msra.mxu0 %v5415_v21  ;;  %4049 = vmatpush.bf16.msra.mxu1 %v5639_v36 }
 0x47e   : > { %6225 = vtanh.f32 %v4157_v58  ;;  %v4380_v5 = vmul.f32 0.5, %v6224_v59 }
 0x47f   : > { %v4486_v8 = vadd.f32 0.5, %v4374_v62  ;;  %v3733_v2 = vpop.f32.mrf.mxu2  ;;  %v3782_v55 = vpop.f32.mrf.mxu3  ;;  %6227 = vtanh.f32 %v4163_v35 }
 0x480   : > { %v3734_v12 = vadd.f32 %v3733_v2, %v8805_v49  ;;  %v3637_v43 = vpop.f32.mrf.mxu0  ;;  %v3686_v25 = vpop.f32.mrf.mxu1  ;;  %v4492_v57 = vadd.f32 0.5, %v4380_v5 }
 0x481   : > { %v4572_v41 = vpack.c.bf16 %v4486_v8, %v4485_v11  ;;  %v3638_v60 = vadd.f32 %v3637_v43, %v8789_v47 }
 0x482   : > { %v3783_v6 = vadd.f32 %v3782_v55, %v3734_v12 }
 0x483   : > { %4637 = vst [vmem:[%s8555_s26 + $0xe8] sm:$0xff] %v4572_v41  ;;  %v3687_v1 = vadd.f32 %v3686_v25, %v3638_v60 }
 0x484   : > { %v6226_v3 = vpop.eup %6225  ;;  %v4164_v28 = vmul.f32 0.5, %v3783_v6 }
 0x485   : > { %v4381_v29 = vmul.f32 0.5, %v6226_v3  ;;  %v4170_v26 = vmul.f32 0.5, %v3687_v1  ;;  %v6228_v45 = vpop.eup %6227 }
 0x486   : > { %6229 = vtanh.f32 %v4164_v28  ;;  %v4387_v13 = vmul.f32 0.5, %v6228_v45 }
 0x487   : > { %v4493_v52 = vadd.f32 0.5, %v4381_v29  ;;  %v3735_v23 = vpop.f32.mrf.mxu2  ;;  %v3784_v31 = vpop.f32.mrf.mxu3  ;;  %6231 = vtanh.f32 %v4170_v26 }
 0x488   : > { %v3736_v46 = vadd.f32 %v3735_v23, %v8805_v49  ;;  %v3640_v7 = vpop.f32.mrf.mxu0  ;;  %v3689_v63 = vpop.f32.mrf.mxu1  ;;  %v4499_v50 = vadd.f32 0.5, %v4387_v13 }
 0x489   : > { %v4576_v48 = vpack.c.bf16 %v4493_v52, %v4492_v57  ;;  %v3641_v4 = vadd.f32 %v3640_v7, %v8789_v47 }
 0x48a   : > { %v3785_v0 = vadd.f32 %v3784_v31, %v3736_v46 }
 0x48b   : > { %4641 = vst [vmem:[%s8555_s26 + $0x104] sm:$0xff] %v4576_v48  ;;  %v3690_v17 = vadd.f32 %v3689_v63, %v3641_v4  ;;  %3835 = vmatmul.bf16.gmra.mxu0 %v8471_v20  ;;  %3884 = vmatmul.bf16.gmra.mxu1 %v8473_v61 }
 0x48c   : > { %v6230_v14 = vpop.eup %6229  ;;  %v4171_v33 = vmul.f32 0.5, %v3785_v0  ;;  %3933 = vmatmul.bf16.gmra.mxu2 %v8471_v20  ;;  %3982 = vmatmul.bf16.gmra.mxu3 %v8473_v61 }
 0x48d   : > { %v4388_v27 = vmul.f32 0.5, %v6230_v14  ;;  %v4177_v58 = vmul.f32 0.5, %v3690_v17  ;;  %v6232_v38 = vpop.eup %6231 }
 0x48e   : > { %6233 = vtanh.f32 %v4171_v33  ;;  %v4394_v12 = vmul.f32 0.5, %v6232_v38  ;;  %v8961_v38 = vld [vmem:[%s9100_s9] sm:$0x7f] }
 0x48f   : > { %v4500_v18 = vadd.f32 0.5, %v4388_v27  ;;  %v3738_v53 = vpop.f32.mrf.mxu2  ;;  %v3787_v62 = vpop.f32.mrf.mxu3  ;;  %6235 = vtanh.f32 %v4177_v58 }
 0x490   : > { %v3739_v35 = vadd.f32 %v3738_v53, %v8805_v49  ;;  %v3642_v11 = vpop.f32.mrf.mxu0  ;;  %v3691_v8 = vpop.f32.mrf.mxu1  ;;  %v4506_v5 = vadd.f32 0.5, %v4394_v12 }
 0x491   : > { %v4580_v2 = vpack.c.bf16 %v4500_v18, %v4499_v50  ;;  %v3643_v55 = vadd.f32 %v3642_v11, %v8789_v47 }
 0x492   : > { %v3788_v59 = vadd.f32 %v3787_v62, %v3739_v35  ;;  %v8964_v35 = vperm.slane %v8961_v38, 4 }
 0x493   : > { %4645 = vst [vmem:[%s8555_s26 + $0x120] sm:$0xff] %v4580_v2  ;;  %v3692_v43 = vadd.f32 %v3691_v8, %v3643_v55 }
 0x494   : > { %v6234_v25 = vpop.eup %6233  ;;  %v4178_v41 = vmul.f32 0.5, %v3788_v59 }
 0x495   : > { %v4395_v60 = vmul.f32 0.5, %v6234_v25  ;;  %v4184_v6 = vmul.f32 0.5, %v3692_v43  ;;  %v6236_v29 = vpop.eup %6235 }
 0x496   : > { %6237 = vtanh.f32 %v4178_v41  ;;  %v4401_v31 = vmul.f32 0.5, %v6236_v29  ;;  %v8972_v29 = vperm.slane %v8961_v38, 5 }
 0x497   : > { %v4507_v1 = vadd.f32 0.5, %v4395_v60  ;;  %v3740_v3 = vpop.f32.mrf.mxu2  ;;  %v3789_v28 = vpop.f32.mrf.mxu3  ;;  %6239 = vtanh.f32 %v4184_v6 }
 0x498   : > { %v3741_v26 = vadd.f32 %v3740_v3, %v8805_v49  ;;  %v3645_v39 = vpop.f32.mrf.mxu0  ;;  %v3694_v24 = vpop.f32.mrf.mxu1  ;;  %v4513_v7 = vadd.f32 0.5, %v4401_v31 }
 0x499   : > { %v4584_v57 = vpack.c.bf16 %v4507_v1, %v4506_v5  ;;  %v3646_v52 = vadd.f32 %v3645_v39, %v8789_v47 }
 0x49a   : > { %v3790_v23 = vadd.f32 %v3789_v28, %v3741_v26 }
 0x49b   : > { %4649 = vst [vmem:[%s8555_s26 + $0x13c] sm:$0xff] %v4584_v57  ;;  %v3695_v21 = vadd.f32 %v3694_v24, %v3646_v52  ;;  %3840 = vmatmul.bf16.gmra.mxu0 %v8492_v32  ;;  %3889 = vmatmul.bf16.gmra.mxu1 %v8494_v15 }
 0x49c   : > { %v6238_v10 = vpop.eup %6237  ;;  %v4185_v37 = vmul.f32 0.5, %v3790_v23  ;;  %3938 = vmatmul.bf16.gmra.mxu2 %v8492_v32  ;;  %3987 = vmatmul.bf16.gmra.mxu3 %v8494_v15 }
 0x49d   : > { %v4402_v45 = vmul.f32 0.5, %v6238_v10  ;;  %v4191_v46 = vmul.f32 0.5, %v3695_v21  ;;  %v6240_v4 = vpop.eup %6239 }
 0x49e   : > { %6241 = vtanh.f32 %v4185_v37  ;;  %v4408_v58 = vmul.f32 0.5, %v6240_v4 }
 0x49f   : > { %v4514_v63 = vadd.f32 0.5, %v4402_v45  ;;  %v3743_v36 = vpop.f32.mrf.mxu2  ;;  %v3792_v48 = vpop.f32.mrf.mxu3  ;;  %6243 = vtanh.f32 %v4191_v46 }
 0x4a0   : > { %v3744_v0 = vadd.f32 %v3743_v36, %v8805_v49  ;;  %v3647_v13 = vpop.f32.mrf.mxu0  ;;  %v3696_v17 = vpop.f32.mrf.mxu1 }
 0x4a1   : > { %v4588_v14 = vpack.c.bf16 %v4514_v63, %v4513_v7  ;;  %v3648_v33 = vadd.f32 %v3647_v13, %v8789_v47  ;;  %v4520_v47 = vadd.f32 0.5, %v4408_v58 }
 0x4a2   : > { %v3793_v27 = vadd.f32 %v3792_v48, %v3744_v0 }
 0x4a3   : > { %4653 = vst [vmem:[%s8555_s26 + $0x158] sm:$0xff] %v4588_v14  ;;  %v3697_v50 = vadd.f32 %v3696_v17, %v3648_v33 }
 0x4a4   : > { %v6242_v18 = vpop.eup %6241  ;;  %v4192_v53 = vmul.f32 0.5, %v3793_v27 }
 0x4a5   : > { %v4409_v62 = vmul.f32 0.5, %v6242_v18  ;;  %v4198_v11 = vmul.f32 0.5, %v3697_v50  ;;  %v6244_v59 = vpop.eup %6243 }
 0x4a6   : > { %6245 = vtanh.f32 %v4192_v53  ;;  %v4415_v5 = vmul.f32 0.5, %v6244_v59 }
 0x4a7   : > { %v4521_v8 = vadd.f32 0.5, %v4409_v62  ;;  %v3745_v2 = vpop.f32.mrf.mxu2  ;;  %v3794_v55 = vpop.f32.mrf.mxu3  ;;  %6247 = vtanh.f32 %v4198_v11 }
 0x4a8   : > { %v3746_v12 = vadd.f32 %v3745_v2, %v8805_v49  ;;  %v3806_v43 = vpop.f32.mrf.mxu0  ;;  %v3855_v25 = vpop.f32.mrf.mxu1  ;;  %v4527_v39 = vadd.f32 0.5, %v4415_v5 }
 0x4a9   : > { %v4592_v41 = vpack.c.bf16 %v4521_v8, %v4520_v47  ;;  %v3807_v60 = vadd.f32 %v3806_v43, %v8964_v35 }
 0x4aa   : > { %v3795_v6 = vadd.f32 %v3794_v55, %v3746_v12 }
 0x4ab   : > { %4657 = vst [vmem:[%s8555_s26 + $0x174] sm:$0xff] %v4592_v41  ;;  %v3856_v1 = vadd.f32 %v3855_v25, %v3807_v60  ;;  %4001 = vmatmul.bf16.vlgmr.msra.gmra.mxu0 %v8231_v34  ;;  %4050 = vmatmul.bf16.vlgmr.msra.gmra.mxu1 %v8233_v30 }
 0x4ac   : > { %v6246_v3 = vpop.eup %6245  ;;  %v4199_v28 = vmul.f32 0.5, %v3795_v6 }
 0x4ad   : > { %v4416_v49 = vmul.f32 0.5, %v6246_v3  ;;  %v4095_v26 = vmul.f32 0.5, %v3856_v1  ;;  %v6248_v23 = vpop.eup %6247 }
 0x4ae   : > { %6249 = vtanh.f32 %v4199_v28  ;;  %v4422_v45 = vmul.f32 0.5, %v6248_v23 }
 0x4af   : > { %v4528_v24 = vadd.f32 0.5, %v4416_v49  ;;  %v3904_v57 = vpop.f32.mrf.mxu2  ;;  %v3953_v52 = vpop.f32.mrf.mxu3  ;;  %6251 = vtanh.f32 %v4095_v26 }
 0x4b0   : > { %v3905_v31 = vadd.f32 %v3904_v57, %v8972_v29  ;;  %v3808_v21 = vpop.f32.mrf.mxu0  ;;  %v3857_v34 = vpop.f32.mrf.mxu1  ;;  %v4534_v4 = vadd.f32 0.5, %v4422_v45 }
 0x4b1   : > { %v4596_v10 = vpack.c.bf16 %v4528_v24, %v4527_v39  ;;  %v3809_v30 = vadd.f32 %v3808_v21, %v8964_v35 }
 0x4b2   : > { %v3954_v37 = vadd.f32 %v3953_v52, %v3905_v31 }
 0x4b3   : > { %4661 = vst [vmem:[%s8555_s26 + $0x190] sm:$0xff] %v4596_v10  ;;  %v3858_v46 = vadd.f32 %v3857_v34, %v3809_v30 }
 0x4b4   : > { %v6250_v7 = vpop.eup %6249  ;;  %v4096_v63 = vmul.f32 0.5, %v3954_v37 }
 0x4b5   : > { %v4423_v36 = vmul.f32 0.5, %v6250_v7  ;;  %v4102_v48 = vmul.f32 0.5, %v3858_v46  ;;  %v6252_v14 = vpop.eup %6251 }
 0x4b6   : > { %6253 = vtanh.f32 %v4096_v63  ;;  %v4319_v62 = vmul.f32 0.5, %v6252_v14 }
 0x4b7   : > { %v4535_v0 = vadd.f32 0.5, %v4423_v36  ;;  %v3906_v13 = vpop.f32.mrf.mxu2  ;;  %v3955_v17 = vpop.f32.mrf.mxu3  ;;  %6255 = vtanh.f32 %v4102_v48 }
 0x4b8   : > { %v3907_v33 = vadd.f32 %v3906_v13, %v8972_v29  ;;  %v3811_v27 = vpop.f32.mrf.mxu0  ;;  %v3860_v58 = vpop.f32.mrf.mxu1  ;;  %v4431_v59 = vadd.f32 0.5, %v4319_v62 }
 0x4b9   : > { %v4600_v50 = vpack.c.bf16 %v4535_v0, %v4534_v4  ;;  %v3812_v18 = vadd.f32 %v3811_v27, %v8964_v35 }
 0x4ba   : > { %v3956_v53 = vadd.f32 %v3955_v17, %v3907_v33 }
 0x4bb   : > { %4665 = vst [vmem:[%s8555_s26 + $0x1ac] sm:$0xff] %v4600_v50  ;;  %v3861_v11 = vadd.f32 %v3860_v58, %v3812_v18  ;;  %4006 = vmatmul.bf16.gmra.mxu0 %v8255_v16  ;;  %4055 = vmatmul.bf16.gmra.mxu1 %v8257_v54 }
 0x4bc   : > { %v6254_v47 = vpop.eup %6253  ;;  %v4103_v8 = vmul.f32 0.5, %v3956_v53 }
 0x4bd   : > { %v4320_v2 = vmul.f32 0.5, %v6254_v47  ;;  %v4109_v55 = vmul.f32 0.5, %v3861_v11  ;;  %v6256_v41 = vpop.eup %6255 }
 0x4be   : > { %6257 = vtanh.f32 %v4103_v8  ;;  %v4326_v3 = vmul.f32 0.5, %v6256_v41 }
 0x4bf   : > { %v4432_v12 = vadd.f32 0.5, %v4320_v2  ;;  %v3909_v43 = vpop.f32.mrf.mxu2  ;;  %v3958_v25 = vpop.f32.mrf.mxu3  ;;  %6259 = vtanh.f32 %v4109_v55 }
 0x4c0   : > { %v3910_v60 = vadd.f32 %v3909_v43, %v8972_v29  ;;  %v3813_v6 = vpop.f32.mrf.mxu0  ;;  %v3862_v5 = vpop.f32.mrf.mxu1  ;;  %v4438_v57 = vadd.f32 0.5, %v4326_v3 }
 0x4c1   : > { %v4541_v1 = vpack.c.bf16 %v4432_v12, %v4431_v59  ;;  %v3814_v16 = vadd.f32 %v3813_v6, %v8964_v35 }
 0x4c2   : > { %v3959_v54 = vadd.f32 %v3958_v25, %v3910_v60 }
 0x4c3   : > { %4605 = vst [vmem:[%s8555_s26 + $0x10] sm:$0xff] %v4541_v1  ;;  %v3863_v28 = vadd.f32 %v3862_v5, %v3814_v16 }
 0x4c4   : > { %v6258_v49 = vpop.eup %6257  ;;  %v4110_v26 = vmul.f32 0.5, %v3959_v54 }
 0x4c5   : > { %v4327_v39 = vmul.f32 0.5, %v6258_v49  ;;  %v4116_v24 = vmul.f32 0.5, %v3863_v28  ;;  %v6260_v21 = vpop.eup %6259 }
 0x4c6   : > { %6261 = vtanh.f32 %v4110_v26  ;;  %v4333_v7 = vmul.f32 0.5, %v6260_v21 }
 0x4c7   : > { %v4439_v52 = vadd.f32 0.5, %v4327_v39  ;;  %v3911_v23 = vpop.f32.mrf.mxu2  ;;  %v3960_v31 = vpop.f32.mrf.mxu3  ;;  %6263 = vtanh.f32 %v4116_v24 }
 0x4c8   : > { %v3912_v34 = vadd.f32 %v3911_v23, %v8972_v29  ;;  %v3816_v10 = vpop.f32.mrf.mxu0  ;;  %v3865_v30 = vpop.f32.mrf.mxu1  ;;  %v4445_v13 = vadd.f32 0.5, %v4333_v7 }
 0x4c9   : > { %v4545_v37 = vpack.c.bf16 %v4439_v52, %v4438_v57  ;;  %v3817_v45 = vadd.f32 %v3816_v10, %v8964_v35 }
 0x4ca   : > { %v3961_v46 = vadd.f32 %v3960_v31, %v3912_v34 }
 0x4cb   : > { %4610 = vst [vmem:[%s8555_s26 + $0x2c] sm:$0xff] %v4545_v37  ;;  %v3866_v63 = vadd.f32 %v3865_v30, %v3817_v45  ;;  %4011 = vmatmul.bf16.gmra.mxu0 %v8279_v44  ;;  %4060 = vmatmul.bf16.gmra.mxu1 %v8281_v9 }
 0x4cc   : > { %v6262_v36 = vpop.eup %6261  ;;  %v4117_v48 = vmul.f32 0.5, %v3961_v46 }
 0x4cd   : > { %v4334_v4 = vmul.f32 0.5, %v6262_v36  ;;  %v4123_v0 = vmul.f32 0.5, %v3866_v63  ;;  %v6264_v27 = vpop.eup %6263 }
 0x4ce   : > { %6265 = vtanh.f32 %v4117_v48  ;;  %v4340_v62 = vmul.f32 0.5, %v6264_v27 }
 0x4cf   : > { %v4446_v17 = vadd.f32 0.5, %v4334_v4  ;;  %v3914_v14 = vpop.f32.mrf.mxu2  ;;  %v3963_v33 = vpop.f32.mrf.mxu3  ;;  %6267 = vtanh.f32 %v4123_v0 }
 0x4d0   : > { %v3915_v58 = vadd.f32 %v3914_v14, %v8972_v29  ;;  %v3818_v50 = vpop.f32.mrf.mxu0  ;;  %v3867_v18 = vpop.f32.mrf.mxu1  ;;  %v4452_v59 = vadd.f32 0.5, %v4340_v62 }
 0x4d1   : > { %v4549_v53 = vpack.c.bf16 %v4446_v17, %v4445_v13  ;;  %v3819_v44 = vadd.f32 %v3818_v50, %v8964_v35 }
 0x4d2   : > { %v3964_v9 = vadd.f32 %v3963_v33, %v3915_v58 }
 0x4d3   : > { %4614 = vst [vmem:[%s8555_s26 + $0x48] sm:$0xff] %v4549_v53  ;;  %v3868_v11 = vadd.f32 %v3867_v18, %v3819_v44 }
 0x4d4   : > { %v6266_v47 = vpop.eup %6265  ;;  %v4124_v8 = vmul.f32 0.5, %v3964_v9 }
 0x4d5   : > { %v4341_v2 = vmul.f32 0.5, %v6266_v47  ;;  %v4130_v55 = vmul.f32 0.5, %v3868_v11  ;;  %v6268_v41 = vpop.eup %6267 }
 0x4d6   : > { %6269 = vtanh.f32 %v4124_v8  ;;  %v4347_v3 = vmul.f32 0.5, %v6268_v41 }
 0x4d7   : > { %v4453_v12 = vadd.f32 0.5, %v4341_v2  ;;  %v3916_v43 = vpop.f32.mrf.mxu2  ;;  %v3965_v25 = vpop.f32.mrf.mxu3  ;;  %6271 = vtanh.f32 %v4130_v55 }
 0x4d8   : > { %v3917_v60 = vadd.f32 %v3916_v43, %v8972_v29  ;;  %v3821_v6 = vpop.f32.mrf.mxu0  ;;  %v3870_v5 = vpop.f32.mrf.mxu1  ;;  %v4459_v57 = vadd.f32 0.5, %v4347_v3 }
 0x4d9   : > { %v4553_v1 = vpack.c.bf16 %v4453_v12, %v4452_v59  ;;  %v3822_v16 = vadd.f32 %v3821_v6, %v8964_v35 }
 0x4da   : > { %v3966_v54 = vadd.f32 %v3965_v25, %v3917_v60 }
 0x4db   : > { %4618 = vst [vmem:[%s8555_s26 + $0x64] sm:$0xff] %v4553_v1  ;;  %v3871_v28 = vadd.f32 %v3870_v5, %v3822_v16  ;;  %4016 = vmatmul.bf16.gmra.mxu0 %v8303_v40  ;;  %4065 = vmatmul.bf16.gmra.mxu1 %v8305_v56 }
 0x4dc   : > { %v6270_v49 = vpop.eup %6269  ;;  %v4131_v26 = vmul.f32 0.5, %v3966_v54 }
 0x4dd   : > { %v4348_v39 = vmul.f32 0.5, %v6270_v49  ;;  %v4137_v24 = vmul.f32 0.5, %v3871_v28  ;;  %v6272_v21 = vpop.eup %6271 }
 0x4de   : > { %6273 = vtanh.f32 %v4131_v26  ;;  %v4354_v45 = vmul.f32 0.5, %v6272_v21 }
 0x4df   : > { %v4460_v52 = vadd.f32 0.5, %v4348_v39  ;;  %v3919_v23 = vpop.f32.mrf.mxu2  ;;  %v3968_v31 = vpop.f32.mrf.mxu3  ;;  %6275 = vtanh.f32 %v4137_v24 }
 0x4e0   : > { %v3920_v34 = vadd.f32 %v3919_v23, %v8972_v29  ;;  %v3823_v10 = vpop.f32.mrf.mxu0  ;;  %v3872_v30 = vpop.f32.mrf.mxu1  ;;  %v4466_v4 = vadd.f32 0.5, %v4354_v45 }
 0x4e1   : > { %v4557_v37 = vpack.c.bf16 %v4460_v52, %v4459_v57  ;;  %v3824_v40 = vadd.f32 %v3823_v10, %v8964_v35 }
 0x4e2   : > { %v3969_v56 = vadd.f32 %v3968_v31, %v3920_v34 }
 0x4e3   : > { %4622 = vst [vmem:[%s8555_s26 + $0x80] sm:$0xff] %v4557_v37  ;;  %v3873_v46 = vadd.f32 %v3872_v30, %v3824_v40 }
 0x4e4   : > { %v6274_v7 = vpop.eup %6273  ;;  %v4138_v63 = vmul.f32 0.5, %v3969_v56 }
 0x4e5   : > { %v4355_v36 = vmul.f32 0.5, %v6274_v7  ;;  %v4144_v48 = vmul.f32 0.5, %v3873_v46  ;;  %v6276_v14 = vpop.eup %6275 }
 0x4e6   : > { %6277 = vtanh.f32 %v4138_v63  ;;  %v4361_v44 = vmul.f32 0.5, %v6276_v14 }
 0x4e7   : > { %v4467_v0 = vadd.f32 0.5, %v4355_v36  ;;  %v3921_v13 = vpop.f32.mrf.mxu2  ;;  %v3970_v17 = vpop.f32.mrf.mxu3  ;;  %6279 = vtanh.f32 %v4144_v48 }
 0x4e8   : > { %v3922_v33 = vadd.f32 %v3921_v13, %v8972_v29  ;;  %v3826_v27 = vpop.f32.mrf.mxu0  ;;  %v3875_v58 = vpop.f32.mrf.mxu1  ;;  %v4473_v2 = vadd.f32 0.5, %v4361_v44 }
 0x4e9   : > { %v4561_v50 = vpack.c.bf16 %v4467_v0, %v4466_v4  ;;  %v3827_v18 = vadd.f32 %v3826_v27, %v8964_v35 }
 0x4ea   : > { %v3971_v53 = vadd.f32 %v3970_v17, %v3922_v33 }
 0x4eb   : > { %4626 = vst [vmem:[%s8555_s26 + $0x9c] sm:$0xff] %v4561_v50  ;;  %v3876_v9 = vadd.f32 %v3875_v58, %v3827_v18  ;;  %4021 = vmatmul.bf16.gmra.mxu0 %v8327_v22  ;;  %4070 = vmatmul.bf16.gmra.mxu1 %v8329_v51 }
 0x4ec   : > { %v6278_v62 = vpop.eup %6277  ;;  %v4145_v11 = vmul.f32 0.5, %v3971_v53 }
 0x4ed   : > { %v4362_v47 = vmul.f32 0.5, %v6278_v62  ;;  %v4151_v8 = vmul.f32 0.5, %v3876_v9  ;;  %v6280_v43 = vpop.eup %6279 }
 0x4ee   : > { %6281 = vtanh.f32 %v4145_v11  ;;  %v4368_v5 = vmul.f32 0.5, %v6280_v43 }
 0x4ef   : > { %v4474_v55 = vadd.f32 0.5, %v4362_v47  ;;  %v3924_v59 = vpop.f32.mrf.mxu2  ;;  %v3973_v12 = vpop.f32.mrf.mxu3  ;;  %6283 = vtanh.f32 %v4151_v8 }
 0x4f0   : > { %v3925_v25 = vadd.f32 %v3924_v59, %v8972_v29  ;;  %v3828_v41 = vpop.f32.mrf.mxu0  ;;  %v3877_v60 = vpop.f32.mrf.mxu1  ;;  %v4480_v49 = vadd.f32 0.5, %v4368_v5 }
 0x4f1   : > { %v4565_v6 = vpack.c.bf16 %v4474_v55, %v4473_v2  ;;  %v3829_v22 = vadd.f32 %v3828_v41, %v8964_v35 }
 0x4f2   : > { %v3974_v51 = vadd.f32 %v3973_v12, %v3925_v25 }
 0x4f3   : > { %4630 = vst [vmem:[%s8555_s26 + $0xb8] sm:$0xff] %v4565_v6  ;;  %v3878_v1 = vadd.f32 %v3877_v60, %v3829_v22 }
 0x4f4   : > { %v6282_v16 = vpop.eup %6281  ;;  %v4152_v54 = vmul.f32 0.5, %v3974_v51 }
 0x4f5   : > { %v4369_v3 = vmul.f32 0.5, %v6282_v16  ;;  %v4158_v28 = vmul.f32 0.5, %v3878_v1  ;;  %v6284_v57 = vpop.eup %6283 }
 0x4f6   : > { %6285 = vtanh.f32 %v4152_v54  ;;  %v4375_v30 = vmul.f32 0.5, %v6284_v57 }
 0x4f7   : > { %v4481_v26 = vadd.f32 0.5, %v4369_v3  ;;  %v3926_v39 = vpop.f32.mrf.mxu2  ;;  %v3975_v24 = vpop.f32.mrf.mxu3  ;;  %6287 = vtanh.f32 %v4158_v28 }
 0x4f8   : > { %v3927_v52 = vadd.f32 %v3926_v39, %v8972_v29  ;;  %v3831_v23 = vpop.f32.mrf.mxu0  ;;  %v3880_v31 = vpop.f32.mrf.mxu1  ;;  %v4487_v7 = vadd.f32 0.5, %v4375_v30 }
 0x4f9   : > { %v4569_v21 = vpack.c.bf16 %v4481_v26, %v4480_v49  ;;  %v3832_v34 = vadd.f32 %v3831_v23, %v8964_v35 }
 0x4fa   : > { %v3976_v10 = vadd.f32 %v3975_v24, %v3927_v52 }
 0x4fb   : > { %4634 = vst [vmem:[%s8555_s26 + $0xd4] sm:$0xff] %v4569_v21  ;;  %v3881_v37 = vadd.f32 %v3880_v31, %v3832_v34  ;;  %4026 = vmatmul.bf16.gmra.mxu0 %v8399_v19  ;;  %4075 = vmatmul.bf16.gmra.mxu1 %v8401_v42 }
 0x4fc   : > { %v6286_v40 = vpop.eup %6285  ;;  %v4159_v56 = vmul.f32 0.5, %v3976_v10 }
 0x4fd   : > { %v4376_v45 = vmul.f32 0.5, %v6286_v40  ;;  %v4165_v46 = vmul.f32 0.5, %v3881_v37  ;;  %v6288_v4 = vpop.eup %6287 }
 0x4fe   : > { %6289 = vtanh.f32 %v4159_v56  ;;  %v4382_v33 = vmul.f32 0.5, %v6288_v4 }
 0x4ff   : > { %v4488_v63 = vadd.f32 0.5, %v4376_v45  ;;  %v3929_v36 = vpop.f32.mrf.mxu2  ;;  %v3978_v48 = vpop.f32.mrf.mxu3  ;;  %6291 = vtanh.f32 %v4165_v46 }
 0x500   : > { %v3930_v0 = vadd.f32 %v3929_v36, %v8972_v29  ;;  %v3833_v13 = vpop.f32.mrf.mxu0  ;;  %v3882_v17 = vpop.f32.mrf.mxu1  ;;  %v4494_v44 = vadd.f32 0.5, %v4382_v33 }
 0x501   : > { %v4573_v14 = vpack.c.bf16 %v4488_v63, %v4487_v7  ;;  %v3834_v19 = vadd.f32 %v3833_v13, %v8964_v35 }
 0x502   : > { %v3979_v42 = vadd.f32 %v3978_v48, %v3930_v0 }
 0x503   : > { %4638 = vst [vmem:[%s8555_s26 + $0xf0] sm:$0xff] %v4573_v14  ;;  %v3883_v27 = vadd.f32 %v3882_v17, %v3834_v19 }
 0x504   : > { %v6290_v58 = vpop.eup %6289  ;;  %v4166_v50 = vmul.f32 0.5, %v3979_v42 }
 0x505   : > { %v4383_v18 = vmul.f32 0.5, %v6290_v58  ;;  %v4172_v53 = vmul.f32 0.5, %v3883_v27  ;;  %v6292_v47 = vpop.eup %6291 }
 0x506   : > { %6293 = vtanh.f32 %v4166_v50  ;;  %v4389_v25 = vmul.f32 0.5, %v6292_v47 }
 0x507   : > { %v4495_v9 = vadd.f32 0.5, %v4383_v18  ;;  %v3931_v62 = vpop.f32.mrf.mxu2  ;;  %v3980_v11 = vpop.f32.mrf.mxu3  ;;  %6295 = vtanh.f32 %v4172_v53 }
 0x508   : > { %v3932_v8 = vadd.f32 %v3931_v62, %v8972_v29  ;;  %v3836_v2 = vpop.f32.mrf.mxu0  ;;  %v3885_v55 = vpop.f32.mrf.mxu1  ;;  %v4501_v5 = vadd.f32 0.5, %v4389_v25 }
 0x509   : > { %v4577_v59 = vpack.c.bf16 %v4495_v9, %v4494_v44  ;;  %v3837_v12 = vadd.f32 %v3836_v2, %v8964_v35  ;;  %v9034_v2 = vperm.slane %v8961_v38, 6 }
 0x50a   : > { %v3981_v43 = vadd.f32 %v3980_v11, %v3932_v8 }
 0x50b   : > { %4642 = vst [vmem:[%s8555_s26 + $0x10c] sm:$0xff] %v4577_v59  ;;  %v3886_v41 = vadd.f32 %v3885_v55, %v3837_v12  ;;  %4031 = vmatmul.bf16.gmra.mxu0 %v8471_v20  ;;  %4080 = vmatmul.bf16.gmra.mxu1 %v8473_v61 }
 0x50c   : > { %v6294_v60 = vpop.eup %6293  ;;  %v4173_v6 = vmul.f32 0.5, %v3981_v43 }
 0x50d   : > { %v4390_v22 = vmul.f32 0.5, %v6294_v60  ;;  %v4179_v51 = vmul.f32 0.5, %v3886_v41  ;;  %v6296_v3 = vpop.eup %6295 }
 0x50e   : > { %6297 = vtanh.f32 %v4173_v6  ;;  %v4396_v24 = vmul.f32 0.5, %v6296_v3 }
 0x50f   : > { %v4502_v1 = vadd.f32 0.5, %v4390_v22  ;;  %v3934_v16 = vpop.f32.mrf.mxu2  ;;  %v3983_v54 = vpop.f32.mrf.mxu3  ;;  %6299 = vtanh.f32 %v4179_v51 }
 0x510   : > { %v3935_v28 = vadd.f32 %v3934_v16, %v8972_v29  ;;  %v3838_v49 = vpop.f32.mrf.mxu0  ;;  %v3887_v26 = vpop.f32.mrf.mxu1  ;;  %v4508_v34 = vadd.f32 0.5, %v4396_v24 }
 0x511   : > { %v4581_v39 = vpack.c.bf16 %v4502_v1, %v4501_v5  ;;  %v3839_v20 = vadd.f32 %v3838_v49, %v8964_v35 }
 0x512   : > { %v3984_v61 = vadd.f32 %v3983_v54, %v3935_v28 }
 0x513   : > { %4646 = vst [vmem:[%s8555_s26 + $0x128] sm:$0xff] %v4581_v39  ;;  %v3888_v57 = vadd.f32 %v3887_v26, %v3839_v20 }
 0x514   : > { %v6298_v52 = vpop.eup %6297  ;;  %v4180_v23 = vmul.f32 0.5, %v3984_v61 }
 0x515   : > { %v4397_v31 = vmul.f32 0.5, %v6298_v52  ;;  %v4186_v21 = vmul.f32 0.5, %v3888_v57  ;;  %v6300_v40 = vpop.eup %6299 }
 0x516   : > { %6301 = vtanh.f32 %v4180_v23  ;;  %v4403_v48 = vmul.f32 0.5, %v6300_v40 }
 0x517   : > { %v4509_v10 = vadd.f32 0.5, %v4397_v31  ;;  %v3936_v30 = vpop.f32.mrf.mxu2  ;;  %v3985_v37 = vpop.f32.mrf.mxu3  ;;  %6303 = vtanh.f32 %v4186_v21 }
 0x518   : > { %v3937_v56 = vadd.f32 %v3936_v30, %v8972_v29  ;;  %v3841_v45 = vpop.f32.mrf.mxu0  ;;  %v3890_v46 = vpop.f32.mrf.mxu1  ;;  %v4515_v19 = vadd.f32 0.5, %v4403_v48 }
 0x519   : > { %v4585_v7 = vpack.c.bf16 %v4509_v10, %v4508_v34  ;;  %v3842_v63 = vadd.f32 %v3841_v45, %v8964_v35 }
 0x51a   : > { %v3986_v36 = vadd.f32 %v3985_v37, %v3937_v56 }
 0x51b   : > { %4650 = vst [vmem:[%s8555_s26 + $0x144] sm:$0xff] %v4585_v7  ;;  %v3891_v4 = vadd.f32 %v3890_v46, %v3842_v63  ;;  %4036 = vmatmul.bf16.gmra.mxu0 %v8492_v32  ;;  %4085 = vmatmul.bf16.gmra.mxu1 %v8494_v15 }
 0x51c   : > { %v6302_v0 = vpop.eup %6301  ;;  %v4187_v13 = vmul.f32 0.5, %v3986_v36 }
 0x51d   : > { %v4404_v17 = vmul.f32 0.5, %v6302_v0  ;;  %v4193_v14 = vmul.f32 0.5, %v3891_v4  ;;  %v6304_v58 = vpop.eup %6303 }
 0x51e   : > { %6305 = vtanh.f32 %v4187_v13  ;;  %v4410_v9 = vmul.f32 0.5, %v6304_v58 }
 0x51f   : > { %v4516_v42 = vadd.f32 0.5, %v4404_v17  ;;  %v3939_v33 = vpop.f32.mrf.mxu2  ;;  %v3988_v27 = vpop.f32.mrf.mxu3  ;;  %6307 = vtanh.f32 %v4193_v14 }
 0x520   : > { %v3940_v50 = vadd.f32 %v3939_v33, %v8972_v29  ;;  %v3843_v18 = vpop.f32.mrf.mxu0  ;;  %v3892_v53 = vpop.f32.mrf.mxu1  ;;  %v4522_v59 = vadd.f32 0.5, %v4410_v9 }
 0x521   : > { %v4589_v44 = vpack.c.bf16 %v4516_v42, %v4515_v19  ;;  %v3844_v32 = vadd.f32 %v3843_v18, %v8964_v35 }
 0x522   : > { %v3989_v15 = vadd.f32 %v3988_v27, %v3940_v50 }
 0x523   : > { %4654 = vst [vmem:[%s8555_s26 + $0x160] sm:$0xff] %v4589_v44  ;;  %v3893_v62 = vadd.f32 %v3892_v53, %v3844_v32 }
 0x524   : > { %v6306_v11 = vpop.eup %6305  ;;  %v4194_v47 = vmul.f32 0.5, %v3989_v15 }
 0x525   : > { %v4411_v8 = vmul.f32 0.5, %v6306_v11  ;;  %v4200_v55 = vmul.f32 0.5, %v3893_v62  ;;  %v6308_v25 = vpop.eup %6307 }
 0x526   : > { %6309 = vtanh.f32 %v4194_v47  ;;  %v4417_v38 = vmul.f32 0.5, %v6308_v25 }
 0x527   : > { %v4523_v12 = vadd.f32 0.5, %v4411_v8  ;;  %v3941_v43 = vpop.f32.mrf.mxu2  ;;  %v3990_v22 = vpop.f32.mrf.mxu3  ;;  %6311 = vtanh.f32 %v4200_v55 }
 0x528   : > { %v3942_v35 = vadd.f32 %v3941_v43, %v8972_v29  ;;  %v4002_v41 = vpop.f32.mrf.mxu0  ;;  %v4051_v60 = vpop.f32.mrf.mxu1  ;;  %v4529_v49 = vadd.f32 0.5, %v4417_v38 }
 0x529   : > { %v4593_v6 = vpack.c.bf16 %v4523_v12, %v4522_v59  ;;  %v4003_v51 = vadd.f32 %v4002_v41, %v9034_v2 }
 0x52a   : > { %v3991_v5 = vadd.f32 %v3990_v22, %v3942_v35 }
 0x52b   : > { %4658 = vst [vmem:[%s8555_s26 + $0x17c] sm:$0xff] %v4593_v6  ;;  %v4052_v1 = vadd.f32 %v4051_v60, %v4003_v51 }
 0x52c   : > { %v6310_v16 = vpop.eup %6309  ;;  %v4201_v54 = vmul.f32 0.5, %v3991_v5 }
 0x52d   : > { %v4418_v3 = vmul.f32 0.5, %v6310_v16  ;;  %v4097_v28 = vmul.f32 0.5, %v4052_v1  ;;  %v6312_v29 = vpop.eup %6311 }
 0x52e   : > { %6313 = vtanh.f32 %v4201_v54  ;;  %v4424_v57 = vmul.f32 0.5, %v6312_v29 }
 0x52f   : > { %v4530_v26 = vadd.f32 0.5, %v4418_v3  ;;  %6315 = vtanh.f32 %v4097_v28 }
 0x530   : > { %v4004_v39 = vpop.f32.mrf.mxu0  ;;  %v4053_v20 = vpop.f32.mrf.mxu1  ;;  %v4536_v30 = vadd.f32 0.5, %v4424_v57 }
 0x531   : > { %v4597_v61 = vpack.c.bf16 %v4530_v26, %v4529_v49  ;;  %v4005_v24 = vadd.f32 %v4004_v39, %v9034_v2 }
 0x533   : > { %4662 = vst [vmem:[%s8555_s26 + $0x198] sm:$0xff] %v4597_v61  ;;  %v4054_v52 = vadd.f32 %v4053_v20, %v4005_v24 }
 0x534   : > { %v6314_v23 = vpop.eup %6313 }
 0x535   : > { %v6316_v31 = vpop.eup %6315  ;;  %v4425_v21 = vmul.f32 0.5, %v6314_v23  ;;  %v4104_v34 = vmul.f32 0.5, %v4054_v52 }
 0x536   : > { %v4321_v10 = vmul.f32 0.5, %v6316_v31 }
 0x537   : > { %v4537_v37 = vadd.f32 0.5, %v4425_v21  ;;  %6317 = vtanh.f32 %v4104_v34 }
 0x538   : > { %v4433_v40 = vadd.f32 0.5, %v4321_v10  ;;  %v4007_v56 = vpop.f32.mrf.mxu0  ;;  %v4056_v45 = vpop.f32.mrf.mxu1 }
 0x539   : > { %v4601_v46 = vpack.c.bf16 %v4537_v37, %v4536_v30  ;;  %v4008_v7 = vadd.f32 %v4007_v56, %v9034_v2 }
 0x53a   : > { %v4542_v63 = vpack.c.bf16 %v4433_v40, %v4433_v40 }
 0x53b   : > { %4666 = vst [vmem:[%s8555_s26 + $0x1b4] sm:$0xff] %v4601_v46  ;;  %v4057_v36 = vadd.f32 %v4056_v45, %v4008_v7 }
 0x53c   : > { %4607 = vst.msk [vmem:[%s8555_s26 + $0x18] sm:$0xf] %vm4606_vm1, %v4542_v63 }
 0x53d   : > { %v6318_v48 = vpop.eup %6317  ;;  %v4111_v4 = vmul.f32 0.5, %v4057_v36 }
 0x53e   : > { %v4328_v0 = vmul.f32 0.5, %v6318_v48 }
 0x53f   : > { %6319 = vtanh.f32 %v4111_v4 }
 0x540   : > { %v4440_v13 = vadd.f32 0.5, %v4328_v0  ;;  %v4009_v17 = vpop.f32.mrf.mxu0  ;;  %v4058_v14 = vpop.f32.mrf.mxu1 }
 0x541   : > { %v4010_v19 = vadd.f32 %v4009_v17, %v9034_v2 }
 0x542   : > { %v4546_v42 = vpack.c.bf16 %v4440_v13, %v4440_v13 }
 0x543   : > { %v4059_v33 = vadd.f32 %v4058_v14, %v4010_v19 }
 0x544   : > { %4611 = vst.msk [vmem:[%s8555_s26 + $0x34] sm:$0xf] %vm4606_vm1, %v4546_v42 }
 0x545   : > { %v6320_v27 = vpop.eup %6319  ;;  %v4118_v58 = vmul.f32 0.5, %v4059_v33 }
 0x546   : > { %v4335_v50 = vmul.f32 0.5, %v6320_v27 }
 0x547   : > { %6321 = vtanh.f32 %v4118_v58 }
 0x548   : > { %v4447_v18 = vadd.f32 0.5, %v4335_v50  ;;  %v4012_v53 = vpop.f32.mrf.mxu0  ;;  %v4061_v44 = vpop.f32.mrf.mxu1 }
 0x549   : > { %v4013_v32 = vadd.f32 %v4012_v53, %v9034_v2 }
 0x54a   : > { %v4550_v15 = vpack.c.bf16 %v4447_v18, %v4447_v18 }
 0x54b   : > { %v4062_v9 = vadd.f32 %v4061_v44, %v4013_v32 }
 0x54c   : > { %4615 = vst.msk [vmem:[%s8555_s26 + $0x50] sm:$0xf] %vm4606_vm1, %v4550_v15 }
 0x54d   : > { %v6322_v62 = vpop.eup %6321  ;;  %v4125_v11 = vmul.f32 0.5, %v4062_v9 }
 0x54e   : > { %v4342_v47 = vmul.f32 0.5, %v6322_v62 }
 0x54f   : > { %6323 = vtanh.f32 %v4125_v11 }
 0x550   : > { %v4454_v8 = vadd.f32 0.5, %v4342_v47  ;;  %v4014_v55 = vpop.f32.mrf.mxu0  ;;  %v4063_v59 = vpop.f32.mrf.mxu1 }
 0x551   : > { %v4015_v12 = vadd.f32 %v4014_v55, %v9034_v2 }
 0x552   : > { %v4554_v43 = vpack.c.bf16 %v4454_v8, %v4454_v8 }
 0x553   : > { %v4064_v25 = vadd.f32 %v4063_v59, %v4015_v12 }
 0x554   : > { %4619 = vst.msk [vmem:[%s8555_s26 + $0x6c] sm:$0xf] %vm4606_vm1, %v4554_v43 }
 0x555   : > { %v6324_v35 = vpop.eup %6323  ;;  %v4132_v41 = vmul.f32 0.5, %v4064_v25 }
 0x556   : > { %v4349_v60 = vmul.f32 0.5, %v6324_v35 }
 0x557   : > { %6325 = vtanh.f32 %v4132_v41 }
 0x558   : > { %v4461_v6 = vadd.f32 0.5, %v4349_v60  ;;  %v4017_v22 = vpop.f32.mrf.mxu0  ;;  %v4066_v51 = vpop.f32.mrf.mxu1 }
 0x559   : > { %v4018_v5 = vadd.f32 %v4017_v22, %v9034_v2 }
 0x55a   : > { %v4558_v38 = vpack.c.bf16 %v4461_v6, %v4461_v6 }
 0x55b   : > { %v4067_v1 = vadd.f32 %v4066_v51, %v4018_v5 }
 0x55c   : > { %4623 = vst.msk [vmem:[%s8555_s26 + $0x88] sm:$0xf] %vm4606_vm1, %v4558_v38 }
 0x55d   : > { %v6326_v16 = vpop.eup %6325  ;;  %v4139_v54 = vmul.f32 0.5, %v4067_v1 }
 0x55e   : > { %v4356_v3 = vmul.f32 0.5, %v6326_v16 }
 0x55f   : > { %6327 = vtanh.f32 %v4139_v54 }
 0x560   : > { %v4468_v28 = vadd.f32 0.5, %v4356_v3  ;;  %v4019_v49 = vpop.f32.mrf.mxu0  ;;  %v4068_v26 = vpop.f32.mrf.mxu1 }
 0x561   : > { %v4020_v29 = vadd.f32 %v4019_v49, %v9034_v2 }
 0x562   : > { %v4562_v39 = vpack.c.bf16 %v4468_v28, %v4468_v28 }
 0x563   : > { %v4069_v20 = vadd.f32 %v4068_v26, %v4020_v29 }
 0x564   : > { %4627 = vst.msk [vmem:[%s8555_s26 + $0xa4] sm:$0xf] %vm4606_vm1, %v4562_v39 }
 0x565   : > { %v6328_v61 = vpop.eup %6327  ;;  %v4146_v24 = vmul.f32 0.5, %v4069_v20 }
 0x566   : > { %v4363_v57 = vmul.f32 0.5, %v6328_v61 }
 0x567   : > { %6329 = vtanh.f32 %v4146_v24 }
 0x568   : > { %v4475_v52 = vadd.f32 0.5, %v4363_v57  ;;  %v4022_v23 = vpop.f32.mrf.mxu0  ;;  %v4071_v31 = vpop.f32.mrf.mxu1 }
 0x569   : > { %v4023_v21 = vadd.f32 %v4022_v23, %v9034_v2 }
 0x56a   : > { %v4566_v34 = vpack.c.bf16 %v4475_v52, %v4475_v52 }
 0x56b   : > { %v4072_v10 = vadd.f32 %v4071_v31, %v4023_v21 }
 0x56c   : > { %4631 = vst.msk [vmem:[%s8555_s26 + $0xc0] sm:$0xf] %vm4606_vm1, %v4566_v34 }
 0x56d   : > { %v6330_v30 = vpop.eup %6329  ;;  %v4153_v37 = vmul.f32 0.5, %v4072_v10 }
 0x56e   : > { %v4370_v40 = vmul.f32 0.5, %v6330_v30 }
 0x56f   : > { %6331 = vtanh.f32 %v4153_v37 }
 0x570   : > { %v4482_v56 = vadd.f32 0.5, %v4370_v40  ;;  %v4024_v45 = vpop.f32.mrf.mxu0  ;;  %v4073_v46 = vpop.f32.mrf.mxu1 }
 0x571   : > { %v4025_v7 = vadd.f32 %v4024_v45, %v9034_v2 }
 0x572   : > { %v4570_v63 = vpack.c.bf16 %v4482_v56, %v4482_v56 }
 0x573   : > { %v4074_v36 = vadd.f32 %v4073_v46, %v4025_v7 }
 0x574   : > { %4635 = vst.msk [vmem:[%s8555_s26 + $0xdc] sm:$0xf] %vm4606_vm1, %v4570_v63 }
 0x575   : > { %v6332_v48 = vpop.eup %6331  ;;  %v4160_v4 = vmul.f32 0.5, %v4074_v36 }
 0x576   : > { %v4377_v0 = vmul.f32 0.5, %v6332_v48 }
 0x577   : > { %6333 = vtanh.f32 %v4160_v4 }
 0x578   : > { %v4489_v13 = vadd.f32 0.5, %v4377_v0  ;;  %v4027_v17 = vpop.f32.mrf.mxu0  ;;  %v4076_v14 = vpop.f32.mrf.mxu1 }
 0x579   : > { %v4028_v19 = vadd.f32 %v4027_v17, %v9034_v2 }
 0x57a   : > { %v4574_v42 = vpack.c.bf16 %v4489_v13, %v4489_v13 }
 0x57b   : > { %v4077_v33 = vadd.f32 %v4076_v14, %v4028_v19 }
 0x57c   : > { %4639 = vst.msk [vmem:[%s8555_s26 + $0xf8] sm:$0xf] %vm4606_vm1, %v4574_v42 }
 0x57d   : > { %v6334_v27 = vpop.eup %6333  ;;  %v4167_v58 = vmul.f32 0.5, %v4077_v33 }
 0x57e   : > { %v4384_v50 = vmul.f32 0.5, %v6334_v27 }
 0x57f   : > { %6335 = vtanh.f32 %v4167_v58 }
 0x580   : > { %v4496_v18 = vadd.f32 0.5, %v4384_v50  ;;  %v4029_v53 = vpop.f32.mrf.mxu0  ;;  %v4078_v44 = vpop.f32.mrf.mxu1 }
 0x581   : > { %v4030_v32 = vadd.f32 %v4029_v53, %v9034_v2 }
 0x582   : > { %v4578_v15 = vpack.c.bf16 %v4496_v18, %v4496_v18 }
 0x583   : > { %v4079_v9 = vadd.f32 %v4078_v44, %v4030_v32 }
 0x584   : > { %4643 = vst.msk [vmem:[%s8555_s26 + $0x114] sm:$0xf] %vm4606_vm1, %v4578_v15 }
 0x585   : > { %v6336_v62 = vpop.eup %6335  ;;  %v4174_v11 = vmul.f32 0.5, %v4079_v9 }
 0x586   : > { %v4391_v47 = vmul.f32 0.5, %v6336_v62 }
 0x587   : > { %6337 = vtanh.f32 %v4174_v11 }
 0x588   : > { %v4503_v8 = vadd.f32 0.5, %v4391_v47  ;;  %v4032_v55 = vpop.f32.mrf.mxu0  ;;  %v4081_v59 = vpop.f32.mrf.mxu1 }
 0x589   : > { %v4033_v12 = vadd.f32 %v4032_v55, %v9034_v2 }
 0x58a   : > { %v4582_v43 = vpack.c.bf16 %v4503_v8, %v4503_v8 }
 0x58b   : > { %v4082_v25 = vadd.f32 %v4081_v59, %v4033_v12 }
 0x58c   : > { %4647 = vst.msk [vmem:[%s8555_s26 + $0x130] sm:$0xf] %vm4606_vm1, %v4582_v43 }
 0x58d   : > { %v6338_v35 = vpop.eup %6337  ;;  %v4181_v41 = vmul.f32 0.5, %v4082_v25 }
 0x58e   : > { %v4398_v60 = vmul.f32 0.5, %v6338_v35 }
 0x58f   : > { %6339 = vtanh.f32 %v4181_v41 }
 0x590   : > { %v4510_v6 = vadd.f32 0.5, %v4398_v60  ;;  %v4034_v22 = vpop.f32.mrf.mxu0  ;;  %v4083_v51 = vpop.f32.mrf.mxu1 }
 0x591   : > { %v4035_v5 = vadd.f32 %v4034_v22, %v9034_v2 }
 0x592   : > { %v4586_v38 = vpack.c.bf16 %v4510_v6, %v4510_v6 }
 0x593   : > { %v4084_v1 = vadd.f32 %v4083_v51, %v4035_v5 }
 0x594   : > { %4651 = vst.msk [vmem:[%s8555_s26 + $0x14c] sm:$0xf] %vm4606_vm1, %v4586_v38 }
 0x595   : > { %v6340_v16 = vpop.eup %6339  ;;  %v4188_v54 = vmul.f32 0.5, %v4084_v1 }
 0x596   : > { %v4405_v3 = vmul.f32 0.5, %v6340_v16 }
 0x597   : > { %6341 = vtanh.f32 %v4188_v54 }
 0x598   : > { %v4517_v28 = vadd.f32 0.5, %v4405_v3  ;;  %v4037_v49 = vpop.f32.mrf.mxu0  ;;  %v4086_v26 = vpop.f32.mrf.mxu1 }
 0x599   : > { %v4038_v29 = vadd.f32 %v4037_v49, %v9034_v2 }
 0x59a   : > { %v4590_v39 = vpack.c.bf16 %v4517_v28, %v4517_v28 }
 0x59b   : > { %v4087_v20 = vadd.f32 %v4086_v26, %v4038_v29 }
 0x59c   : > { %4655 = vst.msk [vmem:[%s8555_s26 + $0x168] sm:$0xf] %vm4606_vm1, %v4590_v39 }
 0x59d   : > { %v6342_v61 = vpop.eup %6341  ;;  %v4195_v24 = vmul.f32 0.5, %v4087_v20 }
 0x59e   : > { %v4412_v57 = vmul.f32 0.5, %v6342_v61 }
 0x59f   : > { %6343 = vtanh.f32 %v4195_v24 }
 0x5a0   : > { %v4524_v52 = vadd.f32 0.5, %v4412_v57  ;;  %v4039_v23 = vpop.f32.mrf.mxu0  ;;  %v4088_v34 = vpop.f32.mrf.mxu1 }
 0x5a1   : > { %v4040_v31 = vadd.f32 %v4039_v23, %v9034_v2 }
 0x5a2   : > { %v4594_v21 = vpack.c.bf16 %v4524_v52, %v4524_v52 }
 0x5a3   : > { %v4089_v10 = vadd.f32 %v4088_v34, %v4040_v31 }
 0x5a4   : > { %4659 = vst.msk [vmem:[%s8555_s26 + $0x184] sm:$0xf] %vm4606_vm1, %v4594_v21 }
 0x5a5   : > { %v6344_v30 = vpop.eup %6343  ;;  %v4202_v37 = vmul.f32 0.5, %v4089_v10 }
 0x5a6   : > { %v4419_v40 = vmul.f32 0.5, %v6344_v30 }
 0x5a7   : > { %6345 = vtanh.f32 %v4202_v37 }
 0x5a8   : > { %v4531_v56 = vadd.f32 0.5, %v4419_v40 }
 0x5aa   : > { %v4598_v45 = vpack.c.bf16 %v4531_v56, %v4531_v56 }
 0x5ac   : > { %4663 = vst.msk [vmem:[%s8555_s26 + $0x1a0] sm:$0xf] %vm4606_vm1, %v4598_v45 }
 0x5ad   : > { %v6346_v46 = vpop.eup %6345 }
 0x5ae   : > { %v4426_v7 = vmul.f32 0.5, %v6346_v46 }
 0x5b0   : > { %v4538_v63 = vadd.f32 0.5, %v4426_v7 }
 0x5b2   : > { %v4602_v36 = vpack.c.bf16 %v4538_v63, %v4538_v63 }
 0x5b4   : > { %4667 = vst.msk [vmem:[%s8555_s26 + $0x1bc] sm:$0xf] %vm4606_vm1, %v4602_v36 }
 0x5b5 PF: > { %s22_s17 = sadd.s32 1, %s6354_s17  }
 0x5b6   : > { %p19_p4 = scmp.ge.s32.totalorder %s22_s17, 6  }
 0x5b8   :  { %21 = sbr.rel (!%p19_p4) target bundleno = 1 (0x1), region = 105 }

</bundles_post_ra>
